<compile_context>
chip_gen: v6e
topology: v6e:2x2x1
jax: 0.10.0
libtpu: 0.0.40
codegen_flags: <defaults>
</compile_context>

<pallas_src>
import functools

import jax
import jax.numpy as jnp
from jax import lax
from jax.experimental import pallas as pl
from jax.experimental.pallas import tpu as pltpu


# ----------------------------------------------------------------------------
# Integer index helpers (compile to shifts/ands for power-of-two divisors)
# ----------------------------------------------------------------------------
def _idiv(x, d):
    if d & (d - 1) == 0:
        return jnp.right_shift(x, d.bit_length() - 1)
    return x // d


def _imod(x, d):
    if d & (d - 1) == 0:
        return jnp.bitwise_and(x, d - 1)
    return x % d


# ----------------------------------------------------------------------------
# In-kernel building blocks (channels-first, flattened-spatial layout)
# ----------------------------------------------------------------------------
def _conv3x3_same_t(x_t, w_ref, b_ref, *, B, H, W, Cout):
    """3x3 / pad=1 / stride=1 conv + bias + ReLU in transposed (C, B*H*W) layout.

    x_t   : (Cin, M) bf16 value, M = B*H*W flattened b-major, row-major (i, j).
    w_ref : (9, Cout, Cin) bf16 ref; tap index = (di+1)*3 + (dj+1).
    b_ref : (Cout, 1) f32 ref.
    returns (Cout, M) f32.
    """
    Cin, M = x_t.shape
    pad = W + 1
    zpad = jnp.zeros((Cin, pad), dtype=x_t.dtype)
    xp = jnp.concatenate([zpad, x_t, zpad], axis=1)              # (Cin, M + 2*pad)

    m_idx = lax.broadcasted_iota(jnp.int32, (1, M), 1)
    jj = _imod(m_idx, W)
    ii = _imod(_idiv(m_idx, W), H)

    acc = jnp.zeros((Cout, M), dtype=jnp.float32)
    for di in (-1, 0, 1):
        for dj in (-1, 0, 1):
            tap = (di + 1) * 3 + (dj + 1)
            s = di * W + dj
            shifted = xp[:, pad + s:pad + s + M]                 # (Cin, M) bf16
            valid = ((ii + di >= 0) & (ii + di < H) &
                     (jj + dj >= 0) & (jj + dj < W))             # (1, M) bool
            tap_in = jnp.where(valid, shifted, jnp.zeros_like(shifted))
            acc = acc + jnp.dot(w_ref[tap], tap_in,
                                preferred_element_type=jnp.float32)
    acc = acc + b_ref[...]                                       # (Cout,1) lane bcast
    return jnp.maximum(acc, 0.0)


def _downsample2x_t(y_t, *, B, H, W):
    """Even-row/col selection (C, B*H*W) -> (C, B*(H//2)*(W//2)) via an MXU matmul."""
    oh, ow = H // 2, W // 2
    mi, mo = B * H * W, B * oh * ow
    src = lax.broadcasted_iota(jnp.int32, (mi, mo), 0)
    dst = lax.broadcasted_iota(jnp.int32, (mi, mo), 1)
    b = _idiv(dst, oh * ow)
    rem = dst - b * (oh * ow)
    i = _idiv(rem, ow)
    j = rem - i * ow
    want = b * (H * W) + 2 * i * W + 2 * j
    sel = (src == want).astype(jnp.float32)                      # (mi, mo) 0/1
    return jnp.dot(y_t, sel, preferred_element_type=jnp.float32)


# ----------------------------------------------------------------------------
# Fused kernel: UnetEncoder (3x3 convs, deeper levels stride-2) + Gaussian head
# ----------------------------------------------------------------------------
def gaussian_encoder_kernel(*refs, B, H, W, chans, exponent_factor):
    n = len(chans)
    x_ref = refs[0]
    lvl_refs = refs[1:1 + 2 * n]
    wmu_ref, bmu_ref, wls_ref, bls_ref = refs[1 + 2 * n:5 + 2 * n]
    out_refs = refs[5 + 2 * n:]
    f_refs, mu_ref, sigma_ref = out_refs[:n], out_refs[n], out_refs[n + 1]

    x = x_ref[...]                                               # (Cin, B*H*W) bf16
    h, w = H, W
    y = None
    for lvl, cout in enumerate(chans):
        w_ref = lvl_refs[2 * lvl]
        b_ref = lvl_refs[2 * lvl + 1]
        # full-resolution 3x3 conv (+bias+ReLU) at this level's input resolution
        y = _conv3x3_same_t(x, w_ref, b_ref, B=B, H=h, W=w, Cout=cout)
        if lvl > 0:                                              # stride-2 conv
            y = _downsample2x_t(y, B=B, H=h, W=w)
            h, w = h // 2, w // 2
        f_refs[lvl][...] = y                                     # (cout, B*h*w) f32
        x = y.astype(jnp.bfloat16)

    # ---- latent head: global spatial mean -> 1x1 conv -> (mu, sigma) ----
    s2 = h * w
    m2 = B * s2
    row = lax.broadcasted_iota(jnp.int32, (m2, B), 0)
    col = lax.broadcasted_iota(jnp.int32, (m2, B), 1)
    avg = jnp.where(_idiv(row, s2) == col, 1.0 / s2, 0.0).astype(jnp.float32)
    pooled = jnp.dot(y, avg, preferred_element_type=jnp.float32)  # (C_last, B)
    mu_ref[...] = (jnp.dot(wmu_ref[...], pooled,
                           preferred_element_type=jnp.float32) + bmu_ref[...])
    log_sigma = (jnp.dot(wls_ref[...], pooled,
                         preferred_element_type=jnp.float32) + bls_ref[...])
    sigma_ref[...] = jnp.exp(exponent_factor * log_sigma)


# ----------------------------------------------------------------------------
# Host wrapper
# ----------------------------------------------------------------------------
def gaussian_encoder_forward(x_nhwc, params, latent_dim, exponent_factor=0.5):
    """Returns (coarse_to_fine_features [NHWC], mu, sigma)."""
    B, H, W, Cin = x_nhwc.shape
    chans = tuple(int(p["b"].shape[0]) for p in params["levels"])
    n = len(chans)

    # channels-first flattened bf16 input: (Cin, B*H*W)
    x_t = (jnp.transpose(x_nhwc, (3, 0, 1, 2))
           .reshape(Cin, B * H * W).astype(jnp.bfloat16))

    inputs = [x_t]
    for p in params["levels"]:
        w_gemm = p["w"]                                          # (9*cin, cout)
        cout = int(p["b"].shape[0])
        cin = int(w_gemm.shape[0]) // 9
        w_t = jnp.transpose(w_gemm.reshape(9, cin, cout),
                            (0, 2, 1)).astype(jnp.bfloat16)      # (9, cout, cin)
        inputs += [w_t, p["b"].reshape(cout, 1).astype(jnp.float32)]

    reg_w, reg_b = params["reg_w"], params["reg_b"]
    wmu_t = jnp.transpose(reg_w[:, :latent_dim]).astype(jnp.float32)   # (L, C_last)
    wls_t = jnp.transpose(reg_w[:, latent_dim:]).astype(jnp.float32)
    bmu = reg_b[:latent_dim].reshape(latent_dim, 1).astype(jnp.float32)
    bls = reg_b[latent_dim:].reshape(latent_dim, 1).astype(jnp.float32)
    inputs += [wmu_t, bmu, wls_t, bls]

    out_shapes = []
    hw = []
    h, w = H, W
    for lvl, c in enumerate(chans):
        if lvl > 0:
            h, w = h // 2, w // 2
        hw.append((h, w))
        out_shapes.append(jax.ShapeDtypeStruct((c, B * h * w), jnp.float32))
    out_shapes += [jax.ShapeDtypeStruct((latent_dim, B), jnp.float32)] * 2
    out_shapes = tuple(out_shapes)

    def _full_spec(shape):
        return pl.BlockSpec(shape, lambda i, _nd=len(shape): (0,) * _nd)

    outs = pl.pallas_call(
        functools.partial(gaussian_encoder_kernel, B=B, H=H, W=W,
                          chans=chans, exponent_factor=exponent_factor),
        out_shape=out_shapes,
        grid_spec=pltpu.PrefetchScalarGridSpec(
            num_scalar_prefetch=0,
            grid=(1,),
            in_specs=[_full_spec(a.shape) for a in inputs],
            out_specs=tuple(_full_spec(s.shape) for s in out_shapes),
        ),
        compiler_params=pltpu.CompilerParams(
            dimension_semantics=("arbitrary",)),
    )(*inputs)

    f_t = outs[:n]
    mu_t, sigma_t = outs[n], outs[n + 1]

    feats_fine_to_coarse = [
        jnp.transpose(ft.reshape(c, B, hh, ww), (1, 2, 3, 0))    # back to NHWC
        for (hh, ww), c, ft in zip(hw, chans, f_t)
    ]
    return feats_fine_to_coarse[::-1], jnp.transpose(mu_t), jnp.transpose(sigma_t)


# ----------------------------------------------------------------------------
# Deterministic parameter init (synthetic; no checkpoint loading)
# ----------------------------------------------------------------------------
def init_params(key, in_ch, channels_per_level, latent_dim):
    params = {"levels": []}
    c_in = in_ch
    for c_out in channels_per_level:
        key, k1, k2 = jax.random.split(key, 3)
        w = jax.random.normal(k1, (3, 3, c_in, c_out), jnp.float32)
        w = w * (1.0 / jnp.sqrt(9.0 * c_in))
        b = jax.random.normal(k2, (c_out,), jnp.float32) * 0.01
        params["levels"].append({"w": w.reshape(9 * c_in, c_out), "b": b})
        c_in = c_out
    key, k1, k2 = jax.random.split(key, 3)
    params["reg_w"] = jax.random.normal(
        k1, (c_in, 2 * latent_dim), jnp.float32) * (1.0 / jnp.sqrt(float(c_in)))
    params["reg_b"] = jax.random.normal(k2, (2 * latent_dim,), jnp.float32) * 0.01
    return params


# ----------------------------------------------------------------------------
# Pure-XLA reference (for a loose numerical cross-check of the fused kernel)
# ----------------------------------------------------------------------------
def reference_forward(x_nhwc, params, latent_dim, exponent_factor=0.5):
    h = x_nhwc.astype(jnp.bfloat16).astype(jnp.float32)
    feats = []
    for lvl, p in enumerate(params["levels"]):
        cout = int(p["b"].shape[0])
        cin = int(p["w"].shape[0]) // 9
        w = (p["w"].astype(jnp.bfloat16).astype(jnp.float32)
             .reshape(3, 3, cin, cout))
        stride = 1 if lvl == 0 else 2
        h = lax.conv_general_dilated(
            h, w, window_strides=(stride, stride), padding=((1, 1), (1, 1)),
            dimension_numbers=("NHWC", "HWIO", "NHWC"))
        h = jnp.maximum(h + p["b"], 0.0)
        feats.append(h)
    pooled = jnp.mean(feats[-1], axis=(1, 2))
    stats = pooled @ params["reg_w"] + params["reg_b"]
    mu = stats[:, :latent_dim]
    sigma = jnp.exp(exponent_factor * stats[:, latent_dim:])
    return feats[::-1], mu, sigma


# ----------------------------------------------------------------------------
# Main
# ----------------------------------------------------------------------------
if __name__ == "__main__":
    key = jax.random.PRNGKey(0)
    kx, kp = jax.random.split(key)

    B, Cin, H, W = 2, 4, 16, 16
    latent_dim = 16
    channels_per_level = (8, 16, 32)

    # PyTorch-style NCHW input -> NHWC
    x_nchw = jax.random.normal(kx, (B, Cin, H, W), jnp.float32)
    x_nhwc = jnp.transpose(x_nchw, (0, 2, 3, 1))

    params = init_params(kp, Cin, channels_per_level, latent_dim)

    fwd = jax.jit(functools.partial(gaussian_encoder_forward,
                                    latent_dim=latent_dim, exponent_factor=0.5))
    feats, mu, sigma = fwd(x_nhwc, params)
    jax.block_until_ready((feats, mu, sigma))

    # Shape checks.
    assert feats[0].shape == (B, 4, 4, 32)       # coarsest level
    assert feats[-1].shape == (B, 16, 16, 8)     # finest level
    assert mu.shape == (B, latent_dim)
    assert sigma.shape == (B, latent_dim)
    assert bool(jnp.all(sigma > 0))

    # Loose numerical cross-check vs. pure-XLA reference (bf16 tolerance).
    ref_feats, ref_mu, ref_sigma = reference_forward(
        x_nhwc, params, latent_dim, 0.5)
    for a, b in zip(feats, ref_feats):
        assert a.shape == b.shape
        assert bool(jnp.allclose(a, b, atol=0.1, rtol=0.1))
    assert bool(jnp.allclose(mu, ref_mu, atol=0.1, rtol=0.1))
    assert bool(jnp.allclose(sigma, ref_sigma, atol=0.1, rtol=0.1))

    print("KERNEL_OK")
</pallas_src>

<mosaic_0001>
module attributes {stable_mosaic.version = 11 : i64} {
  func.func @gaussian_encoder_kernel(%arg0: i32, %arg1: memref<4x512xbf16, #tpu.memory_space<vmem>>, %arg2: memref<9x8x4xbf16, #tpu.memory_space<vmem>>, %arg3: memref<8x1xf32, #tpu.memory_space<vmem>>, %arg4: memref<9x16x8xbf16, #tpu.memory_space<vmem>>, %arg5: memref<16x1xf32, #tpu.memory_space<vmem>>, %arg6: memref<9x32x16xbf16, #tpu.memory_space<vmem>>, %arg7: memref<32x1xf32, #tpu.memory_space<vmem>>, %arg8: memref<16x32xf32, #tpu.memory_space<vmem>>, %arg9: memref<16x1xf32, #tpu.memory_space<vmem>>, %arg10: memref<16x32xf32, #tpu.memory_space<vmem>>, %arg11: memref<16x1xf32, #tpu.memory_space<vmem>>, %arg12: memref<8x512xf32, #tpu.memory_space<vmem>>, %arg13: memref<16x128xf32, #tpu.memory_space<vmem>>, %arg14: memref<32x32xf32, #tpu.memory_space<vmem>>, %arg15: memref<16x2xf32, #tpu.memory_space<vmem>>, %arg16: memref<16x2xf32, #tpu.memory_space<vmem>>) attributes {dimension_semantics = [#tpu.dimension_semantics<arbitrary>], iteration_bounds = array<i64: 1>, scalar_prefetch = 0 : i64, scratch_operands = 0 : i64, tpu.core_type = #tpu.core_type<tc>, window_params = [{pipeline_mode = #tpu.pipeline_mode<synchronous>, transform_indices = @transform_0, window_bounds = array<i64: 4, 512>}, {pipeline_mode = #tpu.pipeline_mode<synchronous>, transform_indices = @transform_1, window_bounds = array<i64: 9, 8, 4>}, {pipeline_mode = #tpu.pipeline_mode<synchronous>, transform_indices = @transform_2, window_bounds = array<i64: 8, 1>}, {pipeline_mode = #tpu.pipeline_mode<synchronous>, transform_indices = @transform_3, window_bounds = array<i64: 9, 16, 8>}, {pipeline_mode = #tpu.pipeline_mode<synchronous>, transform_indices = @transform_4, window_bounds = array<i64: 16, 1>}, {pipeline_mode = #tpu.pipeline_mode<synchronous>, transform_indices = @transform_5, window_bounds = array<i64: 9, 32, 16>}, {pipeline_mode = #tpu.pipeline_mode<synchronous>, transform_indices = @transform_6, window_bounds = array<i64: 32, 1>}, {pipeline_mode = #tpu.pipeline_mode<synchronous>, transform_indices = @transform_7, window_bounds = array<i64: 16, 32>}, {pipeline_mode = #tpu.pipeline_mode<synchronous>, transform_indices = @transform_8, window_bounds = array<i64: 16, 1>}, {pipeline_mode = #tpu.pipeline_mode<synchronous>, transform_indices = @transform_9, window_bounds = array<i64: 16, 32>}, {pipeline_mode = #tpu.pipeline_mode<synchronous>, transform_indices = @transform_10, window_bounds = array<i64: 16, 1>}, {pipeline_mode = #tpu.pipeline_mode<synchronous>, transform_indices = @transform_11, window_bounds = array<i64: 8, 512>}, {pipeline_mode = #tpu.pipeline_mode<synchronous>, transform_indices = @transform_12, window_bounds = array<i64: 16, 128>}, {pipeline_mode = #tpu.pipeline_mode<synchronous>, transform_indices = @transform_13, window_bounds = array<i64: 32, 32>}, {pipeline_mode = #tpu.pipeline_mode<synchronous>, transform_indices = @transform_14, window_bounds = array<i64: 16, 2>}, {pipeline_mode = #tpu.pipeline_mode<synchronous>, transform_indices = @transform_15, window_bounds = array<i64: 16, 2>}]} {
    %c0 = arith.constant 0 : index
    %c0_0 = arith.constant 0 : index
    %0 = vector.load %arg1[%c0, %c0_0] : memref<4x512xbf16, #tpu.memory_space<vmem>>, vector<4x512xbf16>
    %cst = arith.constant 0.000000e+00 : bf16
    %1 = vector.broadcast %cst : bf16 to vector<4x17xbf16>
    %2 = tpu.concatenate %1, %0, %1 in 1 : vector<4x17xbf16>, vector<4x512xbf16>, vector<4x17xbf16> -> vector<4x546xbf16>
    %3 = tpu.iota {dimensions = array<i32: 1>} : vector<1x512xi32>
    %c15_i32 = arith.constant 15 : i32
    %4 = vector.broadcast %c15_i32 : i32 to vector<1x512xi32>
    %5 = arith.andi %3, %4 : vector<1x512xi32>
    %c4_i32 = arith.constant 4 : i32
    %6 = vector.broadcast %c4_i32 : i32 to vector<1x512xi32>
    %7 = arith.shrsi %3, %6 : vector<1x512xi32>
    %c15_i32_1 = arith.constant 15 : i32
    %8 = vector.broadcast %c15_i32_1 : i32 to vector<1x512xi32>
    %9 = arith.andi %7, %8 : vector<1x512xi32>
    %cst_2 = arith.constant 0.000000e+00 : f32
    %10 = vector.broadcast %cst_2 : f32 to vector<8x512xf32>
    %11 = vector.extract_strided_slice %2 {offsets = [0, 0], sizes = [4, 512], strides = [1, 1]} : vector<4x546xbf16> to vector<4x512xbf16>
    %c-1_i32 = arith.constant -1 : i32
    %12 = vector.broadcast %c-1_i32 : i32 to vector<1x512xi32>
    %13 = arith.addi %9, %12 : vector<1x512xi32>
    %c0_i32 = arith.constant 0 : i32
    %14 = vector.broadcast %c0_i32 : i32 to vector<1x512xi32>
    %15 = arith.cmpi sge, %13, %14 : vector<1x512xi32>
    %c-1_i32_3 = arith.constant -1 : i32
    %16 = vector.broadcast %c-1_i32_3 : i32 to vector<1x512xi32>
    %17 = arith.addi %9, %16 : vector<1x512xi32>
    %c16_i32 = arith.constant 16 : i32
    %18 = vector.broadcast %c16_i32 : i32 to vector<1x512xi32>
    %19 = arith.cmpi slt, %17, %18 : vector<1x512xi32>
    %20 = arith.andi %15, %19 : vector<1x512xi1>
    %c-1_i32_4 = arith.constant -1 : i32
    %21 = vector.broadcast %c-1_i32_4 : i32 to vector<1x512xi32>
    %22 = arith.addi %5, %21 : vector<1x512xi32>
    %c0_i32_5 = arith.constant 0 : i32
    %23 = vector.broadcast %c0_i32_5 : i32 to vector<1x512xi32>
    %24 = arith.cmpi sge, %22, %23 : vector<1x512xi32>
    %25 = arith.andi %20, %24 : vector<1x512xi1>
    %c-1_i32_6 = arith.constant -1 : i32
    %26 = vector.broadcast %c-1_i32_6 : i32 to vector<1x512xi32>
    %27 = arith.addi %5, %26 : vector<1x512xi32>
    %c16_i32_7 = arith.constant 16 : i32
    %28 = vector.broadcast %c16_i32_7 : i32 to vector<1x512xi32>
    %29 = arith.cmpi slt, %27, %28 : vector<1x512xi32>
    %30 = arith.andi %25, %29 : vector<1x512xi1>
    %cst_8 = arith.constant 0.000000e+00 : bf16
    %31 = vector.broadcast %cst_8 : bf16 to vector<4x512xbf16>
    %32 = vector.shape_cast %30 : vector<1x512xi1> to vector<1x512xi1>
    %33 = vector.broadcast %32 : vector<1x512xi1> to vector<4x512xi1>
    %34 = arith.select %33, %11, %31 : vector<4x512xi1>, vector<4x512xbf16>
    %c0_9 = arith.constant 0 : index
    %c0_10 = arith.constant 0 : index
    %c0_11 = arith.constant 0 : index
    %35 = vector.load %arg2[%c0_9, %c0_10, %c0_11] : memref<9x8x4xbf16, #tpu.memory_space<vmem>>, vector<1x8x4xbf16>
    %36 = vector.shape_cast %35 : vector<1x8x4xbf16> to vector<8x4xbf16>
    %cst_12 = arith.constant dense<0.000000e+00> : vector<8x512xf32>
    %37 = tpu.matmul %36, %34, %cst_12 {dimension_numbers = #tpu.dot_dimension_numbers<[1], [0], [0], [1], [0, 0, 1, 1], [], []>} : vector<8x4xbf16>, vector<4x512xbf16>, vector<8x512xf32> -> vector<8x512xf32>
    %38 = arith.addf %10, %37 : vector<8x512xf32>
    %39 = vector.extract_strided_slice %2 {offsets = [0, 1], sizes = [4, 512], strides = [1, 1]} : vector<4x546xbf16> to vector<4x512xbf16>
    %c-1_i32_13 = arith.constant -1 : i32
    %40 = vector.broadcast %c-1_i32_13 : i32 to vector<1x512xi32>
    %41 = arith.addi %9, %40 : vector<1x512xi32>
    %c0_i32_14 = arith.constant 0 : i32
    %42 = vector.broadcast %c0_i32_14 : i32 to vector<1x512xi32>
    %43 = arith.cmpi sge, %41, %42 : vector<1x512xi32>
    %c-1_i32_15 = arith.constant -1 : i32
    %44 = vector.broadcast %c-1_i32_15 : i32 to vector<1x512xi32>
    %45 = arith.addi %9, %44 : vector<1x512xi32>
    %c16_i32_16 = arith.constant 16 : i32
    %46 = vector.broadcast %c16_i32_16 : i32 to vector<1x512xi32>
    %47 = arith.cmpi slt, %45, %46 : vector<1x512xi32>
    %48 = arith.andi %43, %47 : vector<1x512xi1>
    %c0_i32_17 = arith.constant 0 : i32
    %49 = vector.broadcast %c0_i32_17 : i32 to vector<1x512xi32>
    %50 = arith.addi %5, %49 : vector<1x512xi32>
    %c0_i32_18 = arith.constant 0 : i32
    %51 = vector.broadcast %c0_i32_18 : i32 to vector<1x512xi32>
    %52 = arith.cmpi sge, %50, %51 : vector<1x512xi32>
    %53 = arith.andi %48, %52 : vector<1x512xi1>
    %c0_i32_19 = arith.constant 0 : i32
    %54 = vector.broadcast %c0_i32_19 : i32 to vector<1x512xi32>
    %55 = arith.addi %5, %54 : vector<1x512xi32>
    %c16_i32_20 = arith.constant 16 : i32
    %56 = vector.broadcast %c16_i32_20 : i32 to vector<1x512xi32>
    %57 = arith.cmpi slt, %55, %56 : vector<1x512xi32>
    %58 = arith.andi %53, %57 : vector<1x512xi1>
    %cst_21 = arith.constant 0.000000e+00 : bf16
    %59 = vector.broadcast %cst_21 : bf16 to vector<4x512xbf16>
    %60 = vector.shape_cast %58 : vector<1x512xi1> to vector<1x512xi1>
    %61 = vector.broadcast %60 : vector<1x512xi1> to vector<4x512xi1>
    %62 = arith.select %61, %39, %59 : vector<4x512xi1>, vector<4x512xbf16>
    %c1 = arith.constant 1 : index
    %c0_22 = arith.constant 0 : index
    %c0_23 = arith.constant 0 : index
    %63 = vector.load %arg2[%c1, %c0_22, %c0_23] : memref<9x8x4xbf16, #tpu.memory_space<vmem>>, vector<1x8x4xbf16>
    %64 = vector.shape_cast %63 : vector<1x8x4xbf16> to vector<8x4xbf16>
    %cst_24 = arith.constant dense<0.000000e+00> : vector<8x512xf32>
    %65 = tpu.matmul %64, %62, %cst_24 {dimension_numbers = #tpu.dot_dimension_numbers<[1], [0], [0], [1], [0, 0, 1, 1], [], []>} : vector<8x4xbf16>, vector<4x512xbf16>, vector<8x512xf32> -> vector<8x512xf32>
    %66 = arith.addf %38, %65 : vector<8x512xf32>
    %67 = vector.extract_strided_slice %2 {offsets = [0, 2], sizes = [4, 512], strides = [1, 1]} : vector<4x546xbf16> to vector<4x512xbf16>
    %c-1_i32_25 = arith.constant -1 : i32
    %68 = vector.broadcast %c-1_i32_25 : i32 to vector<1x512xi32>
    %69 = arith.addi %9, %68 : vector<1x512xi32>
    %c0_i32_26 = arith.constant 0 : i32
    %70 = vector.broadcast %c0_i32_26 : i32 to vector<1x512xi32>
    %71 = arith.cmpi sge, %69, %70 : vector<1x512xi32>
    %c-1_i32_27 = arith.constant -1 : i32
    %72 = vector.broadcast %c-1_i32_27 : i32 to vector<1x512xi32>
    %73 = arith.addi %9, %72 : vector<1x512xi32>
    %c16_i32_28 = arith.constant 16 : i32
    %74 = vector.broadcast %c16_i32_28 : i32 to vector<1x512xi32>
    %75 = arith.cmpi slt, %73, %74 : vector<1x512xi32>
    %76 = arith.andi %71, %75 : vector<1x512xi1>
    %c1_i32 = arith.constant 1 : i32
    %77 = vector.broadcast %c1_i32 : i32 to vector<1x512xi32>
    %78 = arith.addi %5, %77 : vector<1x512xi32>
    %c0_i32_29 = arith.constant 0 : i32
    %79 = vector.broadcast %c0_i32_29 : i32 to vector<1x512xi32>
    %80 = arith.cmpi sge, %78, %79 : vector<1x512xi32>
    %81 = arith.andi %76, %80 : vector<1x512xi1>
    %c1_i32_30 = arith.constant 1 : i32
    %82 = vector.broadcast %c1_i32_30 : i32 to vector<1x512xi32>
    %83 = arith.addi %5, %82 : vector<1x512xi32>
    %c16_i32_31 = arith.constant 16 : i32
    %84 = vector.broadcast %c16_i32_31 : i32 to vector<1x512xi32>
    %85 = arith.cmpi slt, %83, %84 : vector<1x512xi32>
    %86 = arith.andi %81, %85 : vector<1x512xi1>
    %cst_32 = arith.constant 0.000000e+00 : bf16
    %87 = vector.broadcast %cst_32 : bf16 to vector<4x512xbf16>
    %88 = vector.shape_cast %86 : vector<1x512xi1> to vector<1x512xi1>
    %89 = vector.broadcast %88 : vector<1x512xi1> to vector<4x512xi1>
    %90 = arith.select %89, %67, %87 : vector<4x512xi1>, vector<4x512xbf16>
    %c2 = arith.constant 2 : index
    %c0_33 = arith.constant 0 : index
    %c0_34 = arith.constant 0 : index
    %91 = vector.load %arg2[%c2, %c0_33, %c0_34] : memref<9x8x4xbf16, #tpu.memory_space<vmem>>, vector<1x8x4xbf16>
    %92 = vector.shape_cast %91 : vector<1x8x4xbf16> to vector<8x4xbf16>
    %cst_35 = arith.constant dense<0.000000e+00> : vector<8x512xf32>
    %93 = tpu.matmul %92, %90, %cst_35 {dimension_numbers = #tpu.dot_dimension_numbers<[1], [0], [0], [1], [0, 0, 1, 1], [], []>} : vector<8x4xbf16>, vector<4x512xbf16>, vector<8x512xf32> -> vector<8x512xf32>
    %94 = arith.addf %66, %93 : vector<8x512xf32>
    %95 = vector.extract_strided_slice %2 {offsets = [0, 16], sizes = [4, 512], strides = [1, 1]} : vector<4x546xbf16> to vector<4x512xbf16>
    %c0_i32_36 = arith.constant 0 : i32
    %96 = vector.broadcast %c0_i32_36 : i32 to vector<1x512xi32>
    %97 = arith.addi %9, %96 : vector<1x512xi32>
    %c0_i32_37 = arith.constant 0 : i32
    %98 = vector.broadcast %c0_i32_37 : i32 to vector<1x512xi32>
    %99 = arith.cmpi sge, %97, %98 : vector<1x512xi32>
    %c0_i32_38 = arith.constant 0 : i32
    %100 = vector.broadcast %c0_i32_38 : i32 to vector<1x512xi32>
    %101 = arith.addi %9, %100 : vector<1x512xi32>
    %c16_i32_39 = arith.constant 16 : i32
    %102 = vector.broadcast %c16_i32_39 : i32 to vector<1x512xi32>
    %103 = arith.cmpi slt, %101, %102 : vector<1x512xi32>
    %104 = arith.andi %99, %103 : vector<1x512xi1>
    %c-1_i32_40 = arith.constant -1 : i32
    %105 = vector.broadcast %c-1_i32_40 : i32 to vector<1x512xi32>
    %106 = arith.addi %5, %105 : vector<1x512xi32>
    %c0_i32_41 = arith.constant 0 : i32
    %107 = vector.broadcast %c0_i32_41 : i32 to vector<1x512xi32>
    %108 = arith.cmpi sge, %106, %107 : vector<1x512xi32>
    %109 = arith.andi %104, %108 : vector<1x512xi1>
    %c-1_i32_42 = arith.constant -1 : i32
    %110 = vector.broadcast %c-1_i32_42 : i32 to vector<1x512xi32>
    %111 = arith.addi %5, %110 : vector<1x512xi32>
    %c16_i32_43 = arith.constant 16 : i32
    %112 = vector.broadcast %c16_i32_43 : i32 to vector<1x512xi32>
    %113 = arith.cmpi slt, %111, %112 : vector<1x512xi32>
    %114 = arith.andi %109, %113 : vector<1x512xi1>
    %cst_44 = arith.constant 0.000000e+00 : bf16
    %115 = vector.broadcast %cst_44 : bf16 to vector<4x512xbf16>
    %116 = vector.shape_cast %114 : vector<1x512xi1> to vector<1x512xi1>
    %117 = vector.broadcast %116 : vector<1x512xi1> to vector<4x512xi1>
    %118 = arith.select %117, %95, %115 : vector<4x512xi1>, vector<4x512xbf16>
    %c3 = arith.constant 3 : index
    %c0_45 = arith.constant 0 : index
    %c0_46 = arith.constant 0 : index
    %119 = vector.load %arg2[%c3, %c0_45, %c0_46] : memref<9x8x4xbf16, #tpu.memory_space<vmem>>, vector<1x8x4xbf16>
    %120 = vector.shape_cast %119 : vector<1x8x4xbf16> to vector<8x4xbf16>
    %cst_47 = arith.constant dense<0.000000e+00> : vector<8x512xf32>
    %121 = tpu.matmul %120, %118, %cst_47 {dimension_numbers = #tpu.dot_dimension_numbers<[1], [0], [0], [1], [0, 0, 1, 1], [], []>} : vector<8x4xbf16>, vector<4x512xbf16>, vector<8x512xf32> -> vector<8x512xf32>
    %122 = arith.addf %94, %121 : vector<8x512xf32>
    %123 = vector.extract_strided_slice %2 {offsets = [0, 17], sizes = [4, 512], strides = [1, 1]} : vector<4x546xbf16> to vector<4x512xbf16>
    %c0_i32_48 = arith.constant 0 : i32
    %124 = vector.broadcast %c0_i32_48 : i32 to vector<1x512xi32>
    %125 = arith.addi %9, %124 : vector<1x512xi32>
    %c0_i32_49 = arith.constant 0 : i32
    %126 = vector.broadcast %c0_i32_49 : i32 to vector<1x512xi32>
    %127 = arith.cmpi sge, %125, %126 : vector<1x512xi32>
    %c0_i32_50 = arith.constant 0 : i32
    %128 = vector.broadcast %c0_i32_50 : i32 to vector<1x512xi32>
    %129 = arith.addi %9, %128 : vector<1x512xi32>
    %c16_i32_51 = arith.constant 16 : i32
    %130 = vector.broadcast %c16_i32_51 : i32 to vector<1x512xi32>
    %131 = arith.cmpi slt, %129, %130 : vector<1x512xi32>
    %132 = arith.andi %127, %131 : vector<1x512xi1>
    %c0_i32_52 = arith.constant 0 : i32
    %133 = vector.broadcast %c0_i32_52 : i32 to vector<1x512xi32>
    %134 = arith.addi %5, %133 : vector<1x512xi32>
    %c0_i32_53 = arith.constant 0 : i32
    %135 = vector.broadcast %c0_i32_53 : i32 to vector<1x512xi32>
    %136 = arith.cmpi sge, %134, %135 : vector<1x512xi32>
    %137 = arith.andi %132, %136 : vector<1x512xi1>
    %c0_i32_54 = arith.constant 0 : i32
    %138 = vector.broadcast %c0_i32_54 : i32 to vector<1x512xi32>
    %139 = arith.addi %5, %138 : vector<1x512xi32>
    %c16_i32_55 = arith.constant 16 : i32
    %140 = vector.broadcast %c16_i32_55 : i32 to vector<1x512xi32>
    %141 = arith.cmpi slt, %139, %140 : vector<1x512xi32>
    %142 = arith.andi %137, %141 : vector<1x512xi1>
    %cst_56 = arith.constant 0.000000e+00 : bf16
    %143 = vector.broadcast %cst_56 : bf16 to vector<4x512xbf16>
    %144 = vector.shape_cast %142 : vector<1x512xi1> to vector<1x512xi1>
    %145 = vector.broadcast %144 : vector<1x512xi1> to vector<4x512xi1>
    %146 = arith.select %145, %123, %143 : vector<4x512xi1>, vector<4x512xbf16>
    %c4 = arith.constant 4 : index
    %c0_57 = arith.constant 0 : index
    %c0_58 = arith.constant 0 : index
    %147 = vector.load %arg2[%c4, %c0_57, %c0_58] : memref<9x8x4xbf16, #tpu.memory_space<vmem>>, vector<1x8x4xbf16>
    %148 = vector.shape_cast %147 : vector<1x8x4xbf16> to vector<8x4xbf16>
    %cst_59 = arith.constant dense<0.000000e+00> : vector<8x512xf32>
    %149 = tpu.matmul %148, %146, %cst_59 {dimension_numbers = #tpu.dot_dimension_numbers<[1], [0], [0], [1], [0, 0, 1, 1], [], []>} : vector<8x4xbf16>, vector<4x512xbf16>, vector<8x512xf32> -> vector<8x512xf32>
    %150 = arith.addf %122, %149 : vector<8x512xf32>
    %151 = vector.extract_strided_slice %2 {offsets = [0, 18], sizes = [4, 512], strides = [1, 1]} : vector<4x546xbf16> to vector<4x512xbf16>
    %c0_i32_60 = arith.constant 0 : i32
    %152 = vector.broadcast %c0_i32_60 : i32 to vector<1x512xi32>
    %153 = arith.addi %9, %152 : vector<1x512xi32>
    %c0_i32_61 = arith.constant 0 : i32
    %154 = vector.broadcast %c0_i32_61 : i32 to vector<1x512xi32>
    %155 = arith.cmpi sge, %153, %154 : vector<1x512xi32>
    %c0_i32_62 = arith.constant 0 : i32
    %156 = vector.broadcast %c0_i32_62 : i32 to vector<1x512xi32>
    %157 = arith.addi %9, %156 : vector<1x512xi32>
    %c16_i32_63 = arith.constant 16 : i32
    %158 = vector.broadcast %c16_i32_63 : i32 to vector<1x512xi32>
    %159 = arith.cmpi slt, %157, %158 : vector<1x512xi32>
    %160 = arith.andi %155, %159 : vector<1x512xi1>
    %c1_i32_64 = arith.constant 1 : i32
    %161 = vector.broadcast %c1_i32_64 : i32 to vector<1x512xi32>
    %162 = arith.addi %5, %161 : vector<1x512xi32>
    %c0_i32_65 = arith.constant 0 : i32
    %163 = vector.broadcast %c0_i32_65 : i32 to vector<1x512xi32>
    %164 = arith.cmpi sge, %162, %163 : vector<1x512xi32>
    %165 = arith.andi %160, %164 : vector<1x512xi1>
    %c1_i32_66 = arith.constant 1 : i32
    %166 = vector.broadcast %c1_i32_66 : i32 to vector<1x512xi32>
    %167 = arith.addi %5, %166 : vector<1x512xi32>
    %c16_i32_67 = arith.constant 16 : i32
    %168 = vector.broadcast %c16_i32_67 : i32 to vector<1x512xi32>
    %169 = arith.cmpi slt, %167, %168 : vector<1x512xi32>
    %170 = arith.andi %165, %169 : vector<1x512xi1>
    %cst_68 = arith.constant 0.000000e+00 : bf16
    %171 = vector.broadcast %cst_68 : bf16 to vector<4x512xbf16>
    %172 = vector.shape_cast %170 : vector<1x512xi1> to vector<1x512xi1>
    %173 = vector.broadcast %172 : vector<1x512xi1> to vector<4x512xi1>
    %174 = arith.select %173, %151, %171 : vector<4x512xi1>, vector<4x512xbf16>
    %c5 = arith.constant 5 : index
    %c0_69 = arith.constant 0 : index
    %c0_70 = arith.constant 0 : index
    %175 = vector.load %arg2[%c5, %c0_69, %c0_70] : memref<9x8x4xbf16, #tpu.memory_space<vmem>>, vector<1x8x4xbf16>
    %176 = vector.shape_cast %175 : vector<1x8x4xbf16> to vector<8x4xbf16>
    %cst_71 = arith.constant dense<0.000000e+00> : vector<8x512xf32>
    %177 = tpu.matmul %176, %174, %cst_71 {dimension_numbers = #tpu.dot_dimension_numbers<[1], [0], [0], [1], [0, 0, 1, 1], [], []>} : vector<8x4xbf16>, vector<4x512xbf16>, vector<8x512xf32> -> vector<8x512xf32>
    %178 = arith.addf %150, %177 : vector<8x512xf32>
    %179 = vector.extract_strided_slice %2 {offsets = [0, 32], sizes = [4, 512], strides = [1, 1]} : vector<4x546xbf16> to vector<4x512xbf16>
    %c1_i32_72 = arith.constant 1 : i32
    %180 = vector.broadcast %c1_i32_72 : i32 to vector<1x512xi32>
    %181 = arith.addi %9, %180 : vector<1x512xi32>
    %c0_i32_73 = arith.constant 0 : i32
    %182 = vector.broadcast %c0_i32_73 : i32 to vector<1x512xi32>
    %183 = arith.cmpi sge, %181, %182 : vector<1x512xi32>
    %c1_i32_74 = arith.constant 1 : i32
    %184 = vector.broadcast %c1_i32_74 : i32 to vector<1x512xi32>
    %185 = arith.addi %9, %184 : vector<1x512xi32>
    %c16_i32_75 = arith.constant 16 : i32
    %186 = vector.broadcast %c16_i32_75 : i32 to vector<1x512xi32>
    %187 = arith.cmpi slt, %185, %186 : vector<1x512xi32>
    %188 = arith.andi %183, %187 : vector<1x512xi1>
    %c-1_i32_76 = arith.constant -1 : i32
    %189 = vector.broadcast %c-1_i32_76 : i32 to vector<1x512xi32>
    %190 = arith.addi %5, %189 : vector<1x512xi32>
    %c0_i32_77 = arith.constant 0 : i32
    %191 = vector.broadcast %c0_i32_77 : i32 to vector<1x512xi32>
    %192 = arith.cmpi sge, %190, %191 : vector<1x512xi32>
    %193 = arith.andi %188, %192 : vector<1x512xi1>
    %c-1_i32_78 = arith.constant -1 : i32
    %194 = vector.broadcast %c-1_i32_78 : i32 to vector<1x512xi32>
    %195 = arith.addi %5, %194 : vector<1x512xi32>
    %c16_i32_79 = arith.constant 16 : i32
    %196 = vector.broadcast %c16_i32_79 : i32 to vector<1x512xi32>
    %197 = arith.cmpi slt, %195, %196 : vector<1x512xi32>
    %198 = arith.andi %193, %197 : vector<1x512xi1>
    %cst_80 = arith.constant 0.000000e+00 : bf16
    %199 = vector.broadcast %cst_80 : bf16 to vector<4x512xbf16>
    %200 = vector.shape_cast %198 : vector<1x512xi1> to vector<1x512xi1>
    %201 = vector.broadcast %200 : vector<1x512xi1> to vector<4x512xi1>
    %202 = arith.select %201, %179, %199 : vector<4x512xi1>, vector<4x512xbf16>
    %c6 = arith.constant 6 : index
    %c0_81 = arith.constant 0 : index
    %c0_82 = arith.constant 0 : index
    %203 = vector.load %arg2[%c6, %c0_81, %c0_82] : memref<9x8x4xbf16, #tpu.memory_space<vmem>>, vector<1x8x4xbf16>
    %204 = vector.shape_cast %203 : vector<1x8x4xbf16> to vector<8x4xbf16>
    %cst_83 = arith.constant dense<0.000000e+00> : vector<8x512xf32>
    %205 = tpu.matmul %204, %202, %cst_83 {dimension_numbers = #tpu.dot_dimension_numbers<[1], [0], [0], [1], [0, 0, 1, 1], [], []>} : vector<8x4xbf16>, vector<4x512xbf16>, vector<8x512xf32> -> vector<8x512xf32>
    %206 = arith.addf %178, %205 : vector<8x512xf32>
    %207 = vector.extract_strided_slice %2 {offsets = [0, 33], sizes = [4, 512], strides = [1, 1]} : vector<4x546xbf16> to vector<4x512xbf16>
    %c1_i32_84 = arith.constant 1 : i32
    %208 = vector.broadcast %c1_i32_84 : i32 to vector<1x512xi32>
    %209 = arith.addi %9, %208 : vector<1x512xi32>
    %c0_i32_85 = arith.constant 0 : i32
    %210 = vector.broadcast %c0_i32_85 : i32 to vector<1x512xi32>
    %211 = arith.cmpi sge, %209, %210 : vector<1x512xi32>
    %c1_i32_86 = arith.constant 1 : i32
    %212 = vector.broadcast %c1_i32_86 : i32 to vector<1x512xi32>
    %213 = arith.addi %9, %212 : vector<1x512xi32>
    %c16_i32_87 = arith.constant 16 : i32
    %214 = vector.broadcast %c16_i32_87 : i32 to vector<1x512xi32>
    %215 = arith.cmpi slt, %213, %214 : vector<1x512xi32>
    %216 = arith.andi %211, %215 : vector<1x512xi1>
    %c0_i32_88 = arith.constant 0 : i32
    %217 = vector.broadcast %c0_i32_88 : i32 to vector<1x512xi32>
    %218 = arith.addi %5, %217 : vector<1x512xi32>
    %c0_i32_89 = arith.constant 0 : i32
    %219 = vector.broadcast %c0_i32_89 : i32 to vector<1x512xi32>
    %220 = arith.cmpi sge, %218, %219 : vector<1x512xi32>
    %221 = arith.andi %216, %220 : vector<1x512xi1>
    %c0_i32_90 = arith.constant 0 : i32
    %222 = vector.broadcast %c0_i32_90 : i32 to vector<1x512xi32>
    %223 = arith.addi %5, %222 : vector<1x512xi32>
    %c16_i32_91 = arith.constant 16 : i32
    %224 = vector.broadcast %c16_i32_91 : i32 to vector<1x512xi32>
    %225 = arith.cmpi slt, %223, %224 : vector<1x512xi32>
    %226 = arith.andi %221, %225 : vector<1x512xi1>
    %cst_92 = arith.constant 0.000000e+00 : bf16
    %227 = vector.broadcast %cst_92 : bf16 to vector<4x512xbf16>
    %228 = vector.shape_cast %226 : vector<1x512xi1> to vector<1x512xi1>
    %229 = vector.broadcast %228 : vector<1x512xi1> to vector<4x512xi1>
    %230 = arith.select %229, %207, %227 : vector<4x512xi1>, vector<4x512xbf16>
    %c7 = arith.constant 7 : index
    %c0_93 = arith.constant 0 : index
    %c0_94 = arith.constant 0 : index
    %231 = vector.load %arg2[%c7, %c0_93, %c0_94] : memref<9x8x4xbf16, #tpu.memory_space<vmem>>, vector<1x8x4xbf16>
    %232 = vector.shape_cast %231 : vector<1x8x4xbf16> to vector<8x4xbf16>
    %cst_95 = arith.constant dense<0.000000e+00> : vector<8x512xf32>
    %233 = tpu.matmul %232, %230, %cst_95 {dimension_numbers = #tpu.dot_dimension_numbers<[1], [0], [0], [1], [0, 0, 1, 1], [], []>} : vector<8x4xbf16>, vector<4x512xbf16>, vector<8x512xf32> -> vector<8x512xf32>
    %234 = arith.addf %206, %233 : vector<8x512xf32>
    %235 = vector.extract_strided_slice %2 {offsets = [0, 34], sizes = [4, 512], strides = [1, 1]} : vector<4x546xbf16> to vector<4x512xbf16>
    %c1_i32_96 = arith.constant 1 : i32
    %236 = vector.broadcast %c1_i32_96 : i32 to vector<1x512xi32>
    %237 = arith.addi %9, %236 : vector<1x512xi32>
    %c0_i32_97 = arith.constant 0 : i32
    %238 = vector.broadcast %c0_i32_97 : i32 to vector<1x512xi32>
    %239 = arith.cmpi sge, %237, %238 : vector<1x512xi32>
    %c1_i32_98 = arith.constant 1 : i32
    %240 = vector.broadcast %c1_i32_98 : i32 to vector<1x512xi32>
    %241 = arith.addi %9, %240 : vector<1x512xi32>
    %c16_i32_99 = arith.constant 16 : i32
    %242 = vector.broadcast %c16_i32_99 : i32 to vector<1x512xi32>
    %243 = arith.cmpi slt, %241, %242 : vector<1x512xi32>
    %244 = arith.andi %239, %243 : vector<1x512xi1>
    %c1_i32_100 = arith.constant 1 : i32
    %245 = vector.broadcast %c1_i32_100 : i32 to vector<1x512xi32>
    %246 = arith.addi %5, %245 : vector<1x512xi32>
    %c0_i32_101 = arith.constant 0 : i32
    %247 = vector.broadcast %c0_i32_101 : i32 to vector<1x512xi32>
    %248 = arith.cmpi sge, %246, %247 : vector<1x512xi32>
    %249 = arith.andi %244, %248 : vector<1x512xi1>
    %c1_i32_102 = arith.constant 1 : i32
    %250 = vector.broadcast %c1_i32_102 : i32 to vector<1x512xi32>
    %251 = arith.addi %5, %250 : vector<1x512xi32>
    %c16_i32_103 = arith.constant 16 : i32
    %252 = vector.broadcast %c16_i32_103 : i32 to vector<1x512xi32>
    %253 = arith.cmpi slt, %251, %252 : vector<1x512xi32>
    %254 = arith.andi %249, %253 : vector<1x512xi1>
    %cst_104 = arith.constant 0.000000e+00 : bf16
    %255 = vector.broadcast %cst_104 : bf16 to vector<4x512xbf16>
    %256 = vector.shape_cast %254 : vector<1x512xi1> to vector<1x512xi1>
    %257 = vector.broadcast %256 : vector<1x512xi1> to vector<4x512xi1>
    %258 = arith.select %257, %235, %255 : vector<4x512xi1>, vector<4x512xbf16>
    %c8 = arith.constant 8 : index
    %c0_105 = arith.constant 0 : index
    %c0_106 = arith.constant 0 : index
    %259 = vector.load %arg2[%c8, %c0_105, %c0_106] : memref<9x8x4xbf16, #tpu.memory_space<vmem>>, vector<1x8x4xbf16>
    %260 = vector.shape_cast %259 : vector<1x8x4xbf16> to vector<8x4xbf16>
    %cst_107 = arith.constant dense<0.000000e+00> : vector<8x512xf32>
    %261 = tpu.matmul %260, %258, %cst_107 {dimension_numbers = #tpu.dot_dimension_numbers<[1], [0], [0], [1], [0, 0, 1, 1], [], []>} : vector<8x4xbf16>, vector<4x512xbf16>, vector<8x512xf32> -> vector<8x512xf32>
    %262 = arith.addf %234, %261 : vector<8x512xf32>
    %c0_108 = arith.constant 0 : index
    %c0_109 = arith.constant 0 : index
    %263 = vector.load %arg3[%c0_108, %c0_109] : memref<8x1xf32, #tpu.memory_space<vmem>>, vector<8x1xf32>
    %264 = vector.broadcast %263 : vector<8x1xf32> to vector<8x512xf32>
    %265 = arith.addf %262, %264 : vector<8x512xf32>
    %cst_110 = arith.constant 0.000000e+00 : f32
    %266 = vector.broadcast %cst_110 : f32 to vector<8x512xf32>
    %267 = arith.maximumf %265, %266 : vector<8x512xf32>
    %c0_111 = arith.constant 0 : index
    %c0_112 = arith.constant 0 : index
    %268 = vector.load %arg12[%c0_111, %c0_112] : memref<8x512xf32, #tpu.memory_space<vmem>>, vector<8x512xf32>
    tpu.vector_store %arg12[%c0_111, %c0_112], %267 {strides = array<i32>} : memref<8x512xf32, #tpu.memory_space<vmem>>, vector<8x512xf32>,
    %269 = arith.truncf %267 : vector<8x512xf32> to vector<8x512xbf16>
    %cst_113 = arith.constant 0.000000e+00 : bf16
    %270 = vector.broadcast %cst_113 : bf16 to vector<8x17xbf16>
    %271 = tpu.concatenate %270, %269, %270 in 1 : vector<8x17xbf16>, vector<8x512xbf16>, vector<8x17xbf16> -> vector<8x546xbf16>
    %272 = tpu.iota {dimensions = array<i32: 1>} : vector<1x512xi32>
    %c15_i32_114 = arith.constant 15 : i32
    %273 = vector.broadcast %c15_i32_114 : i32 to vector<1x512xi32>
    %274 = arith.andi %272, %273 : vector<1x512xi32>
    %c4_i32_115 = arith.constant 4 : i32
    %275 = vector.broadcast %c4_i32_115 : i32 to vector<1x512xi32>
    %276 = arith.shrsi %272, %275 : vector<1x512xi32>
    %c15_i32_116 = arith.constant 15 : i32
    %277 = vector.broadcast %c15_i32_116 : i32 to vector<1x512xi32>
    %278 = arith.andi %276, %277 : vector<1x512xi32>
    %cst_117 = arith.constant 0.000000e+00 : f32
    %279 = vector.broadcast %cst_117 : f32 to vector<16x512xf32>
    %280 = vector.extract_strided_slice %271 {offsets = [0, 0], sizes = [8, 512], strides = [1, 1]} : vector<8x546xbf16> to vector<8x512xbf16>
    %c-1_i32_118 = arith.constant -1 : i32
    %281 = vector.broadcast %c-1_i32_118 : i32 to vector<1x512xi32>
    %282 = arith.addi %278, %281 : vector<1x512xi32>
    %c0_i32_119 = arith.constant 0 : i32
    %283 = vector.broadcast %c0_i32_119 : i32 to vector<1x512xi32>
    %284 = arith.cmpi sge, %282, %283 : vector<1x512xi32>
    %c-1_i32_120 = arith.constant -1 : i32
    %285 = vector.broadcast %c-1_i32_120 : i32 to vector<1x512xi32>
    %286 = arith.addi %278, %285 : vector<1x512xi32>
    %c16_i32_121 = arith.constant 16 : i32
    %287 = vector.broadcast %c16_i32_121 : i32 to vector<1x512xi32>
    %288 = arith.cmpi slt, %286, %287 : vector<1x512xi32>
    %289 = arith.andi %284, %288 : vector<1x512xi1>
    %c-1_i32_122 = arith.constant -1 : i32
    %290 = vector.broadcast %c-1_i32_122 : i32 to vector<1x512xi32>
    %291 = arith.addi %274, %290 : vector<1x512xi32>
    %c0_i32_123 = arith.constant 0 : i32
    %292 = vector.broadcast %c0_i32_123 : i32 to vector<1x512xi32>
    %293 = arith.cmpi sge, %291, %292 : vector<1x512xi32>
    %294 = arith.andi %289, %293 : vector<1x512xi1>
    %c-1_i32_124 = arith.constant -1 : i32
    %295 = vector.broadcast %c-1_i32_124 : i32 to vector<1x512xi32>
    %296 = arith.addi %274, %295 : vector<1x512xi32>
    %c16_i32_125 = arith.constant 16 : i32
    %297 = vector.broadcast %c16_i32_125 : i32 to vector<1x512xi32>
    %298 = arith.cmpi slt, %296, %297 : vector<1x512xi32>
    %299 = arith.andi %294, %298 : vector<1x512xi1>
    %cst_126 = arith.constant 0.000000e+00 : bf16
    %300 = vector.broadcast %cst_126 : bf16 to vector<8x512xbf16>
    %301 = vector.shape_cast %299 : vector<1x512xi1> to vector<1x512xi1>
    %302 = vector.broadcast %301 : vector<1x512xi1> to vector<8x512xi1>
    %303 = arith.select %302, %280, %300 : vector<8x512xi1>, vector<8x512xbf16>
    %c0_127 = arith.constant 0 : index
    %c0_128 = arith.constant 0 : index
    %c0_129 = arith.constant 0 : index
    %304 = vector.load %arg4[%c0_127, %c0_128, %c0_129] : memref<9x16x8xbf16, #tpu.memory_space<vmem>>, vector<1x16x8xbf16>
    %305 = vector.shape_cast %304 : vector<1x16x8xbf16> to vector<16x8xbf16>
    %cst_130 = arith.constant dense<0.000000e+00> : vector<16x512xf32>
    %306 = tpu.matmul %305, %303, %cst_130 {dimension_numbers = #tpu.dot_dimension_numbers<[1], [0], [0], [1], [0, 0, 1, 1], [], []>} : vector<16x8xbf16>, vector<8x512xbf16>, vector<16x512xf32> -> vector<16x512xf32>
    %307 = arith.addf %279, %306 : vector<16x512xf32>
    %308 = vector.extract_strided_slice %271 {offsets = [0, 1], sizes = [8, 512], strides = [1, 1]} : vector<8x546xbf16> to vector<8x512xbf16>
    %c-1_i32_131 = arith.constant -1 : i32
    %309 = vector.broadcast %c-1_i32_131 : i32 to vector<1x512xi32>
    %310 = arith.addi %278, %309 : vector<1x512xi32>
    %c0_i32_132 = arith.constant 0 : i32
    %311 = vector.broadcast %c0_i32_132 : i32 to vector<1x512xi32>
    %312 = arith.cmpi sge, %310, %311 : vector<1x512xi32>
    %c-1_i32_133 = arith.constant -1 : i32
    %313 = vector.broadcast %c-1_i32_133 : i32 to vector<1x512xi32>
    %314 = arith.addi %278, %313 : vector<1x512xi32>
    %c16_i32_134 = arith.constant 16 : i32
    %315 = vector.broadcast %c16_i32_134 : i32 to vector<1x512xi32>
    %316 = arith.cmpi slt, %314, %315 : vector<1x512xi32>
    %317 = arith.andi %312, %316 : vector<1x512xi1>
    %c0_i32_135 = arith.constant 0 : i32
    %318 = vector.broadcast %c0_i32_135 : i32 to vector<1x512xi32>
    %319 = arith.addi %274, %318 : vector<1x512xi32>
    %c0_i32_136 = arith.constant 0 : i32
    %320 = vector.broadcast %c0_i32_136 : i32 to vector<1x512xi32>
    %321 = arith.cmpi sge, %319, %320 : vector<1x512xi32>
    %322 = arith.andi %317, %321 : vector<1x512xi1>
    %c0_i32_137 = arith.constant 0 : i32
    %323 = vector.broadcast %c0_i32_137 : i32 to vector<1x512xi32>
    %324 = arith.addi %274, %323 : vector<1x512xi32>
    %c16_i32_138 = arith.constant 16 : i32
    %325 = vector.broadcast %c16_i32_138 : i32 to vector<1x512xi32>
    %326 = arith.cmpi slt, %324, %325 : vector<1x512xi32>
    %327 = arith.andi %322, %326 : vector<1x512xi1>
    %cst_139 = arith.constant 0.000000e+00 : bf16
    %328 = vector.broadcast %cst_139 : bf16 to vector<8x512xbf16>
    %329 = vector.shape_cast %327 : vector<1x512xi1> to vector<1x512xi1>
    %330 = vector.broadcast %329 : vector<1x512xi1> to vector<8x512xi1>
    %331 = arith.select %330, %308, %328 : vector<8x512xi1>, vector<8x512xbf16>
    %c1_140 = arith.constant 1 : index
    %c0_141 = arith.constant 0 : index
    %c0_142 = arith.constant 0 : index
    %332 = vector.load %arg4[%c1_140, %c0_141, %c0_142] : memref<9x16x8xbf16, #tpu.memory_space<vmem>>, vector<1x16x8xbf16>
    %333 = vector.shape_cast %332 : vector<1x16x8xbf16> to vector<16x8xbf16>
    %cst_143 = arith.constant dense<0.000000e+00> : vector<16x512xf32>
    %334 = tpu.matmul %333, %331, %cst_143 {dimension_numbers = #tpu.dot_dimension_numbers<[1], [0], [0], [1], [0, 0, 1, 1], [], []>} : vector<16x8xbf16>, vector<8x512xbf16>, vector<16x512xf32> -> vector<16x512xf32>
    %335 = arith.addf %307, %334 : vector<16x512xf32>
    %336 = vector.extract_strided_slice %271 {offsets = [0, 2], sizes = [8, 512], strides = [1, 1]} : vector<8x546xbf16> to vector<8x512xbf16>
    %c-1_i32_144 = arith.constant -1 : i32
    %337 = vector.broadcast %c-1_i32_144 : i32 to vector<1x512xi32>
    %338 = arith.addi %278, %337 : vector<1x512xi32>
    %c0_i32_145 = arith.constant 0 : i32
    %339 = vector.broadcast %c0_i32_145 : i32 to vector<1x512xi32>
    %340 = arith.cmpi sge, %338, %339 : vector<1x512xi32>
    %c-1_i32_146 = arith.constant -1 : i32
    %341 = vector.broadcast %c-1_i32_146 : i32 to vector<1x512xi32>
    %342 = arith.addi %278, %341 : vector<1x512xi32>
    %c16_i32_147 = arith.constant 16 : i32
    %343 = vector.broadcast %c16_i32_147 : i32 to vector<1x512xi32>
    %344 = arith.cmpi slt, %342, %343 : vector<1x512xi32>
    %345 = arith.andi %340, %344 : vector<1x512xi1>
    %c1_i32_148 = arith.constant 1 : i32
    %346 = vector.broadcast %c1_i32_148 : i32 to vector<1x512xi32>
    %347 = arith.addi %274, %346 : vector<1x512xi32>
    %c0_i32_149 = arith.constant 0 : i32
    %348 = vector.broadcast %c0_i32_149 : i32 to vector<1x512xi32>
    %349 = arith.cmpi sge, %347, %348 : vector<1x512xi32>
    %350 = arith.andi %345, %349 : vector<1x512xi1>
    %c1_i32_150 = arith.constant 1 : i32
    %351 = vector.broadcast %c1_i32_150 : i32 to vector<1x512xi32>
    %352 = arith.addi %274, %351 : vector<1x512xi32>
    %c16_i32_151 = arith.constant 16 : i32
    %353 = vector.broadcast %c16_i32_151 : i32 to vector<1x512xi32>
    %354 = arith.cmpi slt, %352, %353 : vector<1x512xi32>
    %355 = arith.andi %350, %354 : vector<1x512xi1>
    %cst_152 = arith.constant 0.000000e+00 : bf16
    %356 = vector.broadcast %cst_152 : bf16 to vector<8x512xbf16>
    %357 = vector.shape_cast %355 : vector<1x512xi1> to vector<1x512xi1>
    %358 = vector.broadcast %357 : vector<1x512xi1> to vector<8x512xi1>
    %359 = arith.select %358, %336, %356 : vector<8x512xi1>, vector<8x512xbf16>
    %c2_153 = arith.constant 2 : index
    %c0_154 = arith.constant 0 : index
    %c0_155 = arith.constant 0 : index
    %360 = vector.load %arg4[%c2_153, %c0_154, %c0_155] : memref<9x16x8xbf16, #tpu.memory_space<vmem>>, vector<1x16x8xbf16>
    %361 = vector.shape_cast %360 : vector<1x16x8xbf16> to vector<16x8xbf16>
    %cst_156 = arith.constant dense<0.000000e+00> : vector<16x512xf32>
    %362 = tpu.matmul %361, %359, %cst_156 {dimension_numbers = #tpu.dot_dimension_numbers<[1], [0], [0], [1], [0, 0, 1, 1], [], []>} : vector<16x8xbf16>, vector<8x512xbf16>, vector<16x512xf32> -> vector<16x512xf32>
    %363 = arith.addf %335, %362 : vector<16x512xf32>
    %364 = vector.extract_strided_slice %271 {offsets = [0, 16], sizes = [8, 512], strides = [1, 1]} : vector<8x546xbf16> to vector<8x512xbf16>
    %c0_i32_157 = arith.constant 0 : i32
    %365 = vector.broadcast %c0_i32_157 : i32 to vector<1x512xi32>
    %366 = arith.addi %278, %365 : vector<1x512xi32>
    %c0_i32_158 = arith.constant 0 : i32
    %367 = vector.broadcast %c0_i32_158 : i32 to vector<1x512xi32>
    %368 = arith.cmpi sge, %366, %367 : vector<1x512xi32>
    %c0_i32_159 = arith.constant 0 : i32
    %369 = vector.broadcast %c0_i32_159 : i32 to vector<1x512xi32>
    %370 = arith.addi %278, %369 : vector<1x512xi32>
    %c16_i32_160 = arith.constant 16 : i32
    %371 = vector.broadcast %c16_i32_160 : i32 to vector<1x512xi32>
    %372 = arith.cmpi slt, %370, %371 : vector<1x512xi32>
    %373 = arith.andi %368, %372 : vector<1x512xi1>
    %c-1_i32_161 = arith.constant -1 : i32
    %374 = vector.broadcast %c-1_i32_161 : i32 to vector<1x512xi32>
    %375 = arith.addi %274, %374 : vector<1x512xi32>
    %c0_i32_162 = arith.constant 0 : i32
    %376 = vector.broadcast %c0_i32_162 : i32 to vector<1x512xi32>
    %377 = arith.cmpi sge, %375, %376 : vector<1x512xi32>
    %378 = arith.andi %373, %377 : vector<1x512xi1>
    %c-1_i32_163 = arith.constant -1 : i32
    %379 = vector.broadcast %c-1_i32_163 : i32 to vector<1x512xi32>
    %380 = arith.addi %274, %379 : vector<1x512xi32>
    %c16_i32_164 = arith.constant 16 : i32
    %381 = vector.broadcast %c16_i32_164 : i32 to vector<1x512xi32>
    %382 = arith.cmpi slt, %380, %381 : vector<1x512xi32>
    %383 = arith.andi %378, %382 : vector<1x512xi1>
    %cst_165 = arith.constant 0.000000e+00 : bf16
    %384 = vector.broadcast %cst_165 : bf16 to vector<8x512xbf16>
    %385 = vector.shape_cast %383 : vector<1x512xi1> to vector<1x512xi1>
    %386 = vector.broadcast %385 : vector<1x512xi1> to vector<8x512xi1>
    %387 = arith.select %386, %364, %384 : vector<8x512xi1>, vector<8x512xbf16>
    %c3_166 = arith.constant 3 : index
    %c0_167 = arith.constant 0 : index
    %c0_168 = arith.constant 0 : index
    %388 = vector.load %arg4[%c3_166, %c0_167, %c0_168] : memref<9x16x8xbf16, #tpu.memory_space<vmem>>, vector<1x16x8xbf16>
    %389 = vector.shape_cast %388 : vector<1x16x8xbf16> to vector<16x8xbf16>
    %cst_169 = arith.constant dense<0.000000e+00> : vector<16x512xf32>
    %390 = tpu.matmul %389, %387, %cst_169 {dimension_numbers = #tpu.dot_dimension_numbers<[1], [0], [0], [1], [0, 0, 1, 1], [], []>} : vector<16x8xbf16>, vector<8x512xbf16>, vector<16x512xf32> -> vector<16x512xf32>
    %391 = arith.addf %363, %390 : vector<16x512xf32>
    %392 = vector.extract_strided_slice %271 {offsets = [0, 17], sizes = [8, 512], strides = [1, 1]} : vector<8x546xbf16> to vector<8x512xbf16>
    %c0_i32_170 = arith.constant 0 : i32
    %393 = vector.broadcast %c0_i32_170 : i32 to vector<1x512xi32>
    %394 = arith.addi %278, %393 : vector<1x512xi32>
    %c0_i32_171 = arith.constant 0 : i32
    %395 = vector.broadcast %c0_i32_171 : i32 to vector<1x512xi32>
    %396 = arith.cmpi sge, %394, %395 : vector<1x512xi32>
    %c0_i32_172 = arith.constant 0 : i32
    %397 = vector.broadcast %c0_i32_172 : i32 to vector<1x512xi32>
    %398 = arith.addi %278, %397 : vector<1x512xi32>
    %c16_i32_173 = arith.constant 16 : i32
    %399 = vector.broadcast %c16_i32_173 : i32 to vector<1x512xi32>
    %400 = arith.cmpi slt, %398, %399 : vector<1x512xi32>
    %401 = arith.andi %396, %400 : vector<1x512xi1>
    %c0_i32_174 = arith.constant 0 : i32
    %402 = vector.broadcast %c0_i32_174 : i32 to vector<1x512xi32>
    %403 = arith.addi %274, %402 : vector<1x512xi32>
    %c0_i32_175 = arith.constant 0 : i32
    %404 = vector.broadcast %c0_i32_175 : i32 to vector<1x512xi32>
    %405 = arith.cmpi sge, %403, %404 : vector<1x512xi32>
    %406 = arith.andi %401, %405 : vector<1x512xi1>
    %c0_i32_176 = arith.constant 0 : i32
    %407 = vector.broadcast %c0_i32_176 : i32 to vector<1x512xi32>
    %408 = arith.addi %274, %407 : vector<1x512xi32>
    %c16_i32_177 = arith.constant 16 : i32
    %409 = vector.broadcast %c16_i32_177 : i32 to vector<1x512xi32>
    %410 = arith.cmpi slt, %408, %409 : vector<1x512xi32>
    %411 = arith.andi %406, %410 : vector<1x512xi1>
    %cst_178 = arith.constant 0.000000e+00 : bf16
    %412 = vector.broadcast %cst_178 : bf16 to vector<8x512xbf16>
    %413 = vector.shape_cast %411 : vector<1x512xi1> to vector<1x512xi1>
    %414 = vector.broadcast %413 : vector<1x512xi1> to vector<8x512xi1>
    %415 = arith.select %414, %392, %412 : vector<8x512xi1>, vector<8x512xbf16>
    %c4_179 = arith.constant 4 : index
    %c0_180 = arith.constant 0 : index
    %c0_181 = arith.constant 0 : index
    %416 = vector.load %arg4[%c4_179, %c0_180, %c0_181] : memref<9x16x8xbf16, #tpu.memory_space<vmem>>, vector<1x16x8xbf16>
    %417 = vector.shape_cast %416 : vector<1x16x8xbf16> to vector<16x8xbf16>
    %cst_182 = arith.constant dense<0.000000e+00> : vector<16x512xf32>
    %418 = tpu.matmul %417, %415, %cst_182 {dimension_numbers = #tpu.dot_dimension_numbers<[1], [0], [0], [1], [0, 0, 1, 1], [], []>} : vector<16x8xbf16>, vector<8x512xbf16>, vector<16x512xf32> -> vector<16x512xf32>
    %419 = arith.addf %391, %418 : vector<16x512xf32>
    %420 = vector.extract_strided_slice %271 {offsets = [0, 18], sizes = [8, 512], strides = [1, 1]} : vector<8x546xbf16> to vector<8x512xbf16>
    %c0_i32_183 = arith.constant 0 : i32
    %421 = vector.broadcast %c0_i32_183 : i32 to vector<1x512xi32>
    %422 = arith.addi %278, %421 : vector<1x512xi32>
    %c0_i32_184 = arith.constant 0 : i32
    %423 = vector.broadcast %c0_i32_184 : i32 to vector<1x512xi32>
    %424 = arith.cmpi sge, %422, %423 : vector<1x512xi32>
    %c0_i32_185 = arith.constant 0 : i32
    %425 = vector.broadcast %c0_i32_185 : i32 to vector<1x512xi32>
    %426 = arith.addi %278, %425 : vector<1x512xi32>
    %c16_i32_186 = arith.constant 16 : i32
    %427 = vector.broadcast %c16_i32_186 : i32 to vector<1x512xi32>
    %428 = arith.cmpi slt, %426, %427 : vector<1x512xi32>
    %429 = arith.andi %424, %428 : vector<1x512xi1>
    %c1_i32_187 = arith.constant 1 : i32
    %430 = vector.broadcast %c1_i32_187 : i32 to vector<1x512xi32>
    %431 = arith.addi %274, %430 : vector<1x512xi32>
    %c0_i32_188 = arith.constant 0 : i32
    %432 = vector.broadcast %c0_i32_188 : i32 to vector<1x512xi32>
    %433 = arith.cmpi sge, %431, %432 : vector<1x512xi32>
    %434 = arith.andi %429, %433 : vector<1x512xi1>
    %c1_i32_189 = arith.constant 1 : i32
    %435 = vector.broadcast %c1_i32_189 : i32 to vector<1x512xi32>
    %436 = arith.addi %274, %435 : vector<1x512xi32>
    %c16_i32_190 = arith.constant 16 : i32
    %437 = vector.broadcast %c16_i32_190 : i32 to vector<1x512xi32>
    %438 = arith.cmpi slt, %436, %437 : vector<1x512xi32>
    %439 = arith.andi %434, %438 : vector<1x512xi1>
    %cst_191 = arith.constant 0.000000e+00 : bf16
    %440 = vector.broadcast %cst_191 : bf16 to vector<8x512xbf16>
    %441 = vector.shape_cast %439 : vector<1x512xi1> to vector<1x512xi1>
    %442 = vector.broadcast %441 : vector<1x512xi1> to vector<8x512xi1>
    %443 = arith.select %442, %420, %440 : vector<8x512xi1>, vector<8x512xbf16>
    %c5_192 = arith.constant 5 : index
    %c0_193 = arith.constant 0 : index
    %c0_194 = arith.constant 0 : index
    %444 = vector.load %arg4[%c5_192, %c0_193, %c0_194] : memref<9x16x8xbf16, #tpu.memory_space<vmem>>, vector<1x16x8xbf16>
    %445 = vector.shape_cast %444 : vector<1x16x8xbf16> to vector<16x8xbf16>
    %cst_195 = arith.constant dense<0.000000e+00> : vector<16x512xf32>
    %446 = tpu.matmul %445, %443, %cst_195 {dimension_numbers = #tpu.dot_dimension_numbers<[1], [0], [0], [1], [0, 0, 1, 1], [], []>} : vector<16x8xbf16>, vector<8x512xbf16>, vector<16x512xf32> -> vector<16x512xf32>
    %447 = arith.addf %419, %446 : vector<16x512xf32>
    %448 = vector.extract_strided_slice %271 {offsets = [0, 32], sizes = [8, 512], strides = [1, 1]} : vector<8x546xbf16> to vector<8x512xbf16>
    %c1_i32_196 = arith.constant 1 : i32
    %449 = vector.broadcast %c1_i32_196 : i32 to vector<1x512xi32>
    %450 = arith.addi %278, %449 : vector<1x512xi32>
    %c0_i32_197 = arith.constant 0 : i32
    %451 = vector.broadcast %c0_i32_197 : i32 to vector<1x512xi32>
    %452 = arith.cmpi sge, %450, %451 : vector<1x512xi32>
    %c1_i32_198 = arith.constant 1 : i32
    %453 = vector.broadcast %c1_i32_198 : i32 to vector<1x512xi32>
    %454 = arith.addi %278, %453 : vector<1x512xi32>
    %c16_i32_199 = arith.constant 16 : i32
    %455 = vector.broadcast %c16_i32_199 : i32 to vector<1x512xi32>
    %456 = arith.cmpi slt, %454, %455 : vector<1x512xi32>
    %457 = arith.andi %452, %456 : vector<1x512xi1>
    %c-1_i32_200 = arith.constant -1 : i32
    %458 = vector.broadcast %c-1_i32_200 : i32 to vector<1x512xi32>
    %459 = arith.addi %274, %458 : vector<1x512xi32>
    %c0_i32_201 = arith.constant 0 : i32
    %460 = vector.broadcast %c0_i32_201 : i32 to vector<1x512xi32>
    %461 = arith.cmpi sge, %459, %460 : vector<1x512xi32>
    %462 = arith.andi %457, %461 : vector<1x512xi1>
    %c-1_i32_202 = arith.constant -1 : i32
    %463 = vector.broadcast %c-1_i32_202 : i32 to vector<1x512xi32>
    %464 = arith.addi %274, %463 : vector<1x512xi32>
    %c16_i32_203 = arith.constant 16 : i32
    %465 = vector.broadcast %c16_i32_203 : i32 to vector<1x512xi32>
    %466 = arith.cmpi slt, %464, %465 : vector<1x512xi32>
    %467 = arith.andi %462, %466 : vector<1x512xi1>
    %cst_204 = arith.constant 0.000000e+00 : bf16
    %468 = vector.broadcast %cst_204 : bf16 to vector<8x512xbf16>
    %469 = vector.shape_cast %467 : vector<1x512xi1> to vector<1x512xi1>
    %470 = vector.broadcast %469 : vector<1x512xi1> to vector<8x512xi1>
    %471 = arith.select %470, %448, %468 : vector<8x512xi1>, vector<8x512xbf16>
    %c6_205 = arith.constant 6 : index
    %c0_206 = arith.constant 0 : index
    %c0_207 = arith.constant 0 : index
    %472 = vector.load %arg4[%c6_205, %c0_206, %c0_207] : memref<9x16x8xbf16, #tpu.memory_space<vmem>>, vector<1x16x8xbf16>
    %473 = vector.shape_cast %472 : vector<1x16x8xbf16> to vector<16x8xbf16>
    %cst_208 = arith.constant dense<0.000000e+00> : vector<16x512xf32>
    %474 = tpu.matmul %473, %471, %cst_208 {dimension_numbers = #tpu.dot_dimension_numbers<[1], [0], [0], [1], [0, 0, 1, 1], [], []>} : vector<16x8xbf16>, vector<8x512xbf16>, vector<16x512xf32> -> vector<16x512xf32>
    %475 = arith.addf %447, %474 : vector<16x512xf32>
    %476 = vector.extract_strided_slice %271 {offsets = [0, 33], sizes = [8, 512], strides = [1, 1]} : vector<8x546xbf16> to vector<8x512xbf16>
    %c1_i32_209 = arith.constant 1 : i32
    %477 = vector.broadcast %c1_i32_209 : i32 to vector<1x512xi32>
    %478 = arith.addi %278, %477 : vector<1x512xi32>
    %c0_i32_210 = arith.constant 0 : i32
    %479 = vector.broadcast %c0_i32_210 : i32 to vector<1x512xi32>
    %480 = arith.cmpi sge, %478, %479 : vector<1x512xi32>
    %c1_i32_211 = arith.constant 1 : i32
    %481 = vector.broadcast %c1_i32_211 : i32 to vector<1x512xi32>
    %482 = arith.addi %278, %481 : vector<1x512xi32>
    %c16_i32_212 = arith.constant 16 : i32
    %483 = vector.broadcast %c16_i32_212 : i32 to vector<1x512xi32>
    %484 = arith.cmpi slt, %482, %483 : vector<1x512xi32>
    %485 = arith.andi %480, %484 : vector<1x512xi1>
    %c0_i32_213 = arith.constant 0 : i32
    %486 = vector.broadcast %c0_i32_213 : i32 to vector<1x512xi32>
    %487 = arith.addi %274, %486 : vector<1x512xi32>
    %c0_i32_214 = arith.constant 0 : i32
    %488 = vector.broadcast %c0_i32_214 : i32 to vector<1x512xi32>
    %489 = arith.cmpi sge, %487, %488 : vector<1x512xi32>
    %490 = arith.andi %485, %489 : vector<1x512xi1>
    %c0_i32_215 = arith.constant 0 : i32
    %491 = vector.broadcast %c0_i32_215 : i32 to vector<1x512xi32>
    %492 = arith.addi %274, %491 : vector<1x512xi32>
    %c16_i32_216 = arith.constant 16 : i32
    %493 = vector.broadcast %c16_i32_216 : i32 to vector<1x512xi32>
    %494 = arith.cmpi slt, %492, %493 : vector<1x512xi32>
    %495 = arith.andi %490, %494 : vector<1x512xi1>
    %cst_217 = arith.constant 0.000000e+00 : bf16
    %496 = vector.broadcast %cst_217 : bf16 to vector<8x512xbf16>
    %497 = vector.shape_cast %495 : vector<1x512xi1> to vector<1x512xi1>
    %498 = vector.broadcast %497 : vector<1x512xi1> to vector<8x512xi1>
    %499 = arith.select %498, %476, %496 : vector<8x512xi1>, vector<8x512xbf16>
    %c7_218 = arith.constant 7 : index
    %c0_219 = arith.constant 0 : index
    %c0_220 = arith.constant 0 : index
    %500 = vector.load %arg4[%c7_218, %c0_219, %c0_220] : memref<9x16x8xbf16, #tpu.memory_space<vmem>>, vector<1x16x8xbf16>
    %501 = vector.shape_cast %500 : vector<1x16x8xbf16> to vector<16x8xbf16>
    %cst_221 = arith.constant dense<0.000000e+00> : vector<16x512xf32>
    %502 = tpu.matmul %501, %499, %cst_221 {dimension_numbers = #tpu.dot_dimension_numbers<[1], [0], [0], [1], [0, 0, 1, 1], [], []>} : vector<16x8xbf16>, vector<8x512xbf16>, vector<16x512xf32> -> vector<16x512xf32>
    %503 = arith.addf %475, %502 : vector<16x512xf32>
    %504 = vector.extract_strided_slice %271 {offsets = [0, 34], sizes = [8, 512], strides = [1, 1]} : vector<8x546xbf16> to vector<8x512xbf16>
    %c1_i32_222 = arith.constant 1 : i32
    %505 = vector.broadcast %c1_i32_222 : i32 to vector<1x512xi32>
    %506 = arith.addi %278, %505 : vector<1x512xi32>
    %c0_i32_223 = arith.constant 0 : i32
    %507 = vector.broadcast %c0_i32_223 : i32 to vector<1x512xi32>
    %508 = arith.cmpi sge, %506, %507 : vector<1x512xi32>
    %c1_i32_224 = arith.constant 1 : i32
    %509 = vector.broadcast %c1_i32_224 : i32 to vector<1x512xi32>
    %510 = arith.addi %278, %509 : vector<1x512xi32>
    %c16_i32_225 = arith.constant 16 : i32
    %511 = vector.broadcast %c16_i32_225 : i32 to vector<1x512xi32>
    %512 = arith.cmpi slt, %510, %511 : vector<1x512xi32>
    %513 = arith.andi %508, %512 : vector<1x512xi1>
    %c1_i32_226 = arith.constant 1 : i32
    %514 = vector.broadcast %c1_i32_226 : i32 to vector<1x512xi32>
    %515 = arith.addi %274, %514 : vector<1x512xi32>
    %c0_i32_227 = arith.constant 0 : i32
    %516 = vector.broadcast %c0_i32_227 : i32 to vector<1x512xi32>
    %517 = arith.cmpi sge, %515, %516 : vector<1x512xi32>
    %518 = arith.andi %513, %517 : vector<1x512xi1>
    %c1_i32_228 = arith.constant 1 : i32
    %519 = vector.broadcast %c1_i32_228 : i32 to vector<1x512xi32>
    %520 = arith.addi %274, %519 : vector<1x512xi32>
    %c16_i32_229 = arith.constant 16 : i32
    %521 = vector.broadcast %c16_i32_229 : i32 to vector<1x512xi32>
    %522 = arith.cmpi slt, %520, %521 : vector<1x512xi32>
    %523 = arith.andi %518, %522 : vector<1x512xi1>
    %cst_230 = arith.constant 0.000000e+00 : bf16
    %524 = vector.broadcast %cst_230 : bf16 to vector<8x512xbf16>
    %525 = vector.shape_cast %523 : vector<1x512xi1> to vector<1x512xi1>
    %526 = vector.broadcast %525 : vector<1x512xi1> to vector<8x512xi1>
    %527 = arith.select %526, %504, %524 : vector<8x512xi1>, vector<8x512xbf16>
    %c8_231 = arith.constant 8 : index
    %c0_232 = arith.constant 0 : index
    %c0_233 = arith.constant 0 : index
    %528 = vector.load %arg4[%c8_231, %c0_232, %c0_233] : memref<9x16x8xbf16, #tpu.memory_space<vmem>>, vector<1x16x8xbf16>
    %529 = vector.shape_cast %528 : vector<1x16x8xbf16> to vector<16x8xbf16>
    %cst_234 = arith.constant dense<0.000000e+00> : vector<16x512xf32>
    %530 = tpu.matmul %529, %527, %cst_234 {dimension_numbers = #tpu.dot_dimension_numbers<[1], [0], [0], [1], [0, 0, 1, 1], [], []>} : vector<16x8xbf16>, vector<8x512xbf16>, vector<16x512xf32> -> vector<16x512xf32>
    %531 = arith.addf %503, %530 : vector<16x512xf32>
    %c0_235 = arith.constant 0 : index
    %c0_236 = arith.constant 0 : index
    %532 = vector.load %arg5[%c0_235, %c0_236] : memref<16x1xf32, #tpu.memory_space<vmem>>, vector<16x1xf32>
    %533 = vector.broadcast %532 : vector<16x1xf32> to vector<16x512xf32>
    %534 = arith.addf %531, %533 : vector<16x512xf32>
    %cst_237 = arith.constant 0.000000e+00 : f32
    %535 = vector.broadcast %cst_237 : f32 to vector<16x512xf32>
    %536 = arith.maximumf %534, %535 : vector<16x512xf32>
    %537 = tpu.iota {dimensions = array<i32: 0>} : vector<512x128xi32>
    %538 = tpu.iota {dimensions = array<i32: 1>} : vector<512x128xi32>
    %c6_i32 = arith.constant 6 : i32
    %539 = vector.broadcast %c6_i32 : i32 to vector<512x128xi32>
    %540 = arith.shrsi %538, %539 : vector<512x128xi32>
    %c64_i32 = arith.constant 64 : i32
    %541 = vector.broadcast %c64_i32 : i32 to vector<512x128xi32>
    %542 = arith.muli %540, %541 : vector<512x128xi32>
    %543 = arith.subi %538, %542 : vector<512x128xi32>
    %c3_i32 = arith.constant 3 : i32
    %544 = vector.broadcast %c3_i32 : i32 to vector<512x128xi32>
    %545 = arith.shrsi %543, %544 : vector<512x128xi32>
    %c8_i32 = arith.constant 8 : i32
    %546 = vector.broadcast %c8_i32 : i32 to vector<512x128xi32>
    %547 = arith.muli %545, %546 : vector<512x128xi32>
    %548 = arith.subi %543, %547 : vector<512x128xi32>
    %c256_i32 = arith.constant 256 : i32
    %549 = vector.broadcast %c256_i32 : i32 to vector<512x128xi32>
    %550 = arith.muli %540, %549 : vector<512x128xi32>
    %c2_i32 = arith.constant 2 : i32
    %551 = vector.broadcast %c2_i32 : i32 to vector<512x128xi32>
    %552 = arith.muli %551, %545 : vector<512x128xi32>
    %c16_i32_238 = arith.constant 16 : i32
    %553 = vector.broadcast %c16_i32_238 : i32 to vector<512x128xi32>
    %554 = arith.muli %552, %553 : vector<512x128xi32>
    %555 = arith.addi %550, %554 : vector<512x128xi32>
    %c2_i32_239 = arith.constant 2 : i32
    %556 = vector.broadcast %c2_i32_239 : i32 to vector<512x128xi32>
    %557 = arith.muli %556, %548 : vector<512x128xi32>
    %558 = arith.addi %555, %557 : vector<512x128xi32>
    %559 = arith.cmpi eq, %537, %558 : vector<512x128xi32>
    %560 = arith.extui %559 : vector<512x128xi1> to vector<512x128xi32>
    %561 = arith.sitofp %560 : vector<512x128xi32> to vector<512x128xf32>
    %cst_240 = arith.constant dense<0.000000e+00> : vector<16x128xf32>
    %562 = tpu.matmul %536, %561, %cst_240 {dimension_numbers = #tpu.dot_dimension_numbers<[1], [0], [0], [1], [0, 0, 1, 1], [], []>} : vector<16x512xf32>, vector<512x128xf32>, vector<16x128xf32> -> vector<16x128xf32>
    %c0_241 = arith.constant 0 : index
    %c0_242 = arith.constant 0 : index
    %563 = vector.load %arg13[%c0_241, %c0_242] : memref<16x128xf32, #tpu.memory_space<vmem>>, vector<16x128xf32>
    tpu.vector_store %arg13[%c0_241, %c0_242], %562 {strides = array<i32>} : memref<16x128xf32, #tpu.memory_space<vmem>>, vector<16x128xf32>,
    %564 = arith.truncf %562 : vector<16x128xf32> to vector<16x128xbf16>
    %cst_243 = arith.constant 0.000000e+00 : bf16
    %565 = vector.broadcast %cst_243 : bf16 to vector<16x9xbf16>
    %566 = tpu.concatenate %565, %564, %565 in 1 : vector<16x9xbf16>, vector<16x128xbf16>, vector<16x9xbf16> -> vector<16x146xbf16>
    %567 = tpu.iota {dimensions = array<i32: 1>} : vector<1x128xi32>
    %c7_i32 = arith.constant 7 : i32
    %568 = vector.broadcast %c7_i32 : i32 to vector<1x128xi32>
    %569 = arith.andi %567, %568 : vector<1x128xi32>
    %c3_i32_244 = arith.constant 3 : i32
    %570 = vector.broadcast %c3_i32_244 : i32 to vector<1x128xi32>
    %571 = arith.shrsi %567, %570 : vector<1x128xi32>
    %c7_i32_245 = arith.constant 7 : i32
    %572 = vector.broadcast %c7_i32_245 : i32 to vector<1x128xi32>
    %573 = arith.andi %571, %572 : vector<1x128xi32>
    %cst_246 = arith.constant 0.000000e+00 : f32
    %574 = vector.broadcast %cst_246 : f32 to vector<32x128xf32>
    %575 = vector.extract_strided_slice %566 {offsets = [0, 0], sizes = [16, 128], strides = [1, 1]} : vector<16x146xbf16> to vector<16x128xbf16>
    %c-1_i32_247 = arith.constant -1 : i32
    %576 = vector.broadcast %c-1_i32_247 : i32 to vector<1x128xi32>
    %577 = arith.addi %573, %576 : vector<1x128xi32>
    %c0_i32_248 = arith.constant 0 : i32
    %578 = vector.broadcast %c0_i32_248 : i32 to vector<1x128xi32>
    %579 = arith.cmpi sge, %577, %578 : vector<1x128xi32>
    %c-1_i32_249 = arith.constant -1 : i32
    %580 = vector.broadcast %c-1_i32_249 : i32 to vector<1x128xi32>
    %581 = arith.addi %573, %580 : vector<1x128xi32>
    %c8_i32_250 = arith.constant 8 : i32
    %582 = vector.broadcast %c8_i32_250 : i32 to vector<1x128xi32>
    %583 = arith.cmpi slt, %581, %582 : vector<1x128xi32>
    %584 = arith.andi %579, %583 : vector<1x128xi1>
    %c-1_i32_251 = arith.constant -1 : i32
    %585 = vector.broadcast %c-1_i32_251 : i32 to vector<1x128xi32>
    %586 = arith.addi %569, %585 : vector<1x128xi32>
    %c0_i32_252 = arith.constant 0 : i32
    %587 = vector.broadcast %c0_i32_252 : i32 to vector<1x128xi32>
    %588 = arith.cmpi sge, %586, %587 : vector<1x128xi32>
    %589 = arith.andi %584, %588 : vector<1x128xi1>
    %c-1_i32_253 = arith.constant -1 : i32
    %590 = vector.broadcast %c-1_i32_253 : i32 to vector<1x128xi32>
    %591 = arith.addi %569, %590 : vector<1x128xi32>
    %c8_i32_254 = arith.constant 8 : i32
    %592 = vector.broadcast %c8_i32_254 : i32 to vector<1x128xi32>
    %593 = arith.cmpi slt, %591, %592 : vector<1x128xi32>
    %594 = arith.andi %589, %593 : vector<1x128xi1>
    %cst_255 = arith.constant 0.000000e+00 : bf16
    %595 = vector.broadcast %cst_255 : bf16 to vector<16x128xbf16>
    %596 = vector.shape_cast %594 : vector<1x128xi1> to vector<1x128xi1>
    %597 = vector.broadcast %596 : vector<1x128xi1> to vector<16x128xi1>
    %598 = arith.select %597, %575, %595 : vector<16x128xi1>, vector<16x128xbf16>
    %c0_256 = arith.constant 0 : index
    %c0_257 = arith.constant 0 : index
    %c0_258 = arith.constant 0 : index
    %599 = vector.load %arg6[%c0_256, %c0_257, %c0_258] : memref<9x32x16xbf16, #tpu.memory_space<vmem>>, vector<1x32x16xbf16>
    %600 = vector.shape_cast %599 : vector<1x32x16xbf16> to vector<32x16xbf16>
    %cst_259 = arith.constant dense<0.000000e+00> : vector<32x128xf32>
    %601 = tpu.matmul %600, %598, %cst_259 {dimension_numbers = #tpu.dot_dimension_numbers<[1], [0], [0], [1], [0, 0, 1, 1], [], []>} : vector<32x16xbf16>, vector<16x128xbf16>, vector<32x128xf32> -> vector<32x128xf32>
    %602 = arith.addf %574, %601 : vector<32x128xf32>
    %603 = vector.extract_strided_slice %566 {offsets = [0, 1], sizes = [16, 128], strides = [1, 1]} : vector<16x146xbf16> to vector<16x128xbf16>
    %c-1_i32_260 = arith.constant -1 : i32
    %604 = vector.broadcast %c-1_i32_260 : i32 to vector<1x128xi32>
    %605 = arith.addi %573, %604 : vector<1x128xi32>
    %c0_i32_261 = arith.constant 0 : i32
    %606 = vector.broadcast %c0_i32_261 : i32 to vector<1x128xi32>
    %607 = arith.cmpi sge, %605, %606 : vector<1x128xi32>
    %c-1_i32_262 = arith.constant -1 : i32
    %608 = vector.broadcast %c-1_i32_262 : i32 to vector<1x128xi32>
    %609 = arith.addi %573, %608 : vector<1x128xi32>
    %c8_i32_263 = arith.constant 8 : i32
    %610 = vector.broadcast %c8_i32_263 : i32 to vector<1x128xi32>
    %611 = arith.cmpi slt, %609, %610 : vector<1x128xi32>
    %612 = arith.andi %607, %611 : vector<1x128xi1>
    %c0_i32_264 = arith.constant 0 : i32
    %613 = vector.broadcast %c0_i32_264 : i32 to vector<1x128xi32>
    %614 = arith.addi %569, %613 : vector<1x128xi32>
    %c0_i32_265 = arith.constant 0 : i32
    %615 = vector.broadcast %c0_i32_265 : i32 to vector<1x128xi32>
    %616 = arith.cmpi sge, %614, %615 : vector<1x128xi32>
    %617 = arith.andi %612, %616 : vector<1x128xi1>
    %c0_i32_266 = arith.constant 0 : i32
    %618 = vector.broadcast %c0_i32_266 : i32 to vector<1x128xi32>
    %619 = arith.addi %569, %618 : vector<1x128xi32>
    %c8_i32_267 = arith.constant 8 : i32
    %620 = vector.broadcast %c8_i32_267 : i32 to vector<1x128xi32>
    %621 = arith.cmpi slt, %619, %620 : vector<1x128xi32>
    %622 = arith.andi %617, %621 : vector<1x128xi1>
    %cst_268 = arith.constant 0.000000e+00 : bf16
    %623 = vector.broadcast %cst_268 : bf16 to vector<16x128xbf16>
    %624 = vector.shape_cast %622 : vector<1x128xi1> to vector<1x128xi1>
    %625 = vector.broadcast %624 : vector<1x128xi1> to vector<16x128xi1>
    %626 = arith.select %625, %603, %623 : vector<16x128xi1>, vector<16x128xbf16>
    %c1_269 = arith.constant 1 : index
    %c0_270 = arith.constant 0 : index
    %c0_271 = arith.constant 0 : index
    %627 = vector.load %arg6[%c1_269, %c0_270, %c0_271] : memref<9x32x16xbf16, #tpu.memory_space<vmem>>, vector<1x32x16xbf16>
    %628 = vector.shape_cast %627 : vector<1x32x16xbf16> to vector<32x16xbf16>
    %cst_272 = arith.constant dense<0.000000e+00> : vector<32x128xf32>
    %629 = tpu.matmul %628, %626, %cst_272 {dimension_numbers = #tpu.dot_dimension_numbers<[1], [0], [0], [1], [0, 0, 1, 1], [], []>} : vector<32x16xbf16>, vector<16x128xbf16>, vector<32x128xf32> -> vector<32x128xf32>
    %630 = arith.addf %602, %629 : vector<32x128xf32>
    %631 = vector.extract_strided_slice %566 {offsets = [0, 2], sizes = [16, 128], strides = [1, 1]} : vector<16x146xbf16> to vector<16x128xbf16>
    %c-1_i32_273 = arith.constant -1 : i32
    %632 = vector.broadcast %c-1_i32_273 : i32 to vector<1x128xi32>
    %633 = arith.addi %573, %632 : vector<1x128xi32>
    %c0_i32_274 = arith.constant 0 : i32
    %634 = vector.broadcast %c0_i32_274 : i32 to vector<1x128xi32>
    %635 = arith.cmpi sge, %633, %634 : vector<1x128xi32>
    %c-1_i32_275 = arith.constant -1 : i32
    %636 = vector.broadcast %c-1_i32_275 : i32 to vector<1x128xi32>
    %637 = arith.addi %573, %636 : vector<1x128xi32>
    %c8_i32_276 = arith.constant 8 : i32
    %638 = vector.broadcast %c8_i32_276 : i32 to vector<1x128xi32>
    %639 = arith.cmpi slt, %637, %638 : vector<1x128xi32>
    %640 = arith.andi %635, %639 : vector<1x128xi1>
    %c1_i32_277 = arith.constant 1 : i32
    %641 = vector.broadcast %c1_i32_277 : i32 to vector<1x128xi32>
    %642 = arith.addi %569, %641 : vector<1x128xi32>
    %c0_i32_278 = arith.constant 0 : i32
    %643 = vector.broadcast %c0_i32_278 : i32 to vector<1x128xi32>
    %644 = arith.cmpi sge, %642, %643 : vector<1x128xi32>
    %645 = arith.andi %640, %644 : vector<1x128xi1>
    %c1_i32_279 = arith.constant 1 : i32
    %646 = vector.broadcast %c1_i32_279 : i32 to vector<1x128xi32>
    %647 = arith.addi %569, %646 : vector<1x128xi32>
    %c8_i32_280 = arith.constant 8 : i32
    %648 = vector.broadcast %c8_i32_280 : i32 to vector<1x128xi32>
    %649 = arith.cmpi slt, %647, %648 : vector<1x128xi32>
    %650 = arith.andi %645, %649 : vector<1x128xi1>
    %cst_281 = arith.constant 0.000000e+00 : bf16
    %651 = vector.broadcast %cst_281 : bf16 to vector<16x128xbf16>
    %652 = vector.shape_cast %650 : vector<1x128xi1> to vector<1x128xi1>
    %653 = vector.broadcast %652 : vector<1x128xi1> to vector<16x128xi1>
    %654 = arith.select %653, %631, %651 : vector<16x128xi1>, vector<16x128xbf16>
    %c2_282 = arith.constant 2 : index
    %c0_283 = arith.constant 0 : index
    %c0_284 = arith.constant 0 : index
    %655 = vector.load %arg6[%c2_282, %c0_283, %c0_284] : memref<9x32x16xbf16, #tpu.memory_space<vmem>>, vector<1x32x16xbf16>
    %656 = vector.shape_cast %655 : vector<1x32x16xbf16> to vector<32x16xbf16>
    %cst_285 = arith.constant dense<0.000000e+00> : vector<32x128xf32>
    %657 = tpu.matmul %656, %654, %cst_285 {dimension_numbers = #tpu.dot_dimension_numbers<[1], [0], [0], [1], [0, 0, 1, 1], [], []>} : vector<32x16xbf16>, vector<16x128xbf16>, vector<32x128xf32> -> vector<32x128xf32>
    %658 = arith.addf %630, %657 : vector<32x128xf32>
    %659 = vector.extract_strided_slice %566 {offsets = [0, 8], sizes = [16, 128], strides = [1, 1]} : vector<16x146xbf16> to vector<16x128xbf16>
    %c0_i32_286 = arith.constant 0 : i32
    %660 = vector.broadcast %c0_i32_286 : i32 to vector<1x128xi32>
    %661 = arith.addi %573, %660 : vector<1x128xi32>
    %c0_i32_287 = arith.constant 0 : i32
    %662 = vector.broadcast %c0_i32_287 : i32 to vector<1x128xi32>
    %663 = arith.cmpi sge, %661, %662 : vector<1x128xi32>
    %c0_i32_288 = arith.constant 0 : i32
    %664 = vector.broadcast %c0_i32_288 : i32 to vector<1x128xi32>
    %665 = arith.addi %573, %664 : vector<1x128xi32>
    %c8_i32_289 = arith.constant 8 : i32
    %666 = vector.broadcast %c8_i32_289 : i32 to vector<1x128xi32>
    %667 = arith.cmpi slt, %665, %666 : vector<1x128xi32>
    %668 = arith.andi %663, %667 : vector<1x128xi1>
    %c-1_i32_290 = arith.constant -1 : i32
    %669 = vector.broadcast %c-1_i32_290 : i32 to vector<1x128xi32>
    %670 = arith.addi %569, %669 : vector<1x128xi32>
    %c0_i32_291 = arith.constant 0 : i32
    %671 = vector.broadcast %c0_i32_291 : i32 to vector<1x128xi32>
    %672 = arith.cmpi sge, %670, %671 : vector<1x128xi32>
    %673 = arith.andi %668, %672 : vector<1x128xi1>
    %c-1_i32_292 = arith.constant -1 : i32
    %674 = vector.broadcast %c-1_i32_292 : i32 to vector<1x128xi32>
    %675 = arith.addi %569, %674 : vector<1x128xi32>
    %c8_i32_293 = arith.constant 8 : i32
    %676 = vector.broadcast %c8_i32_293 : i32 to vector<1x128xi32>
    %677 = arith.cmpi slt, %675, %676 : vector<1x128xi32>
    %678 = arith.andi %673, %677 : vector<1x128xi1>
    %cst_294 = arith.constant 0.000000e+00 : bf16
    %679 = vector.broadcast %cst_294 : bf16 to vector<16x128xbf16>
    %680 = vector.shape_cast %678 : vector<1x128xi1> to vector<1x128xi1>
    %681 = vector.broadcast %680 : vector<1x128xi1> to vector<16x128xi1>
    %682 = arith.select %681, %659, %679 : vector<16x128xi1>, vector<16x128xbf16>
    %c3_295 = arith.constant 3 : index
    %c0_296 = arith.constant 0 : index
    %c0_297 = arith.constant 0 : index
    %683 = vector.load %arg6[%c3_295, %c0_296, %c0_297] : memref<9x32x16xbf16, #tpu.memory_space<vmem>>, vector<1x32x16xbf16>
    %684 = vector.shape_cast %683 : vector<1x32x16xbf16> to vector<32x16xbf16>
    %cst_298 = arith.constant dense<0.000000e+00> : vector<32x128xf32>
    %685 = tpu.matmul %684, %682, %cst_298 {dimension_numbers = #tpu.dot_dimension_numbers<[1], [0], [0], [1], [0, 0, 1, 1], [], []>} : vector<32x16xbf16>, vector<16x128xbf16>, vector<32x128xf32> -> vector<32x128xf32>
    %686 = arith.addf %658, %685 : vector<32x128xf32>
    %687 = vector.extract_strided_slice %566 {offsets = [0, 9], sizes = [16, 128], strides = [1, 1]} : vector<16x146xbf16> to vector<16x128xbf16>
    %c0_i32_299 = arith.constant 0 : i32
    %688 = vector.broadcast %c0_i32_299 : i32 to vector<1x128xi32>
    %689 = arith.addi %573, %688 : vector<1x128xi32>
    %c0_i32_300 = arith.constant 0 : i32
    %690 = vector.broadcast %c0_i32_300 : i32 to vector<1x128xi32>
    %691 = arith.cmpi sge, %689, %690 : vector<1x128xi32>
    %c0_i32_301 = arith.constant 0 : i32
    %692 = vector.broadcast %c0_i32_301 : i32 to vector<1x128xi32>
    %693 = arith.addi %573, %692 : vector<1x128xi32>
    %c8_i32_302 = arith.constant 8 : i32
    %694 = vector.broadcast %c8_i32_302 : i32 to vector<1x128xi32>
    %695 = arith.cmpi slt, %693, %694 : vector<1x128xi32>
    %696 = arith.andi %691, %695 : vector<1x128xi1>
    %c0_i32_303 = arith.constant 0 : i32
    %697 = vector.broadcast %c0_i32_303 : i32 to vector<1x128xi32>
    %698 = arith.addi %569, %697 : vector<1x128xi32>
    %c0_i32_304 = arith.constant 0 : i32
    %699 = vector.broadcast %c0_i32_304 : i32 to vector<1x128xi32>
    %700 = arith.cmpi sge, %698, %699 : vector<1x128xi32>
    %701 = arith.andi %696, %700 : vector<1x128xi1>
    %c0_i32_305 = arith.constant 0 : i32
    %702 = vector.broadcast %c0_i32_305 : i32 to vector<1x128xi32>
    %703 = arith.addi %569, %702 : vector<1x128xi32>
    %c8_i32_306 = arith.constant 8 : i32
    %704 = vector.broadcast %c8_i32_306 : i32 to vector<1x128xi32>
    %705 = arith.cmpi slt, %703, %704 : vector<1x128xi32>
    %706 = arith.andi %701, %705 : vector<1x128xi1>
    %cst_307 = arith.constant 0.000000e+00 : bf16
    %707 = vector.broadcast %cst_307 : bf16 to vector<16x128xbf16>
    %708 = vector.shape_cast %706 : vector<1x128xi1> to vector<1x128xi1>
    %709 = vector.broadcast %708 : vector<1x128xi1> to vector<16x128xi1>
    %710 = arith.select %709, %687, %707 : vector<16x128xi1>, vector<16x128xbf16>
    %c4_308 = arith.constant 4 : index
    %c0_309 = arith.constant 0 : index
    %c0_310 = arith.constant 0 : index
    %711 = vector.load %arg6[%c4_308, %c0_309, %c0_310] : memref<9x32x16xbf16, #tpu.memory_space<vmem>>, vector<1x32x16xbf16>
    %712 = vector.shape_cast %711 : vector<1x32x16xbf16> to vector<32x16xbf16>
    %cst_311 = arith.constant dense<0.000000e+00> : vector<32x128xf32>
    %713 = tpu.matmul %712, %710, %cst_311 {dimension_numbers = #tpu.dot_dimension_numbers<[1], [0], [0], [1], [0, 0, 1, 1], [], []>} : vector<32x16xbf16>, vector<16x128xbf16>, vector<32x128xf32> -> vector<32x128xf32>
    %714 = arith.addf %686, %713 : vector<32x128xf32>
    %715 = vector.extract_strided_slice %566 {offsets = [0, 10], sizes = [16, 128], strides = [1, 1]} : vector<16x146xbf16> to vector<16x128xbf16>
    %c0_i32_312 = arith.constant 0 : i32
    %716 = vector.broadcast %c0_i32_312 : i32 to vector<1x128xi32>
    %717 = arith.addi %573, %716 : vector<1x128xi32>
    %c0_i32_313 = arith.constant 0 : i32
    %718 = vector.broadcast %c0_i32_313 : i32 to vector<1x128xi32>
    %719 = arith.cmpi sge, %717, %718 : vector<1x128xi32>
    %c0_i32_314 = arith.constant 0 : i32
    %720 = vector.broadcast %c0_i32_314 : i32 to vector<1x128xi32>
    %721 = arith.addi %573, %720 : vector<1x128xi32>
    %c8_i32_315 = arith.constant 8 : i32
    %722 = vector.broadcast %c8_i32_315 : i32 to vector<1x128xi32>
    %723 = arith.cmpi slt, %721, %722 : vector<1x128xi32>
    %724 = arith.andi %719, %723 : vector<1x128xi1>
    %c1_i32_316 = arith.constant 1 : i32
    %725 = vector.broadcast %c1_i32_316 : i32 to vector<1x128xi32>
    %726 = arith.addi %569, %725 : vector<1x128xi32>
    %c0_i32_317 = arith.constant 0 : i32
    %727 = vector.broadcast %c0_i32_317 : i32 to vector<1x128xi32>
    %728 = arith.cmpi sge, %726, %727 : vector<1x128xi32>
    %729 = arith.andi %724, %728 : vector<1x128xi1>
    %c1_i32_318 = arith.constant 1 : i32
    %730 = vector.broadcast %c1_i32_318 : i32 to vector<1x128xi32>
    %731 = arith.addi %569, %730 : vector<1x128xi32>
    %c8_i32_319 = arith.constant 8 : i32
    %732 = vector.broadcast %c8_i32_319 : i32 to vector<1x128xi32>
    %733 = arith.cmpi slt, %731, %732 : vector<1x128xi32>
    %734 = arith.andi %729, %733 : vector<1x128xi1>
    %cst_320 = arith.constant 0.000000e+00 : bf16
    %735 = vector.broadcast %cst_320 : bf16 to vector<16x128xbf16>
    %736 = vector.shape_cast %734 : vector<1x128xi1> to vector<1x128xi1>
    %737 = vector.broadcast %736 : vector<1x128xi1> to vector<16x128xi1>
    %738 = arith.select %737, %715, %735 : vector<16x128xi1>, vector<16x128xbf16>
    %c5_321 = arith.constant 5 : index
    %c0_322 = arith.constant 0 : index
    %c0_323 = arith.constant 0 : index
    %739 = vector.load %arg6[%c5_321, %c0_322, %c0_323] : memref<9x32x16xbf16, #tpu.memory_space<vmem>>, vector<1x32x16xbf16>
    %740 = vector.shape_cast %739 : vector<1x32x16xbf16> to vector<32x16xbf16>
    %cst_324 = arith.constant dense<0.000000e+00> : vector<32x128xf32>
    %741 = tpu.matmul %740, %738, %cst_324 {dimension_numbers = #tpu.dot_dimension_numbers<[1], [0], [0], [1], [0, 0, 1, 1], [], []>} : vector<32x16xbf16>, vector<16x128xbf16>, vector<32x128xf32> -> vector<32x128xf32>
    %742 = arith.addf %714, %741 : vector<32x128xf32>
    %743 = vector.extract_strided_slice %566 {offsets = [0, 16], sizes = [16, 128], strides = [1, 1]} : vector<16x146xbf16> to vector<16x128xbf16>
    %c1_i32_325 = arith.constant 1 : i32
    %744 = vector.broadcast %c1_i32_325 : i32 to vector<1x128xi32>
    %745 = arith.addi %573, %744 : vector<1x128xi32>
    %c0_i32_326 = arith.constant 0 : i32
    %746 = vector.broadcast %c0_i32_326 : i32 to vector<1x128xi32>
    %747 = arith.cmpi sge, %745, %746 : vector<1x128xi32>
    %c1_i32_327 = arith.constant 1 : i32
    %748 = vector.broadcast %c1_i32_327 : i32 to vector<1x128xi32>
    %749 = arith.addi %573, %748 : vector<1x128xi32>
    %c8_i32_328 = arith.constant 8 : i32
    %750 = vector.broadcast %c8_i32_328 : i32 to vector<1x128xi32>
    %751 = arith.cmpi slt, %749, %750 : vector<1x128xi32>
    %752 = arith.andi %747, %751 : vector<1x128xi1>
    %c-1_i32_329 = arith.constant -1 : i32
    %753 = vector.broadcast %c-1_i32_329 : i32 to vector<1x128xi32>
    %754 = arith.addi %569, %753 : vector<1x128xi32>
    %c0_i32_330 = arith.constant 0 : i32
    %755 = vector.broadcast %c0_i32_330 : i32 to vector<1x128xi32>
    %756 = arith.cmpi sge, %754, %755 : vector<1x128xi32>
    %757 = arith.andi %752, %756 : vector<1x128xi1>
    %c-1_i32_331 = arith.constant -1 : i32
    %758 = vector.broadcast %c-1_i32_331 : i32 to vector<1x128xi32>
    %759 = arith.addi %569, %758 : vector<1x128xi32>
    %c8_i32_332 = arith.constant 8 : i32
    %760 = vector.broadcast %c8_i32_332 : i32 to vector<1x128xi32>
    %761 = arith.cmpi slt, %759, %760 : vector<1x128xi32>
    %762 = arith.andi %757, %761 : vector<1x128xi1>
    %cst_333 = arith.constant 0.000000e+00 : bf16
    %763 = vector.broadcast %cst_333 : bf16 to vector<16x128xbf16>
    %764 = vector.shape_cast %762 : vector<1x128xi1> to vector<1x128xi1>
    %765 = vector.broadcast %764 : vector<1x128xi1> to vector<16x128xi1>
    %766 = arith.select %765, %743, %763 : vector<16x128xi1>, vector<16x128xbf16>
    %c6_334 = arith.constant 6 : index
    %c0_335 = arith.constant 0 : index
    %c0_336 = arith.constant 0 : index
    %767 = vector.load %arg6[%c6_334, %c0_335, %c0_336] : memref<9x32x16xbf16, #tpu.memory_space<vmem>>, vector<1x32x16xbf16>
    %768 = vector.shape_cast %767 : vector<1x32x16xbf16> to vector<32x16xbf16>
    %cst_337 = arith.constant dense<0.000000e+00> : vector<32x128xf32>
    %769 = tpu.matmul %768, %766, %cst_337 {dimension_numbers = #tpu.dot_dimension_numbers<[1], [0], [0], [1], [0, 0, 1, 1], [], []>} : vector<32x16xbf16>, vector<16x128xbf16>, vector<32x128xf32> -> vector<32x128xf32>
    %770 = arith.addf %742, %769 : vector<32x128xf32>
    %771 = vector.extract_strided_slice %566 {offsets = [0, 17], sizes = [16, 128], strides = [1, 1]} : vector<16x146xbf16> to vector<16x128xbf16>
    %c1_i32_338 = arith.constant 1 : i32
    %772 = vector.broadcast %c1_i32_338 : i32 to vector<1x128xi32>
    %773 = arith.addi %573, %772 : vector<1x128xi32>
    %c0_i32_339 = arith.constant 0 : i32
    %774 = vector.broadcast %c0_i32_339 : i32 to vector<1x128xi32>
    %775 = arith.cmpi sge, %773, %774 : vector<1x128xi32>
    %c1_i32_340 = arith.constant 1 : i32
    %776 = vector.broadcast %c1_i32_340 : i32 to vector<1x128xi32>
    %777 = arith.addi %573, %776 : vector<1x128xi32>
    %c8_i32_341 = arith.constant 8 : i32
    %778 = vector.broadcast %c8_i32_341 : i32 to vector<1x128xi32>
    %779 = arith.cmpi slt, %777, %778 : vector<1x128xi32>
    %780 = arith.andi %775, %779 : vector<1x128xi1>
    %c0_i32_342 = arith.constant 0 : i32
    %781 = vector.broadcast %c0_i32_342 : i32 to vector<1x128xi32>
    %782 = arith.addi %569, %781 : vector<1x128xi32>
    %c0_i32_343 = arith.constant 0 : i32
    %783 = vector.broadcast %c0_i32_343 : i32 to vector<1x128xi32>
    %784 = arith.cmpi sge, %782, %783 : vector<1x128xi32>
    %785 = arith.andi %780, %784 : vector<1x128xi1>
    %c0_i32_344 = arith.constant 0 : i32
    %786 = vector.broadcast %c0_i32_344 : i32 to vector<1x128xi32>
    %787 = arith.addi %569, %786 : vector<1x128xi32>
    %c8_i32_345 = arith.constant 8 : i32
    %788 = vector.broadcast %c8_i32_345 : i32 to vector<1x128xi32>
    %789 = arith.cmpi slt, %787, %788 : vector<1x128xi32>
    %790 = arith.andi %785, %789 : vector<1x128xi1>
    %cst_346 = arith.constant 0.000000e+00 : bf16
    %791 = vector.broadcast %cst_346 : bf16 to vector<16x128xbf16>
    %792 = vector.shape_cast %790 : vector<1x128xi1> to vector<1x128xi1>
    %793 = vector.broadcast %792 : vector<1x128xi1> to vector<16x128xi1>
    %794 = arith.select %793, %771, %791 : vector<16x128xi1>, vector<16x128xbf16>
    %c7_347 = arith.constant 7 : index
    %c0_348 = arith.constant 0 : index
    %c0_349 = arith.constant 0 : index
    %795 = vector.load %arg6[%c7_347, %c0_348, %c0_349] : memref<9x32x16xbf16, #tpu.memory_space<vmem>>, vector<1x32x16xbf16>
    %796 = vector.shape_cast %795 : vector<1x32x16xbf16> to vector<32x16xbf16>
    %cst_350 = arith.constant dense<0.000000e+00> : vector<32x128xf32>
    %797 = tpu.matmul %796, %794, %cst_350 {dimension_numbers = #tpu.dot_dimension_numbers<[1], [0], [0], [1], [0, 0, 1, 1], [], []>} : vector<32x16xbf16>, vector<16x128xbf16>, vector<32x128xf32> -> vector<32x128xf32>
    %798 = arith.addf %770, %797 : vector<32x128xf32>
    %799 = vector.extract_strided_slice %566 {offsets = [0, 18], sizes = [16, 128], strides = [1, 1]} : vector<16x146xbf16> to vector<16x128xbf16>
    %c1_i32_351 = arith.constant 1 : i32
    %800 = vector.broadcast %c1_i32_351 : i32 to vector<1x128xi32>
    %801 = arith.addi %573, %800 : vector<1x128xi32>
    %c0_i32_352 = arith.constant 0 : i32
    %802 = vector.broadcast %c0_i32_352 : i32 to vector<1x128xi32>
    %803 = arith.cmpi sge, %801, %802 : vector<1x128xi32>
    %c1_i32_353 = arith.constant 1 : i32
    %804 = vector.broadcast %c1_i32_353 : i32 to vector<1x128xi32>
    %805 = arith.addi %573, %804 : vector<1x128xi32>
    %c8_i32_354 = arith.constant 8 : i32
    %806 = vector.broadcast %c8_i32_354 : i32 to vector<1x128xi32>
    %807 = arith.cmpi slt, %805, %806 : vector<1x128xi32>
    %808 = arith.andi %803, %807 : vector<1x128xi1>
    %c1_i32_355 = arith.constant 1 : i32
    %809 = vector.broadcast %c1_i32_355 : i32 to vector<1x128xi32>
    %810 = arith.addi %569, %809 : vector<1x128xi32>
    %c0_i32_356 = arith.constant 0 : i32
    %811 = vector.broadcast %c0_i32_356 : i32 to vector<1x128xi32>
    %812 = arith.cmpi sge, %810, %811 : vector<1x128xi32>
    %813 = arith.andi %808, %812 : vector<1x128xi1>
    %c1_i32_357 = arith.constant 1 : i32
    %814 = vector.broadcast %c1_i32_357 : i32 to vector<1x128xi32>
    %815 = arith.addi %569, %814 : vector<1x128xi32>
    %c8_i32_358 = arith.constant 8 : i32
    %816 = vector.broadcast %c8_i32_358 : i32 to vector<1x128xi32>
    %817 = arith.cmpi slt, %815, %816 : vector<1x128xi32>
    %818 = arith.andi %813, %817 : vector<1x128xi1>
    %cst_359 = arith.constant 0.000000e+00 : bf16
    %819 = vector.broadcast %cst_359 : bf16 to vector<16x128xbf16>
    %820 = vector.shape_cast %818 : vector<1x128xi1> to vector<1x128xi1>
    %821 = vector.broadcast %820 : vector<1x128xi1> to vector<16x128xi1>
    %822 = arith.select %821, %799, %819 : vector<16x128xi1>, vector<16x128xbf16>
    %c8_360 = arith.constant 8 : index
    %c0_361 = arith.constant 0 : index
    %c0_362 = arith.constant 0 : index
    %823 = vector.load %arg6[%c8_360, %c0_361, %c0_362] : memref<9x32x16xbf16, #tpu.memory_space<vmem>>, vector<1x32x16xbf16>
    %824 = vector.shape_cast %823 : vector<1x32x16xbf16> to vector<32x16xbf16>
    %cst_363 = arith.constant dense<0.000000e+00> : vector<32x128xf32>
    %825 = tpu.matmul %824, %822, %cst_363 {dimension_numbers = #tpu.dot_dimension_numbers<[1], [0], [0], [1], [0, 0, 1, 1], [], []>} : vector<32x16xbf16>, vector<16x128xbf16>, vector<32x128xf32> -> vector<32x128xf32>
    %826 = arith.addf %798, %825 : vector<32x128xf32>
    %c0_364 = arith.constant 0 : index
    %c0_365 = arith.constant 0 : index
    %827 = vector.load %arg7[%c0_364, %c0_365] : memref<32x1xf32, #tpu.memory_space<vmem>>, vector<32x1xf32>
    %828 = vector.broadcast %827 : vector<32x1xf32> to vector<32x128xf32>
    %829 = arith.addf %826, %828 : vector<32x128xf32>
    %cst_366 = arith.constant 0.000000e+00 : f32
    %830 = vector.broadcast %cst_366 : f32 to vector<32x128xf32>
    %831 = arith.maximumf %829, %830 : vector<32x128xf32>
    %832 = tpu.iota {dimensions = array<i32: 0>} : vector<128x32xi32>
    %833 = tpu.iota {dimensions = array<i32: 1>} : vector<128x32xi32>
    %c4_i32_367 = arith.constant 4 : i32
    %834 = vector.broadcast %c4_i32_367 : i32 to vector<128x32xi32>
    %835 = arith.shrsi %833, %834 : vector<128x32xi32>
    %c16_i32_368 = arith.constant 16 : i32
    %836 = vector.broadcast %c16_i32_368 : i32 to vector<128x32xi32>
    %837 = arith.muli %835, %836 : vector<128x32xi32>
    %838 = arith.subi %833, %837 : vector<128x32xi32>
    %c2_i32_369 = arith.constant 2 : i32
    %839 = vector.broadcast %c2_i32_369 : i32 to vector<128x32xi32>
    %840 = arith.shrsi %838, %839 : vector<128x32xi32>
    %c4_i32_370 = arith.constant 4 : i32
    %841 = vector.broadcast %c4_i32_370 : i32 to vector<128x32xi32>
    %842 = arith.muli %840, %841 : vector<128x32xi32>
    %843 = arith.subi %838, %842 : vector<128x32xi32>
    %c64_i32_371 = arith.constant 64 : i32
    %844 = vector.broadcast %c64_i32_371 : i32 to vector<128x32xi32>
    %845 = arith.muli %835, %844 : vector<128x32xi32>
    %c2_i32_372 = arith.constant 2 : i32
    %846 = vector.broadcast %c2_i32_372 : i32 to vector<128x32xi32>
    %847 = arith.muli %846, %840 : vector<128x32xi32>
    %c8_i32_373 = arith.constant 8 : i32
    %848 = vector.broadcast %c8_i32_373 : i32 to vector<128x32xi32>
    %849 = arith.muli %847, %848 : vector<128x32xi32>
    %850 = arith.addi %845, %849 : vector<128x32xi32>
    %c2_i32_374 = arith.constant 2 : i32
    %851 = vector.broadcast %c2_i32_374 : i32 to vector<128x32xi32>
    %852 = arith.muli %851, %843 : vector<128x32xi32>
    %853 = arith.addi %850, %852 : vector<128x32xi32>
    %854 = arith.cmpi eq, %832, %853 : vector<128x32xi32>
    %855 = arith.extui %854 : vector<128x32xi1> to vector<128x32xi32>
    %856 = arith.sitofp %855 : vector<128x32xi32> to vector<128x32xf32>
    %cst_375 = arith.constant dense<0.000000e+00> : vector<32x32xf32>
    %857 = tpu.matmul %831, %856, %cst_375 {dimension_numbers = #tpu.dot_dimension_numbers<[1], [0], [0], [1], [0, 0, 1, 1], [], []>} : vector<32x128xf32>, vector<128x32xf32>, vector<32x32xf32> -> vector<32x32xf32>
    %c0_376 = arith.constant 0 : index
    %c0_377 = arith.constant 0 : index
    %858 = vector.load %arg14[%c0_376, %c0_377] : memref<32x32xf32, #tpu.memory_space<vmem>>, vector<32x32xf32>
    tpu.vector_store %arg14[%c0_376, %c0_377], %857 {strides = array<i32>} : memref<32x32xf32, #tpu.memory_space<vmem>>, vector<32x32xf32>,
    %859 = tpu.iota {dimensions = array<i32: 0>} : vector<32x2xi32>
    %860 = tpu.iota {dimensions = array<i32: 1>} : vector<32x2xi32>
    %c4_i32_378 = arith.constant 4 : i32
    %861 = vector.broadcast %c4_i32_378 : i32 to vector<32x2xi32>
    %862 = arith.shrsi %859, %861 : vector<32x2xi32>
    %863 = arith.cmpi eq, %862, %860 : vector<32x2xi32>
    %cst_379 = arith.constant 6.250000e-02 : f32
    %cst_380 = arith.constant 0.000000e+00 : f32
    %864 = vector.broadcast %cst_379 : f32 to vector<32x2xf32>
    %865 = vector.broadcast %cst_380 : f32 to vector<32x2xf32>
    %866 = arith.select %863, %864, %865 : vector<32x2xi1>, vector<32x2xf32>
    %cst_381 = arith.constant dense<0.000000e+00> : vector<32x2xf32>
    %867 = tpu.matmul %857, %866, %cst_381 {dimension_numbers = #tpu.dot_dimension_numbers<[1], [0], [0], [1], [0, 0, 1, 1], [], []>} : vector<32x32xf32>, vector<32x2xf32>, vector<32x2xf32> -> vector<32x2xf32>
    %c0_382 = arith.constant 0 : index
    %c0_383 = arith.constant 0 : index
    %868 = vector.load %arg8[%c0_382, %c0_383] : memref<16x32xf32, #tpu.memory_space<vmem>>, vector<16x32xf32>
    %cst_384 = arith.constant dense<0.000000e+00> : vector<16x2xf32>
    %869 = tpu.matmul %868, %867, %cst_384 {dimension_numbers = #tpu.dot_dimension_numbers<[1], [0], [0], [1], [0, 0, 1, 1], [], []>} : vector<16x32xf32>, vector<32x2xf32>, vector<16x2xf32> -> vector<16x2xf32>
    %c0_385 = arith.constant 0 : index
    %c0_386 = arith.constant 0 : index
    %870 = vector.load %arg9[%c0_385, %c0_386] : memref<16x1xf32, #tpu.memory_space<vmem>>, vector<16x1xf32>
    %871 = vector.broadcast %870 : vector<16x1xf32> to vector<16x2xf32>
    %872 = arith.addf %869, %871 : vector<16x2xf32>
    %c0_387 = arith.constant 0 : index
    %c0_388 = arith.constant 0 : index
    %873 = vector.load %arg15[%c0_387, %c0_388] : memref<16x2xf32, #tpu.memory_space<vmem>>, vector<16x2xf32>
    tpu.vector_store %arg15[%c0_387, %c0_388], %872 {strides = array<i32>} : memref<16x2xf32, #tpu.memory_space<vmem>>, vector<16x2xf32>,
    %c0_389 = arith.constant 0 : index
    %c0_390 = arith.constant 0 : index
    %874 = vector.load %arg10[%c0_389, %c0_390] : memref<16x32xf32, #tpu.memory_space<vmem>>, vector<16x32xf32>
    %cst_391 = arith.constant dense<0.000000e+00> : vector<16x2xf32>
    %875 = tpu.matmul %874, %867, %cst_391 {dimension_numbers = #tpu.dot_dimension_numbers<[1], [0], [0], [1], [0, 0, 1, 1], [], []>} : vector<16x32xf32>, vector<32x2xf32>, vector<16x2xf32> -> vector<16x2xf32>
    %c0_392 = arith.constant 0 : index
    %c0_393 = arith.constant 0 : index
    %876 = vector.load %arg11[%c0_392, %c0_393] : memref<16x1xf32, #tpu.memory_space<vmem>>, vector<16x1xf32>
    %877 = vector.broadcast %876 : vector<16x1xf32> to vector<16x2xf32>
    %878 = arith.addf %875, %877 : vector<16x2xf32>
    %cst_394 = arith.constant 5.000000e-01 : f32
    %879 = vector.broadcast %cst_394 : f32 to vector<16x2xf32>
    %880 = arith.mulf %879, %878 : vector<16x2xf32>
    %881 = math.exp %880 : vector<16x2xf32>
    %c0_395 = arith.constant 0 : index
    %c0_396 = arith.constant 0 : index
    %882 = vector.load %arg16[%c0_395, %c0_396] : memref<16x2xf32, #tpu.memory_space<vmem>>, vector<16x2xf32>
    tpu.vector_store %arg16[%c0_395, %c0_396], %881 {strides = array<i32>} : memref<16x2xf32, #tpu.memory_space<vmem>>, vector<16x2xf32>,
    return
  }
  func.func @transform_0(%arg0: i32) -> (i32, i32) {
    %c0_i32 = arith.constant 0 : i32
    %c0_i32_0 = arith.constant 0 : i32
    %c0_i32_1 = arith.constant 0 : i32
    return %c0_i32, %c0_i32_0 : i32, i32
  }
  func.func @transform_1(%arg0: i32) -> (i32, i32, i32) {
    %c0_i32 = arith.constant 0 : i32
    %c0_i32_0 = arith.constant 0 : i32
    %c0_i32_1 = arith.constant 0 : i32
    %c0_i32_2 = arith.constant 0 : i32
    return %c0_i32, %c0_i32_0, %c0_i32_1 : i32, i32, i32
  }
  func.func @transform_2(%arg0: i32) -> (i32, i32) {
    %c0_i32 = arith.constant 0 : i32
    %c0_i32_0 = arith.constant 0 : i32
    %c0_i32_1 = arith.constant 0 : i32
    return %c0_i32, %c0_i32_0 : i32, i32
  }
  func.func @transform_3(%arg0: i32) -> (i32, i32, i32) {
    %c0_i32 = arith.constant 0 : i32
    %c0_i32_0 = arith.constant 0 : i32
    %c0_i32_1 = arith.constant 0 : i32
    %c0_i32_2 = arith.constant 0 : i32
    return %c0_i32, %c0_i32_0, %c0_i32_1 : i32, i32, i32
  }
  func.func @transform_4(%arg0: i32) -> (i32, i32) {
    %c0_i32 = arith.constant 0 : i32
    %c0_i32_0 = arith.constant 0 : i32
    %c0_i32_1 = arith.constant 0 : i32
    return %c0_i32, %c0_i32_0 : i32, i32
  }
  func.func @transform_5(%arg0: i32) -> (i32, i32, i32) {
    %c0_i32 = arith.constant 0 : i32
    %c0_i32_0 = arith.constant 0 : i32
    %c0_i32_1 = arith.constant 0 : i32
    %c0_i32_2 = arith.constant 0 : i32
    return %c0_i32, %c0_i32_0, %c0_i32_1 : i32, i32, i32
  }
  func.func @transform_6(%arg0: i32) -> (i32, i32) {
    %c0_i32 = arith.constant 0 : i32
    %c0_i32_0 = arith.constant 0 : i32
    %c0_i32_1 = arith.constant 0 : i32
    return %c0_i32, %c0_i32_0 : i32, i32
  }
  func.func @transform_7(%arg0: i32) -> (i32, i32) {
    %c0_i32 = arith.constant 0 : i32
    %c0_i32_0 = arith.constant 0 : i32
    %c0_i32_1 = arith.constant 0 : i32
    return %c0_i32, %c0_i32_0 : i32, i32
  }
  func.func @transform_8(%arg0: i32) -> (i32, i32) {
    %c0_i32 = arith.constant 0 : i32
    %c0_i32_0 = arith.constant 0 : i32
    %c0_i32_1 = arith.constant 0 : i32
    return %c0_i32, %c0_i32_0 : i32, i32
  }
  func.func @transform_9(%arg0: i32) -> (i32, i32) {
    %c0_i32 = arith.constant 0 : i32
    %c0_i32_0 = arith.constant 0 : i32
    %c0_i32_1 = arith.constant 0 : i32
    return %c0_i32, %c0_i32_0 : i32, i32
  }
  func.func @transform_10(%arg0: i32) -> (i32, i32) {
    %c0_i32 = arith.constant 0 : i32
    %c0_i32_0 = arith.constant 0 : i32
    %c0_i32_1 = arith.constant 0 : i32
    return %c0_i32, %c0_i32_0 : i32, i32
  }
  func.func @transform_11(%arg0: i32) -> (i32, i32) {
    %c0_i32 = arith.constant 0 : i32
    %c0_i32_0 = arith.constant 0 : i32
    %c0_i32_1 = arith.constant 0 : i32
    return %c0_i32, %c0_i32_0 : i32, i32
  }
  func.func @transform_12(%arg0: i32) -> (i32, i32) {
    %c0_i32 = arith.constant 0 : i32
    %c0_i32_0 = arith.constant 0 : i32
    %c0_i32_1 = arith.constant 0 : i32
    return %c0_i32, %c0_i32_0 : i32, i32
  }
  func.func @transform_13(%arg0: i32) -> (i32, i32) {
    %c0_i32 = arith.constant 0 : i32
    %c0_i32_0 = arith.constant 0 : i32
    %c0_i32_1 = arith.constant 0 : i32
    return %c0_i32, %c0_i32_0 : i32, i32
  }
  func.func @transform_14(%arg0: i32) -> (i32, i32) {
    %c0_i32 = arith.constant 0 : i32
    %c0_i32_0 = arith.constant 0 : i32
    %c0_i32_1 = arith.constant 0 : i32
    return %c0_i32, %c0_i32_0 : i32, i32
  }
  func.func @transform_15(%arg0: i32) -> (i32, i32) {
    %c0_i32 = arith.constant 0 : i32
    %c0_i32_0 = arith.constant 0 : i32
    %c0_i32_1 = arith.constant 0 : i32
    return %c0_i32, %c0_i32_0 : i32, i32
  }
}

</mosaic_0001>

<bundles_post_ra>
// kernel: gaussian_encoder_forward.1
= control target key start
LH: loop header
LB: loop body
LE: loop exit
PB: predicated region body
PF: predicated region fallthrough
CT: control target
= control target key end

     0   :  { %v52_v0 = vlaneseq  ;;  %v5574_v1 = vmov 1983009808   ;;  %v7589_v3 = vmov 0   ;;  %s5577_s20 = smov 1   ;;  %v7675_v41 = vmov 0  ;;  %s7641_s21 = smov 2   ;;  %s7533_s0 = inlined_call_operand.vmem [shape: bf16[4,512], index: 0, kind: input, shape index: {}]   ;;  %s7534_s2 = inlined_call_operand.vmem [shape: f32[8,1], index: 2, kind: input, shape index: {}]   ;;  %s7535_s1 = inlined_call_operand.vmem [shape: bf16[9,8,4], index: 1, kind: input, shape index: {}]   ;;  %s7536_s11 = inlined_call_operand.vmem [shape: f32[8,512], index: 11, kind: output, shape index: {0}]   ;;  %s7537_s3 = inlined_call_operand.vmem [shape: bf16[9,16,8], index: 3, kind: input, shape index: {}]   ;;  %s7538_s4 = inlined_call_operand.vmem [shape: f32[16,1], index: 4, kind: input, shape index: {}]   ;;  %s7539_s12 = inlined_call_operand.vmem [shape: f32[16,128], index: 12, kind: output, shape index: {1}]   ;;  %s7540_s5 = inlined_call_operand.vmem [shape: bf16[9,32,16], index: 5, kind: input, shape index: {}]   ;;  %s7541_s6 = inlined_call_operand.vmem [shape: f32[32,1], index: 6, kind: input, shape index: {}]   ;;  %s7542_s10 = inlined_call_operand.vmem [shape: f32[16,1], index: 10, kind: input, shape index: {}]   ;;  %s7543_s8 = inlined_call_operand.vmem [shape: f32[16,1], index: 8, kind: input, shape index: {}]   ;;  %s7544_s13 = inlined_call_operand.vmem [shape: f32[32,32], index: 13, kind: output, shape index: {2}]   ;;  %s7545_s7 = inlined_call_operand.vmem [shape: f32[16,32], index: 7, kind: input, shape index: {}]   ;;  %s7546_s9 = inlined_call_operand.vmem [shape: f32[16,32], index: 9, kind: input, shape index: {}]   ;;  %s7547_s14 = inlined_call_operand.vmem [shape: f32[16,2], index: 14, kind: output, shape index: {3}]   ;;  %s7548_s15 = inlined_call_operand.vmem [shape: f32[16,2], index: 15, kind: output, shape index: {4}]  }
   0x1   :  { %v50_v2 = vunpack.c.l.s4 %v5574_v1  ;;  %315 = vmatprep.mubr.bf16.mxu0 %v7589_v3  ;;  %356 = vmatprep.mubr.bf16.mxu1 %v7589_v3  ;;  %v46_v4 = vld [vmem:[%s7533_s0] sm:$0xff]  ;;  %s5576_s0 = smov 17   ;;  %s7640_s22 = smov 16  }
   0x2   :  { %v5685_v5 = vshrl.u32 %v52_v0, 7  ;;  %v5687_v6 = vand.u32 127, %v52_v0  ;;  %5540 = vset.pattern.permute.xlu0 %v7589_v3  ;;  %5541 = vset.pattern.permute.xlu1 %v7589_v3  ;;  %v48_v8 = vcombine.high %v46_v4, %v46_v4  ;;  %s7639_s23 = smov 18   ;;  %s5581_s24 = smov 32  }
   0x3   :  { %v51_v7 = vunpack.c.0.s8 %v50_v2  ;;  %s5582_s25 = smov 33   ;;  %s5583_s26 = smov 34  }
   0x4   :  { %7665 = vst [vmem:[#allocation2_spill] sm:$0xff] %v5685_v5  ;;  %7666 = vst [vmem:[#allocation3_spill] sm:$0xff] %v5687_v6  ;;  %v5692_v9 = vadd.s32 128, %v5687_v6  ;;  %v5695_v10 = vshra.s32 %v5687_v6, 4  ;;  %v5699_v12 = vadd.s32 256, %v5687_v6  ;;  %v5702_v13 = vadd.s32 384, %v5687_v6 }
   0x5   :  { %v54_v11 = vsub.s32 %v51_v7, %v5685_v5  ;;  %v93_v28 = vand.u32 15, %v5687_v6  ;;  %v5726_v29 = vsub.s32 0, %v5685_v5  ;;  %v5740_v33 = vsub.s32 4, %v5685_v5  ;;  %s5584_s27 = smov 112   ;;  %s5585_s28 = smov 127  }
   0x6   :  { %7667 = vst [vmem:[#allocation4_spill] sm:$0xff] %v5695_v10  ;;  %v98_v14 = vshra.s32 %v5692_v9, 4  ;;  %v5706_v15 = vand.u32 15, %v5695_v10  ;;  %v99_v20 = vshra.s32 %v5699_v12, 4  ;;  %v100_v22 = vshra.s32 %v5702_v13, 4  ;;  %s5586_s29 = smov 111  }
   0x7   :  { %v55_v16 = vrot.slane %v46_v4, %v54_v11  ;;  %v62_v17 = vrot.slane %v48_v8, %v54_v11  ;;  %7670 = vst [vmem:[#allocation5_spill] sm:$0xff] %v5726_v29  ;;  %v94_v34 = vand.u32 15, %v5692_v9  ;;  %v5743_v35 = vadd.s32 1, %v93_v28  ;;  %s5587_s30 = smov 126   ;;  %s5588_s16 = smov 110  }
   0x8   :  { %v5708_v18 = vand.u32 15, %v98_v14  ;;  %v105_v19 = vadd.s32 4294967295, %v5706_v15  ;;  %v5720_v26 = vand.u32 15, %v99_v20  ;;  %v5722_v27 = vand.u32 15, %v100_v22  ;;  %s5589_s17 = smov 95   ;;  %s5590_s18 = smov 96  }
   0x9   :  { %65 = vrot.lane.b32.xlu0 %v55_v16, %s5576_s0  ;;  %v63_v21 = vcombine.high %v55_v16, %v55_v16  ;;  %v64_v24 = vcombine.high %v62_v17, %v62_v17  ;;  %v5754_v40 = vadd.s32 1, %v94_v34  ;;  %vm7552_vm12 = vcmp.lt.s32.totalorder %v5743_v35, 16  ;;  %s5591_s19 = smov 94  }
   0xa   :  { %v106_v23 = vadd.s32 4294967295, %v5708_v18  ;;  %vm109_vm0 = vcmp.ge.s32.totalorder %v105_v19, 0  ;;  %vm113_vm1 = vcmp.lt.s32.totalorder %v105_v19, 16  ;;  %v107_v31 = vadd.s32 4294967295, %v5720_v26 }
   0xb   :  { %67 = vrot.lane.b32.xlu1 %v63_v21, %s5576_s0  ;;  %vm5716_vm2 = vmand %vm109_vm0, %vm113_vm1  ;;  %v108_v32 = vadd.s32 4294967295, %v5722_v27  ;;  %v95_v42 = vand.u32 15, %v5699_v12  ;;  %v96_v43 = vand.u32 15, %v5702_v13  ;;  %vm7550_vm15 = vcmp.lt.s32.totalorder %v5754_v40, 16 }
   0xc   :  { %vm110_vm3 = vcmp.ge.s32.totalorder %v106_v23, 0  ;;  %vm114_vm4 = vcmp.lt.s32.totalorder %v106_v23, 16  ;;  %vm111_vm7 = vcmp.ge.s32.totalorder %v107_v31, 0  ;;  %vm115_vm9 = vcmp.lt.s32.totalorder %v107_v31, 16  ;;  %vm478_vm0 = vmand %vm5716_vm2, %vm7552_vm12 }
   0xd   :  { %69 = vrot.lane.b32.xlu0 %v62_v17, %s5576_s0  ;;  %vm5729_vm5 = vmand %vm110_vm3, %vm114_vm4  ;;  %vm112_vm8 = vcmp.ge.s32.totalorder %v108_v32, 0  ;;  %vm116_vm10 = vcmp.lt.s32.totalorder %v108_v32, 16  ;;  %v5773_v45 = vadd.s32 1, %v95_v42  ;;  %v5775_v46 = vadd.s32 1, %v96_v43 }
   0xe   :  { %vm202_vm6 = vmpackc.low %vm5729_vm5, %vm5716_vm2  ;;  %v5783_v48 = vadd.s32 4294967295, %v93_v28  ;;  %v5787_v49 = vadd.s32 4294967295, %v94_v34  ;;  %v5813_v55 = vadd.s32 4294967295, %v95_v42  ;;  %v5822_v59 = vadd.s32 4294967295, %v96_v43 }
   0xf   :  { %71 = vrot.lane.b32.xlu1 %v64_v24, %s5576_s0  ;;  %v204_v36 = vsel %vm202_vm6, 65537, %v7589_v3  ;;  %vm5749_vm11 = vmand %vm111_vm7, %vm115_vm9  ;;  %vm7549_vm4 = vcmp.lt.s32.totalorder %v5773_v45, 16  ;;  %vm7551_vm6 = vcmp.lt.s32.totalorder %v5775_v46, 16  ;;  %vm659_vm9 = vcmp.lt.s32.totalorder %v5706_v15, 16 }
  0x10   :  { %v209_v37 = vrot.slane %v204_v36, %v5726_v29  ;;  %v213_v39 = vrot.slane %v204_v36, %v5740_v33  ;;  %vm5757_vm13 = vmand %vm112_vm8, %vm116_vm10  ;;  %vm655_vm8 = vcmp.ge.s32.totalorder %v5706_v15, 0  ;;  %vm7557_vm12 = vcmp.ge.s32.totalorder %v5813_v55, 0 }
  0x11   :  { %v7676_v41 = vsel %vm5757_vm13, 4294967295, %v7675_v41  ;;  %vm203_vm14 = vmpackc.low %vm5757_vm13, %vm5749_vm11  ;;  %v1209_v8 = vadd.s32 1, %v5706_v15  ;;  %v1210_v11 = vadd.s32 1, %v5708_v18  ;;  %v1212_v21 = vadd.s32 1, %v5722_v27 }
  0x12   :  { %222 = vrot.lane.b32.xlu0 %v209_v37, %s5577_s20  ;;  %v205_v44 = vsel %vm203_vm14, 65537, %v7589_v3  ;;  %vm479_vm1 = vmand %vm5729_vm5, %vm7550_vm15  ;;  %vm656_vm14 = vcmp.ge.s32.totalorder %v5708_v18, 0  ;;  %v7766_v5 = vmov 0  }
  0x13   :  { %v217_v47 = vrot.slane %v205_v44, %v5726_v29  ;;  %vm490_vm3 = vmpackc.low %vm479_vm1, %vm478_vm0  ;;  %v221_v50 = vrot.slane %v205_v44, %v5740_v33  ;;  %vm660_vm0 = vcmp.lt.s32.totalorder %v5708_v18, 16  ;;  %v1211_v18 = vadd.s32 1, %v5720_v26 }
  0x14   :  { %v492_v51 = vsel %vm490_vm3, 65537, %v7589_v3  ;;  %vm480_vm7 = vmand %vm5749_vm11, %vm7549_vm4  ;;  %vm7553_vm3 = vcmp.ge.s32.totalorder %v5783_v48, 0  ;;  %vm7555_vm4 = vcmp.ge.s32.totalorder %v5787_v49, 0 }
  0x15   :  { %226 = vrot.lane.b32.xlu1 %v217_v47, %s5577_s20  ;;  %v497_v52 = vrot.slane %v492_v51, %v5726_v29  ;;  %vm481_vm10 = vmand %vm5757_vm13, %vm7551_vm6  ;;  %v501_v56 = vrot.slane %v492_v51, %v5740_v33 }
  0x16   :  { %224 = vrot.lane.b32.xlu0 %v213_v39, %s5577_s20  ;;  %vm491_vm1 = vmpackc.low %vm481_vm10, %vm480_vm7  ;;  %vm661_vm10 = vcmp.lt.s32.totalorder %v5720_v26, 16 }
  0x17   :  { %v493_v53 = vsel %vm491_vm1, 65537, %v7589_v3  ;;  %vm5809_vm15 = vmand %vm655_vm8, %vm659_vm9  ;;  %vm657_vm9 = vcmp.ge.s32.totalorder %v5720_v26, 0 }
  0x18   :  { %v505_v57 = vrot.slane %v493_v53, %v5726_v29  ;;  %vm5818_vm7 = vmand %vm656_vm14, %vm660_vm0  ;;  %vm658_vm14 = vcmp.ge.s32.totalorder %v5722_v27, 0  ;;  %vm662_vm0 = vcmp.lt.s32.totalorder %v5722_v27, 16  ;;  %v509_v60 = vrot.slane %v493_v53, %v5740_v33 }
  0x19   :  { %228 = vrot.lane.b32.xlu1 %v221_v50, %s5577_s20  ;;  %vm667_vm8 = vmand %vm5809_vm15, %vm7553_vm3  ;;  %vm7556_vm3 = vcmp.ge.s32.totalorder %v5822_v59, 0 }
  0x1a   :  { %510 = vrot.lane.b32.xlu0 %v497_v52, %s7641_s21  ;;  %vm668_vm1 = vmand %vm5818_vm7, %vm7555_vm4 }
  0x1b   :  { %vm683_vm6 = vmpackc.low %vm668_vm1, %vm667_vm8 }
  0x1c   :  { %v685_v61 = vsel %vm683_vm6, 65537, %v7589_v3  ;;  %vm5842_vm13 = vmand %vm657_vm9, %vm661_vm10 }
  0x1d   :  { %512 = vrot.lane.b32.xlu1 %v501_v56, %s7641_s21  ;;  %v690_v63 = vrot.slane %v685_v61, %v5726_v29  ;;  %vm5847_vm4 = vmand %vm658_vm14, %vm662_vm0  ;;  %v694_v1 = vrot.slane %v685_v61, %v5740_v33  ;;  %vm7685_vm14 = vcmp.lt.s32.totalorder %v5743_v35, 16 }
  0x1e   :  { %514 = vrot.lane.b32.xlu0 %v505_v57, %s7641_s21  ;;  %vm669_vm8 = vmand %vm5842_vm13, %vm7557_vm12 }
  0x1f   :  { %vm670_vm6 = vmand %vm5847_vm4, %vm7556_vm3  ;;  %vm1214_vm3 = vcmp.ge.s32.totalorder %v1210_v11, 0 }
  0x20   :  { %vm684_vm9 = vmpackc.low %vm670_vm6, %vm669_vm8  ;;  %vm7688_vm8 = vcmp.lt.s32.totalorder %v5754_v40, 16 }
  0x21   :  { %516 = vrot.lane.b32.xlu1 %v509_v60, %s7641_s21  ;;  %v686_v2 = vsel %vm684_vm9, 65537, %v7589_v3  ;;  %vm864_vm10 = vmpackc.low %vm5818_vm7, %vm5809_vm15  ;;  %vm7691_vm9 = vcmp.lt.s32.totalorder %v5773_v45, 16  ;;  %s7895_s21 = smov 18  }
  0x22   :  { %703 = vrot.lane.b32.xlu0 %v690_v63, %s7640_s22  ;;  %v698_v4 = vrot.slane %v686_v2, %v5726_v29  ;;  %v866_v7 = vsel %vm864_vm10, 65537, %v7589_v3  ;;  %vm865_vm1 = vmpackc.low %vm5847_vm4, %vm5842_vm13  ;;  %v702_v12 = vrot.slane %v686_v2, %v5740_v33 }
  0x23   :  { %vm5878_vm0 = vmand %vm5809_vm15, %vm7685_vm14  ;;  %v871_v13 = vrot.slane %v866_v7, %v5726_v29  ;;  %v867_v15 = vsel %vm865_vm1, 65537, %v7589_v3  ;;  %vm1213_vm14 = vcmp.ge.s32.totalorder %v1209_v8, 0  ;;  %v875_v19 = vrot.slane %v866_v7, %v5740_v33 }
  0x24   :  { %vm5891_vm6 = vmand %vm5818_vm7, %vm7688_vm8  ;;  %vm1217_vm7 = vcmp.lt.s32.totalorder %v1209_v8, 16  ;;  %vm7694_vm8 = vcmp.lt.s32.totalorder %v5775_v46, 16  ;;  %v879_v20 = vrot.slane %v867_v15, %v5726_v29  ;;  %v883_v27 = vrot.slane %v867_v15, %v5740_v33 }
  0x25   :  { %705 = vrot.lane.b32.xlu1 %v694_v1, %s7640_s22  ;;  %vm1044_vm15 = vmpackc.low %vm5891_vm6, %vm5878_vm0  ;;  %vm1218_vm0 = vcmp.lt.s32.totalorder %v1210_v11, 16 }
  0x26   :  { %707 = vrot.lane.b32.xlu0 %v698_v4, %s7640_s22  ;;  %vm5904_vm10 = vmand %vm5842_vm13, %vm7691_vm9  ;;  %v1046_v22 = vsel %vm1044_vm15, 65537, %v7589_v3  ;;  %vm7701_vm9 = vcmp.ge.s32.totalorder %v5783_v48, 0 }
  0x27   :  { %vm5912_vm1 = vmand %vm5847_vm4, %vm7694_vm8  ;;  %v1051_v28 = vrot.slane %v1046_v22, %v5726_v29  ;;  %v1055_v36 = vrot.slane %v1046_v22, %v5740_v33 }
  0x28   :  { %vm1045_vm13 = vmpackc.low %vm5912_vm1, %vm5904_vm10  ;;  %vm1215_vm10 = vcmp.ge.s32.totalorder %v1211_v18, 0  ;;  %vm1219_vm1 = vcmp.lt.s32.totalorder %v1211_v18, 16 }
  0x29   :  { %709 = vrot.lane.b32.xlu1 %v702_v12, %s7640_s22  ;;  %vm5927_vm4 = vmand %vm1213_vm14, %vm1217_vm7  ;;  %vm1216_vm14 = vcmp.ge.s32.totalorder %v1212_v21, 0  ;;  %vm1220_vm7 = vcmp.lt.s32.totalorder %v1212_v21, 16  ;;  %v1047_v31 = vsel %vm1045_vm13, 65537, %v7589_v3  ;;  %vm7709_vm13 = vcmp.ge.s32.totalorder %v5813_v55, 0 }
  0x2a   :  { %884 = vrot.lane.b32.xlu0 %v871_v13, %s5576_s0  ;;  %vm5931_vm6 = vmand %vm1214_vm3, %vm1218_vm0  ;;  %vm7704_vm3 = vcmp.ge.s32.totalorder %v5787_v49, 0  ;;  %v1059_v37 = vrot.slane %v1047_v31, %v5726_v29  ;;  %v1063_v42 = vrot.slane %v1047_v31, %v5740_v33 }
  0x2b   :  { %vm5939_vm8 = vmand %vm5927_vm4, %vm7701_vm9 }
  0x2c   :  { %vm1226_vm15 = vmand %vm5931_vm6, %vm7704_vm3 }
  0x2d   :  { %886 = vrot.lane.b32.xlu1 %v875_v19, %s5576_s0  ;;  %vm1241_vm0 = vmpackc.low %vm1226_vm15, %vm5939_vm8 }
  0x2e   :  { %888 = vrot.lane.b32.xlu0 %v879_v20, %s5576_s0  ;;  %vm5954_vm9 = vmand %vm1215_vm10, %vm1219_vm1  ;;  %v1243_v39 = vsel %vm1241_vm0, 65537, %v7589_v3  ;;  %vm7710_vm10 = vcmp.ge.s32.totalorder %v5822_v59, 0  ;;  %vm7714_vm0 = vcmp.lt.s32.totalorder %v5754_v40, 16 }
  0x2f   :  { %vm5958_vm12 = vmand %vm1216_vm14, %vm1220_vm7  ;;  %v1248_v43 = vrot.slane %v1243_v39, %v5726_v29  ;;  %vm7711_vm14 = vcmp.lt.s32.totalorder %v5743_v35, 16  ;;  %v1252_v35 = vrot.slane %v1243_v39, %v5740_v33 }
  0x30   :  { %vm1227_vm8 = vmand %vm5954_vm9, %vm7709_vm13 }
  0x31   :  { %890 = vrot.lane.b32.xlu1 %v883_v27, %s5576_s0  ;;  %vm1228_vm1 = vmand %vm5958_vm12, %vm7710_vm10 }
  0x32   :  { %1064 = vrot.lane.b32.xlu0 %v1051_v28, %s7639_s23  ;;  %vm1242_vm3 = vmpackc.low %vm1228_vm1, %vm1227_vm8  ;;  %vm7720_vm1 = vcmp.lt.s32.totalorder %v5775_v46, 16 }
  0x33   :  { %vm1422_vm15 = vmpackc.low %vm5931_vm6, %vm5927_vm4  ;;  %v1244_v44 = vsel %vm1242_vm3, 65537, %v7589_v3 }
  0x34   :  { %vm5988_vm7 = vmand %vm5927_vm4, %vm7711_vm14  ;;  %v1256_v51 = vrot.slane %v1244_v44, %v5726_v29  ;;  %v1424_v40 = vsel %vm1422_vm15, 65537, %v7589_v3  ;;  %vm7723_vm14 = vcmp.ge.s32.totalorder %v5783_v48, 0 }
  0x35   :  { %1066 = vrot.lane.b32.xlu1 %v1055_v36, %s7639_s23  ;;  %vm5996_vm13 = vmand %vm5931_vm6, %vm7714_vm0  ;;  %vm7717_vm6 = vcmp.lt.s32.totalorder %v5773_v45, 16  ;;  %v1260_v45 = vrot.slane %v1244_v44, %v5740_v33  ;;  %v1429_v54 = vrot.slane %v1424_v40, %v5726_v29  ;;  %vm7724_vm0 = vcmp.ge.s32.totalorder %v5787_v49, 0 }
  0x36   :  { %1068 = vrot.lane.b32.xlu0 %v1059_v37, %s7639_s23  ;;  %vm1423_vm8 = vmpackc.low %vm5958_vm12, %vm5954_vm9  ;;  %v1433_v48 = vrot.slane %v1424_v40, %v5740_v33 }
  0x37   :  { %vm6016_vm10 = vmand %vm5954_vm9, %vm7717_vm6  ;;  %v1425_v46 = vsel %vm1423_vm8, 65537, %v7589_v3  ;;  %vm7558_vm8 = vcmask 130048  }
  0x38   :  { %vm6024_vm3 = vmand %vm5958_vm12, %vm7720_vm1  ;;  %v1437_v49 = vrot.slane %v1425_v46, %v5726_v29  ;;  %v1441_v56 = vrot.slane %v1425_v46, %v5740_v33 }
  0x39   :  { %1070 = vrot.lane.b32.xlu1 %v1063_v42, %s7639_s23  ;;  %vm129_vm15 = vmand %vm5716_vm2, %vm7723_vm14  ;;  %vm7725_vm2 = vcmp.ge.s32.totalorder %v5813_v55, 0 }
  0x3a   :  { %1261 = vrot.lane.b32.xlu0 %v1248_v43, %s5581_s24  ;;  %vm130_vm6 = vmand %vm5729_vm5, %vm7724_vm0  ;;  %vm7726_vm5 = vcmp.ge.s32.totalorder %v5822_v59, 0  ;;  %vm7727_vm0 = vnez %v7676_v41 }
  0x3b   :  { %vm149_vm1 = vmpackc.low %vm130_vm6, %vm129_vm15 }
  0x3c   :  { %v6045_v25 = vsel %vm149_vm1, 65537, %v7589_v3  ;;  %vm131_vm14 = vmand %vm5749_vm11, %vm7725_vm2 }
  0x3d   :  { %1263 = vrot.lane.b32.xlu1 %v1252_v35, %s5581_s24  ;;  %v160_v30 = vrot.slane %v6045_v25, %v5740_v33  ;;  %vm132_vm4 = vmand %vm7727_vm0, %vm7726_vm5  ;;  %vm7562_vm0 = vcmask 15360  }
  0x3e   :  { %1265 = vrot.lane.b32.xlu0 %v1256_v51, %s5581_s24  ;;  %vm150_vm12 = vmpackc.low %vm132_vm4, %vm131_vm14 }
  0x3f   :  { %vm7728_vm11 = vmpackc.low %vm5996_vm13, %vm5988_vm7  ;;  %v6066_v55 = vsel %vm150_vm12, 65537, %v7589_v3  ;;  %vm73_vm7 = vcmask 138240  }
  0x40   :  { %v1605_v38 = vsel %vm7728_vm11, 65537, %v7589_v3  ;;  %vm1604_vm9 = vmpackc.low %vm6024_vm3, %vm6016_vm10  ;;  %vm230_vm10 = vcmask 7168   ;;  %v164_v10 = vrot.slane %v6066_v55, %v5726_v29 }
  0x41   :  { %1267 = vrot.lane.b32.xlu1 %v1260_v45, %s5581_s24  ;;  %v1614_v57 = vrot.slane %v1605_v38, %v5740_v33  ;;  %v1606_v58 = vsel %vm1604_vm9, 65537, %v7589_v3  ;;  %v1610_v59 = vrot.slane %v1605_v38, %v5726_v29 }
  0x42   :  { %1442 = vrot.lane.b32.xlu0 %v1429_v54, %s5582_s25  ;;  %v1622_v60 = vrot.slane %v1606_v58, %v5740_v33  ;;  %v1618_v61 = vrot.slane %v1606_v58, %v5726_v29 }
  0x45   :  { %1444 = vrot.lane.b32.xlu1 %v1433_v48, %s5582_s25 }
  0x46   :  { %1446 = vrot.lane.b32.xlu0 %v1437_v49, %s5582_s25 }
  0x49   :  { %1448 = vrot.lane.b32.xlu1 %v1441_v56, %s5582_s25 }
  0x4a   :  { %1625 = vrot.lane.b32.xlu0 %v1614_v57, %s5583_s26 }
  0x4d   :  { %1623 = vrot.lane.b32.xlu1 %v1610_v59, %s5583_s26 }
  0x4e   :  { %1629 = vrot.lane.b32.xlu0 %v1622_v60, %s5583_s26 }
  0x51   :  { %1627 = vrot.lane.b32.xlu1 %v1618_v61, %s5583_s26  ;;  %s5595_s26 = smov 9  }
  0x7b   :  { %v66_v62 = vpop.permute.xlu0 %65 }
  0x7c   :  { %v6093_v14 = vsel %vm73_vm7, 0, %v66_v62 }
  0x7d   :  { %v68_v63 = vpop.permute.xlu1 %67 }
  0x7e   :  { %v6115_v22 = vsel %vm73_vm7, %v66_v62, %v68_v63 }
  0x7f   :  { %v70_v0 = vpop.permute.xlu0 %69 }
  0x80   :  { %v6151_v37 = vsel %vm73_vm7, %v68_v63, %v70_v0 }
  0x81   :  { %v72_v1 = vpop.permute.xlu1 %71 }
  0x82   :  { %v6127_v26 = vsel %vm73_vm7, %v72_v1, 0  ;;  %v6163_v43 = vsel %vm73_vm7, %v70_v0, %v72_v1 }
  0x84   :  { %v6080_v2 = vpop.permute.xlu0 %222 }
  0x85   :  { %vm234_vm4 = vcmp.ne.s16.totalorder %v6080_v2, 0 }
  0x86   :  { %v239_v20 = vsel %vm234_vm4, %v6093_v14, 0 }
  0x87   :  { %v227_v7 = vpop.permute.xlu1 %226 }
  0x88   :  { %v225_v4 = vpop.permute.xlu0 %224 }
  0x89   :  { %v6112_v21 = vsel %vm230_vm10, %v6080_v2, %v225_v4  ;;  %v6124_v24 = vsel %vm230_vm10, %v225_v4, %v227_v7 }
  0x8a   :  { %vm235_vm6 = vcmp.ne.s16.totalorder %v6112_v21, 0  ;;  %vm236_vm1 = vcmp.ne.s16.totalorder %v6124_v24, 0 }
  0x8b   :  { %v6084_v9 = vpop.permute.xlu1 %228  ;;  %v240_v34 = vsel %vm235_vm6, %v6115_v22, 0  ;;  %v241_v39 = vsel %vm236_vm1, %v6151_v37, 0 }
  0x8c   :  { %v6082_v8 = vpop.permute.xlu0 %510  ;;  %vm238_vm15 = vcmp.ne.s16.totalorder %v6084_v9, 0  ;;  %v6160_v42 = vsel %vm230_vm10, %v227_v7, %v6084_v9 }
  0x8d   :  { %v243_v28 = vsel %vm238_vm15, %v6127_v26, 0  ;;  %vm7602_vm5 = vcmp.ne.s16.totalorder %v6160_v42, 0  ;;  %vm522_vm10 = vcmp.ne.s16.totalorder %v6082_v8, 0 }
  0x8e   :  { %v242_v51 = vsel %vm7602_vm5, %v6163_v43, 0  ;;  %v527_v38 = vsel %vm522_vm10, %v6093_v14, 0  ;;  %vm7606_vm5 = vcmask 916480  }
  0x8f   :  { %v6088_v12 = vpop.permute.xlu1 %512 }
  0x90   :  { %v6086_v11 = vpop.permute.xlu0 %514  ;;  %v6183_v40 = vsel %vm7562_vm0, %v6082_v8, %v6088_v12 }
  0x91   :  { %vm7571_vm9 = vcmp.ne.s16.totalorder %v6183_v40, 0  ;;  %v6226_v59 = vsel %vm7562_vm0, %v6088_v12, %v6086_v11 }
  0x92   :  { %v528_v48 = vsel %vm7571_vm9, %v6115_v22, 0  ;;  %vm7581_vm9 = vcmask 261120  }
  0x93   :  { %v6095_v15 = vpop.permute.xlu1 %516 }
  0x94   :  { %v6090_v13 = vpop.permute.xlu0 %703  ;;  %v6202_v46 = vsel %vm7562_vm0, %v6086_v11, %v6095_v15 }
  0x95   :  { %vm715_vm13 = vcmp.ne.s16.totalorder %v6090_v13, 0 }
  0x96   :  { %v720_v16 = vsel %vm715_vm13, %v6093_v14, 0 }
  0x97   :  { %732 = vrot.lane.b32.xlu0 %v720_v16, %s5584_s27  ;;  %v706_v17 = vpop.permute.xlu1 %705 }
  0x98   :  { %v708_v18 = vpop.permute.xlu0 %707  ;;  %v6105_v19 = vsel %vm7558_vm8, %v6090_v13, %v706_v17 }
  0x99   :  { %7729 = vst [vmem:[#allocation6_spill] sm:$0xff] %v6105_v19  ;;  %vm7561_vm3 = vcmp.ne.s16.totalorder %v6105_v19, 0  ;;  %v6148_v36 = vsel %vm7558_vm8, %v706_v17, %v708_v18 }
  0x9a   :  { %v721_v23 = vsel %vm7561_vm3, %v6115_v22, 0  ;;  %7732 = vst [vmem:[#allocation9_spill] sm:$0xff] %v6148_v36  ;;  %vm7563_vm14 = vcmp.ne.s16.totalorder %v6148_v36, 0  ;;  %vm7569_vm3 = vcmp.ne.s16.totalorder %v6226_v59, 0 }
  0x9b   :  { %251 = vrot.lane.b32.xlu0 %v239_v20, %s5585_s28  ;;  %734 = vrot.lane.b32.xlu1 %v721_v23, %s5584_s27  ;;  %v6130_v27 = vpop.permute.xlu1 %709  ;;  %v722_v35 = vsel %vm7563_vm14, %v6151_v37, 0  ;;  %v529_v4 = vsel %vm7569_vm3, %v6151_v37, 0 }
  0x9c   :  { %7730 = vst [vmem:[#allocation7_spill] sm:$0xff] %v6130_v27  ;;  %v6138_v31 = vsel %vm7558_vm8, %v708_v18, %v6130_v27  ;;  %v6142_v32 = vpop.permute.xlu0 %884  ;;  %vm7560_vm12 = vcmp.ne.s16.totalorder %v6130_v27, 0  ;;  %vm7566_vm8 = vcmp.ne.s16.totalorder %v6202_v46, 0 }
  0x9d   :  { %7731 = vst [vmem:[#allocation8_spill] sm:$0xff] %v6138_v31  ;;  %vm7559_vm2 = vcmp.ne.s16.totalorder %v6138_v31, 0  ;;  %vm895_vm11 = vcmp.ne.s16.totalorder %v6142_v32, 0  ;;  %v724_v53 = vsel %vm7560_vm12, %v6127_v26, 0  ;;  %v530_v58 = vsel %vm7566_vm8, %v6163_v43, 0 }
  0x9e   :  { %v723_v47 = vsel %vm7559_vm2, %v6163_v43, 0  ;;  %v900_v54 = vsel %vm895_vm11, %v6093_v14, 0  ;;  %vm7565_vm2 = vcmp.ne.s16.totalorder %v6095_v15, 0 }
  0x9f   :  { %259 = vrot.lane.b32.xlu0 %v243_v28, %s5585_s28  ;;  %253 = vrot.lane.b32.xlu1 %v240_v34, %s5585_s28  ;;  %v887_v44 = vpop.permute.xlu1 %886  ;;  %v531_v60 = vsel %vm7565_vm2, %v6127_v26, 0  ;;  %vm1072_vm2 = vcmask 146432  }
  0xa0   :  { %v889_v50 = vpop.permute.xlu0 %888  ;;  %v6216_v56 = vsel %vm73_vm7, %v6142_v32, %v887_v44 }
  0xa1   :  { %7734 = vst [vmem:[#allocation11_spill] sm:$0xff] %v6216_v56  ;;  %vm7564_vm12 = vcmp.ne.s16.totalorder %v6216_v56, 0  ;;  %v6245_v0 = vsel %vm73_vm7, %v887_v44, %v889_v50 }
  0xa2   :  { %v901_v63 = vsel %vm7564_vm12, %v6115_v22, 0  ;;  %7737 = vst [vmem:[#allocation14_spill] sm:$0xff] %v6245_v0  ;;  %vm7568_vm14 = vcmp.ne.s16.totalorder %v6245_v0, 0 }
  0xa3   :  { %255 = vrot.lane.b32.xlu0 %v241_v39, %s5585_s28  ;;  %738 = vrot.lane.b32.xlu1 %v723_v47, %s5584_s27  ;;  %v6185_v52 = vpop.permute.xlu1 %890  ;;  %v902_v12 = vsel %vm7568_vm14, %v6151_v37, 0 }
  0xa4   :  { %7733 = vst [vmem:[#allocation10_spill] sm:$0xff] %v6185_v52  ;;  %v6194_v45 = vpop.permute.xlu0 %1064  ;;  %v6235_v61 = vsel %vm73_vm7, %v889_v50, %v6185_v52  ;;  %vm7570_vm8 = vcmp.ne.s16.totalorder %v6185_v52, 0 }
  0xa5   :  { %7735 = vst [vmem:[#allocation12_spill] sm:$0xff] %v6235_v61  ;;  %vm7567_vm0 = vcmp.ne.s16.totalorder %v6235_v61, 0  ;;  %vm7580_vm12 = vcmp.ne.s16.totalorder %v6194_v45, 0  ;;  %v904_v23 = vsel %vm7570_vm8, %v6127_v26, 0 }
  0xa6   :  { %v903_v7 = vsel %vm7567_vm0, %v6163_v43, 0  ;;  %v1081_v18 = vsel %vm7580_vm12, %v6093_v14, 0  ;;  %vm1631_vm12 = vcmask 277504  }
  0xa7   :  { %736 = vrot.lane.b32.xlu0 %v722_v35, %s5584_s27  ;;  %257 = vrot.lane.b32.xlu1 %v242_v51, %s5585_s28  ;;  %v1067_v49 = vpop.permute.xlu1 %1066 }
  0xa8   :  { %v1069_v57 = vpop.permute.xlu0 %1068  ;;  %v6274_v20 = vsel %vm1072_vm2, %v6194_v45, %v1067_v49 }
  0xa9   :  { %v6265_v16 = vsel %vm1072_vm2, %v1067_v49, %v1069_v57  ;;  %7739 = vst [vmem:[#allocation16_spill] sm:$0xff] %v6274_v20  ;;  %vm7572_vm14 = vcmp.ne.s16.totalorder %v6274_v20, 0 }
  0xaa   :  { %7738 = vst [vmem:[#allocation15_spill] sm:$0xff] %v6265_v16  ;;  %vm7574_vm0 = vcmp.ne.s16.totalorder %v6265_v16, 0  ;;  %v1082_v47 = vsel %vm7572_vm14, %v6115_v22, 0 }
  0xab   :  { %740 = vrot.lane.b32.xlu0 %v724_v53, %s5584_s27  ;;  %912 = vrot.lane.b32.xlu1 %v900_v54, %s5586_s29  ;;  %v6237_v62 = vpop.permute.xlu1 %1070  ;;  %v1083_v34 = vsel %vm7574_vm0, %v6151_v37, 0  ;;  %vm1450_vm0 = vcmask 269312  }
  0xac   :  { %7736 = vst [vmem:[#allocation13_spill] sm:$0xff] %v6237_v62  ;;  %v6249_v1 = vpop.permute.xlu0 %1261  ;;  %v6290_v39 = vsel %vm1072_vm2, %v1069_v57, %v6237_v62  ;;  %vm7573_vm3 = vcmp.ne.s16.totalorder %v6237_v62, 0 }
  0xad   :  { %7741 = vst [vmem:[#allocation18_spill] sm:$0xff] %v6290_v39  ;;  %vm7575_vm8 = vcmp.ne.s16.totalorder %v6290_v39, 0  ;;  %v1085_v50 = vsel %vm7573_vm3, %v6127_v26, 0  ;;  %vm7577_vm14 = vcmp.ne.s16.totalorder %v6249_v1, 0 }
  0xae   :  { %v1084_v51 = vsel %vm7575_vm8, %v6163_v43, 0 }
  0xaf   :  { %541 = vrot.lane.b32.xlu0 %v528_v48, %s5587_s30  ;;  %539 = vrot.lane.b32.xlu1 %v527_v38, %s5587_s30  ;;  %v1264_v11 = vpop.permute.xlu1 %1263  ;;  %v1278_v48 = vsel %vm7577_vm14, %v6093_v14, 0 }
  0xb0   :  { %v1266_v17 = vpop.permute.xlu0 %1265  ;;  %v6311_v53 = vsel %vm7581_vm9, %v6249_v1, %v1264_v11 }
  0xb1   :  { %7742 = vst [vmem:[#allocation19_spill] sm:$0xff] %v6311_v53  ;;  %vm7579_vm3 = vcmp.ne.s16.totalorder %v6311_v53, 0 }
  0xb3   :  { %545 = vrot.lane.b32.xlu0 %v530_v58, %s5587_s30  ;;  %547 = vrot.lane.b32.xlu1 %v531_v60, %s5587_s30  ;;  %v6281_v28 = vpop.permute.xlu1 %1267  ;;  %v1279_v58 = vsel %vm7579_vm3, %v6115_v22, 0 }
  0xb4   :  { %7740 = vst [vmem:[#allocation17_spill] sm:$0xff] %v6281_v28  ;;  %v6294_v44 = vpop.permute.xlu0 %1442  ;;  %v6325_v49 = vsel %vm7581_vm9, %v1266_v17, %v6281_v28  ;;  %vm7578_vm8 = vcmp.ne.s16.totalorder %v6281_v28, 0 }
  0xb5   :  { %vm7576_vm2 = vcmp.ne.s16.totalorder %v6294_v44, 0  ;;  %7743 = vst [vmem:[#allocation20_spill] sm:$0xff] %v6325_v49 }
  0xb6   :  { %v1459_v54 = vsel %vm7576_vm2, %v6093_v14, 0  ;;  %vm7594_vm2 = vcmp.ne.s16.totalorder %v6325_v49, 0 }
  0xb7   :  { %914 = vrot.lane.b32.xlu0 %v901_v63, %s5586_s29  ;;  %543 = vrot.lane.b32.xlu1 %v529_v4, %s5587_s30  ;;  %v1445_v35 = vpop.permute.xlu1 %1444  ;;  %v1282_v63 = vsel %vm7578_vm8, %v6127_v26, 0 }
  0xb8   :  { %v1447_v38 = vpop.permute.xlu0 %1446  ;;  %v6336_v60 = vsel %vm1450_vm0, %v6294_v44, %v1445_v35 }
  0xb9   :  { %7745 = vst [vmem:[#allocation22_spill] sm:$0xff] %v6336_v60  ;;  %v6344_v4 = vsel %vm1450_vm0, %v1445_v35, %v1447_v38  ;;  %vm7582_vm14 = vcmp.ne.s16.totalorder %v6336_v60, 0 }
  0xba   :  { %7746 = vst [vmem:[#allocation23_spill] sm:$0xff] %v6344_v4  ;;  %vm7583_vm8 = vcmp.ne.s16.totalorder %v6344_v4, 0 }
  0xbb   :  { %918 = vrot.lane.b32.xlu0 %v903_v7, %s5586_s29  ;;  %916 = vrot.lane.b32.xlu1 %v902_v12, %s5586_s29  ;;  %v6327_v57 = vpop.permute.xlu1 %1448  ;;  %v1281_v7 = vsel %vm7594_vm2, %v6163_v43, 0  ;;  %v6352_v12 = vsel %vm7581_vm9, %v1264_v11, %v1266_v17  ;;  %v1461_v11 = vsel %vm7583_vm8, %v6151_v37, 0  ;;  %vm266_vm2 = vcmask 31744  }
  0xbc   :  { %7744 = vst [vmem:[#allocation21_spill] sm:$0xff] %v6327_v57  ;;  %7747 = vst [vmem:[#allocation24_spill] sm:$0xff] %v6352_v12  ;;  %vm7595_vm3 = vcmp.ne.s16.totalorder %v6352_v12, 0  ;;  %v6368_v17 = vsel %vm1450_vm0, %v1447_v38, %v6327_v57  ;;  %vm7585_vm9 = vcmp.ne.s16.totalorder %v6327_v57, 0 }
  0xbd   :  { %7748 = vst [vmem:[#allocation25_spill] sm:$0xff] %v6368_v17  ;;  %vm7584_vm0 = vcmp.ne.s16.totalorder %v6368_v17, 0 }
  0xbf   :  { %1093 = vrot.lane.b32.xlu0 %v1081_v18, %s5588_s16  ;;  %920 = vrot.lane.b32.xlu1 %v904_v23, %s5586_s29  ;;  %v1626_v18 = vpop.permute.xlu0 %1625  ;;  %v6354_v23 = vpop.permute.xlu1 %1623 }
  0xc0   :  { %vm7596_vm8 = vcmp.ne.s16.totalorder %v6354_v23, 0 }
  0xc3   :  { %1097 = vrot.lane.b32.xlu0 %v1083_v34, %s5588_s16  ;;  %1095 = vrot.lane.b32.xlu1 %v1082_v47, %s5588_s16  ;;  %v1460_v34 = vsel %vm7582_vm14, %v6115_v22, 0  ;;  %v1280_v47 = vsel %vm7595_vm3, %v6151_v37, 0  ;;  %v6379_v35 = vpop.permute.xlu0 %1629 }
  0xc4   :  { %7750 = vst [vmem:[#allocation27_spill] sm:$0xff] %v6379_v35 }
  0xc7   :  { %1101 = vrot.lane.b32.xlu0 %v1085_v50, %s5588_s16  ;;  %1099 = vrot.lane.b32.xlu1 %v1084_v51, %s5588_s16  ;;  %v6377_v50 = vsel %vm1631_vm12, %v6354_v23, %v1626_v18  ;;  %v1628_v51 = vpop.permute.xlu1 %1627 }
  0xc8   :  { %7749 = vst [vmem:[#allocation26_spill] sm:$0xff] %v6377_v50  ;;  %vm7591_vm14 = vcmp.ne.s16.totalorder %v6377_v50, 0  ;;  %v6393_v38 = vsel %vm1631_vm12, %v1628_v51, %v6379_v35 }
  0xc9   :  { %7751 = vst [vmem:[#allocation28_spill] sm:$0xff] %v6393_v38 }
  0xcb   :  { %1471 = vrot.lane.b32.xlu0 %v1459_v54, %s5589_s17  ;;  %1290 = vrot.lane.b32.xlu1 %v1278_v48, %s5590_s18  ;;  %v1463_v54 = vsel %vm7585_vm9, %v6127_v26, 0  ;;  %v1462_v48 = vsel %vm7584_vm0, %v6163_v43, 0  ;;  %vm7586_vm0 = vcmp.ne.s16.totalorder %v6393_v38, 0 }
  0xcf   :  { %1292 = vrot.lane.b32.xlu0 %v1279_v58, %s5590_s18  ;;  %1298 = vrot.lane.b32.xlu1 %v1282_v63, %s5590_s18  ;;  %v1641_v58 = vsel %vm7591_vm14, %v6115_v22, 0  ;;  %v6401_v63 = vsel %vm1631_vm12, %v1626_v18, %v1628_v51  ;;  %vm7587_vm12 = vcmp.ne.s16.totalorder %v6379_v35, 0  ;;  %vm270_vm14 = vcmask 1041408  }
  0xd0   :  { %7752 = vst [vmem:[#allocation29_spill] sm:$0xff] %v6401_v63  ;;  %vm7588_vm9 = vcmp.ne.s16.totalorder %v6401_v63, 0 }
  0xd1   :  { %v1642_v18 = vsel %vm7588_vm9, %v6151_v37, 0 }
  0xd3   :  { %1296 = vrot.lane.b32.xlu0 %v1281_v7, %s5590_s18  ;;  %1473 = vrot.lane.b32.xlu1 %v1460_v34, %s5589_s17  ;;  %v1640_v7 = vsel %vm7596_vm8, %v6093_v14, 0  ;;  %v1643_v34 = vsel %vm7586_vm0, %v6163_v43, 0  ;;  %vm7601_vm0 = vcmask 1039360   ;;  %vm6468_vm8 = vcmp.ne.s16.totalorder %v164_v10, 0 }
  0xd7   :  { %1475 = vrot.lane.b32.xlu0 %v1461_v11, %s5589_s17  ;;  %1294 = vrot.lane.b32.xlu1 %v1280_v47, %s5590_s18  ;;  %v1768_v11 = vld [vmem:[%s7534_s2] sm:$0xff]  ;;  %v1644_v47 = vsel %vm7587_vm12, %v6127_v26, 0  ;;  %vm6436_vm12 = vcmp.ne.s16.totalorder %v160_v30, 0  ;;  %v7753_v26 = vmov 0 }
  0xd8   :  { %v7754_v26 = vsel %vm6436_vm12, 4294967295, %v7753_v26  ;;  %v4897_v30 = vld [vmem:[%s7535_s1 + $0x4] sm:$0xf] }
  0xd9   :  { %7755 = vst [vmem:[#allocation30_spill] sm:$0xff] %v7754_v26 }
  0xdb   :  { %1479 = vrot.lane.b32.xlu0 %v1463_v54, %s5589_s17  ;;  %1477 = vrot.lane.b32.xlu1 %v1462_v48, %s5589_s17 }
  0xdf   :  { %1654 = vrot.lane.b32.xlu0 %v1641_v58, %s5591_s19  ;;  %1652 = vrot.lane.b32.xlu1 %v1640_v7, %s5591_s19  ;;  %v156_v7 = vrot.slane %v6045_v25, %v5726_v29  ;;  %v174_v25 = vsel %vm6436_vm12, %v6115_v22, 0  ;;  %v7760_v22 = vmov 0  ;;  %v7763_v29 = vmov 0 }
  0xe0   :  { %v7764_v29 = vsel %vm6468_vm8, 4294967295, %v7763_v29 }
  0xe1   :  { %vm6440_vm9 = vcmp.ne.s16.totalorder %v156_v7, 0  ;;  %7765 = vst [vmem:[#allocation33_spill] sm:$0xff] %v7764_v29 }
  0xe2   :  { %v173_v7 = vsel %vm6440_vm9, %v6093_v14, 0 }
  0xe3   :  { %1658 = vrot.lane.b32.xlu0 %v1643_v34, %s5591_s19  ;;  %1656 = vrot.lane.b32.xlu1 %v1642_v18, %s5591_s19 }
  0xe7   :  { %1771 = vperm.xlu0 %5540, %v1768_v11   ;;  %1660 = vrot.lane.b32.xlu1 %v1644_v47, %s5591_s19  ;;  %v7756_v47 = vmov 0 }
  0xe8   :  { %v7757_v47 = vsel %vm6440_vm9, 4294967295, %v7756_v47 }
  0xe9   :  { %7758 = vst [vmem:[#allocation31_spill] sm:$0xff] %v7757_v47 }
 0x109   :  { %v6426_v51 = vpop.permute.xlu0 %732 }
 0x10d   :  { %v252_v54 = vpop.permute.xlu0 %251  ;;  %v6428_v48 = vpop.permute.xlu1 %734 }
 0x111   :  { %v260_v58 = vpop.permute.xlu0 %259  ;;  %v254_v34 = vpop.permute.xlu1 %253 }
 0x112   :  { %v262_v18 = vsel %vm7601_vm0, %v252_v54, %v254_v34 }
 0x113   :  { %v272_v54 = vsel %vm270_vm14, %v262_v18, 0  ;;  %v7759_v18 = vrot.slane %v6066_v55, %v5740_v33 }
 0x115   :  { %v256_v11 = vpop.permute.xlu0 %255  ;;  %v739_v41 = vpop.permute.xlu1 %738  ;;  %vm6463_vm3 = vcmp.ne.s16.totalorder %v7759_v18, 0 }
 0x116   :  { %v263_v3 = vsel %vm7601_vm0, %v254_v34, %v256_v11  ;;  %v7761_v22 = vsel %vm6463_vm3, 4294967295, %v7760_v22  ;;  %v176_v10 = vsel %vm6463_vm3, %v6163_v43, 0 }
 0x117   :  { %4898 = vmatprep.subr.msk.bf16.mxu0 %vm270_vm14, %v263_v3  ;;  %7762 = vst [vmem:[#allocation32_spill] sm:$0xff] %v7761_v22 }
 0x118   :  { %298 = vmatpush1.bf16.msra.mxu0 %v272_v54  ;;  %v369_v54 = vsel %vm270_vm14, %v173_v7, 0  ;;  %v175_v7 = vsel %vm6468_vm8, %v6151_v37, 0 }
 0x119   :  { %v737_v3 = vpop.permute.xlu0 %736  ;;  %4902 = vmatprep.subr.msk.bf16.mxu0 %vm270_vm14, %v174_v25  ;;  %v258_v34 = vpop.permute.xlu1 %257 }
 0x11a   :  { %v265_v14 = vsel %vm7601_vm0, %v258_v34, %v260_v58  ;;  %v264_v25 = vsel %vm7601_vm0, %v256_v11, %v258_v34  ;;  %v177_v11 = vld [vmem:[%s7535_s1] sm:$0xf]  ;;  %v375_v34 = vsel %vm270_vm14, %v175_v7, 0  ;;  %vm7605_vm0 = vcmask 1031168  }
 0x11b   :  { %4899 = vmatmul.mubr.msk.bf16.vlgmr.msra.gmra.mxu0 %vm266_vm2, %v4897_v30  ;;  %4900 = vmatprep.subr.msk.bf16.mxu1 %vm270_vm14, %v265_v14  ;;  %v278_v33 = vsel %vm270_vm14, %v264_v25, 0 }
 0x11c   :  { %395 = vmatpush1.bf16.msra.mxu0 %v369_v54  ;;  %412 = vmatprep.mubr.bf16.mxu0 %v7766_v5 }
 0x11d   :  { %v741_v55 = vpop.permute.xlu0 %740  ;;  %339 = vmatpush1.bf16.msra.mxu1 %v278_v33  ;;  %v913_v58 = vpop.permute.xlu1 %912 }
 0x11e   :  { %4904 = vmatprep.subr.msk.bf16.mxu1 %vm270_vm14, %v176_v10  ;;  %v746_v6 = vsel %vm7606_vm5, %v739_v41, %v741_v55 }
 0x120   :  { %4901 = vmatmul.mubr.msk.bf16.vlgmr.msra.gmra.mxu1 %vm266_vm2, %v4897_v30 }
 0x121   :  { %v542_v18 = vpop.permute.xlu0 %541  ;;  %436 = vmatpush1.bf16.msra.mxu1 %v375_v34  ;;  %453 = vmatprep.mubr.bf16.mxu1 %v7766_v5  ;;  %v540_v43 = vpop.permute.xlu1 %539  ;;  %v743_v34 = vsel %vm7606_vm5, %v6426_v51, %v6428_v48  ;;  %v4906_v51 = vld [vmem:[%s7535_s1 + $0x8] sm:$0xf] }
 0x122   :  { %v550_v25 = vsel %vm7605_vm0, %v540_v43, %v542_v18  ;;  %v745_v43 = vsel %vm7606_vm5, %v737_v3, %v739_v41  ;;  %v751_v41 = vsel %vm270_vm14, %v743_v34, 0  ;;  %v4911_v34 = vld [vmem:[%s7535_s1 + $0xc] sm:$0xf] }
 0x123   :  { %4903 = vmatmul.mubr.msk.bf16.vlgmr.msra.gmra.mxu0 %vm266_vm2, %v177_v11  ;;  %v757_v55 = vsel %vm270_vm14, %v745_v43, 0 }
 0x124   :  { %601 = vmatprep.mubr.bf16.mxu0 %v7766_v5 }
 0x125   :  { %v546_v37 = vpop.permute.xlu0 %545  ;;  %v548_v54 = vpop.permute.xlu1 %547 }
 0x126   :  { %v553_v14 = vsel %vm7605_vm0, %v546_v37, %v548_v54 }
 0x127   :  { %4909 = vmatprep.subr.msk.bf16.mxu1 %vm270_vm14, %v553_v14 }
 0x128   :  { %4905 = vmatmul.mubr.msk.bf16.vlgmr.msra.gmra.mxu1 %vm266_vm2, %v177_v11  ;;  %v558_v11 = vsel %vm270_vm14, %v550_v25, 0 }
 0x129   :  { %v915_v30 = vpop.permute.xlu0 %914  ;;  %642 = vmatprep.mubr.bf16.mxu1 %v7766_v5  ;;  %v544_v33 = vpop.permute.xlu1 %543 }
 0x12a   :  { %v552_v10 = vsel %vm7605_vm0, %v544_v33, %v546_v37  ;;  %v551_v7 = vsel %vm7605_vm0, %v542_v18, %v544_v33  ;;  %v744_v18 = vsel %vm7606_vm5, %v6428_v48, %v737_v3  ;;  %vm7608_vm0 = vcmask 908288  }
 0x12b   :  { %4907 = vmatprep.subr.msk.bf16.mxu0 %vm270_vm14, %v551_v7  ;;  %v564_v54 = vsel %vm270_vm14, %v552_v10, 0  ;;  %v923_v10 = vsel %vm7608_vm0, %v913_v58, %v915_v30  ;;  %vm7607_vm5 = vcmask 900096  }
 0x12c   :  { %584 = vmatpush1.bf16.msra.mxu0 %v558_v11  ;;  %625 = vmatpush1.bf16.msra.mxu1 %v564_v54  ;;  %v931_v43 = vsel %vm270_vm14, %v923_v10, 0 }
 0x12d   :  { %v919_v14 = vpop.permute.xlu0 %918  ;;  %4912 = vmatprep.subr.msk.bf16.mxu0 %vm270_vm14, %v744_v18  ;;  %4914 = vmatprep.subr.msk.bf16.mxu1 %vm270_vm14, %v746_v6  ;;  %v917_v37 = vpop.permute.xlu1 %916 }
 0x12e   :  { %v924_v48 = vsel %vm7608_vm0, %v915_v30, %v917_v37  ;;  %v925_v7 = vsel %vm7608_vm0, %v917_v37, %v919_v14 }
 0x12f   :  { %4908 = vmatmul.mubr.msk.bf16.vlgmr.msra.gmra.mxu0 %vm266_vm2, %v4906_v51  ;;  %v937_v18 = vsel %vm270_vm14, %v925_v7, 0 }
 0x130   :  { %4910 = vmatmul.mubr.msk.bf16.vlgmr.msra.gmra.mxu1 %vm266_vm2, %v4906_v51  ;;  %777 = vmatpush1.bf16.msra.mxu0 %v751_v41 }
 0x131   :  { %v1094_v25 = vpop.permute.xlu0 %1093  ;;  %818 = vmatpush1.bf16.msra.mxu1 %v757_v55  ;;  %4917 = vmatprep.subr.msk.bf16.mxu0 %vm270_vm14, %v924_v48  ;;  %v921_v3 = vpop.permute.xlu1 %920  ;;  %v4916_v55 = vld [vmem:[%s7535_s1 + $0x10] sm:$0xf] }
 0x132   :  { %794 = vmatprep.mubr.bf16.mxu0 %v7766_v5  ;;  %v926_v6 = vsel %vm7608_vm0, %v919_v14, %v921_v3  ;;  %835 = vmatprep.mubr.bf16.mxu1 %v7766_v5  ;;  %vm1481_vm0 = vcmask 777216  }
 0x133   :  { %4919 = vmatprep.subr.msk.bf16.mxu1 %vm270_vm14, %v926_v6 }
 0x135   :  { %v1098_v33 = vpop.permute.xlu0 %1097  ;;  %v1096_v11 = vpop.permute.xlu1 %1095 }
 0x136   :  { %v1105_v54 = vsel %vm7607_vm5, %v1096_v11, %v1098_v33  ;;  %v1104_v37 = vsel %vm7607_vm5, %v1094_v25, %v1096_v11 }
 0x137   :  { %4913 = vmatmul.mubr.msk.bf16.vlgmr.msra.gmra.mxu0 %vm266_vm2, %v4911_v34  ;;  %v1112_v6 = vsel %vm270_vm14, %v1104_v37, 0 }
 0x138   :  { %4915 = vmatmul.mubr.msk.bf16.vlgmr.msra.gmra.mxu1 %vm266_vm2, %v4911_v34  ;;  %957 = vmatpush1.bf16.msra.mxu0 %v931_v43  ;;  %v4921_v34 = vld [vmem:[%s7535_s1 + $0x14] sm:$0xf] }
 0x139   :  { %v1102_v51 = vpop.permute.xlu0 %1101  ;;  %998 = vmatpush1.bf16.msra.mxu1 %v937_v18  ;;  %4922 = vmatprep.subr.msk.bf16.mxu0 %vm270_vm14, %v1105_v54  ;;  %v1100_v58 = vpop.permute.xlu1 %1099 }
 0x13a   :  { %974 = vmatprep.mubr.bf16.mxu0 %v7766_v5  ;;  %v1107_v30 = vsel %vm7607_vm5, %v1100_v58, %v1102_v51  ;;  %1015 = vmatprep.mubr.bf16.mxu1 %v7766_v5  ;;  %v1106_v41 = vsel %vm7607_vm5, %v1098_v33, %v1100_v58  ;;  %vm7609_vm5 = vcmask 785408  }
 0x13b   :  { %4924 = vmatprep.subr.msk.bf16.mxu1 %vm270_vm14, %v1107_v30  ;;  %v1118_v3 = vsel %vm270_vm14, %v1106_v41, 0 }
 0x13d   :  { %v1472_v14 = vpop.permute.xlu0 %1471  ;;  %v1291_v48 = vpop.permute.xlu1 %1290 }
 0x13f   :  { %4918 = vmatmul.mubr.msk.bf16.vlgmr.msra.gmra.mxu0 %vm266_vm2, %v4916_v55 }
 0x140   :  { %4920 = vmatmul.mubr.msk.bf16.vlgmr.msra.gmra.mxu1 %vm266_vm2, %v4916_v55  ;;  %1138 = vmatpush1.bf16.msra.mxu0 %v1112_v6 }
 0x141   :  { %v1293_v10 = vpop.permute.xlu0 %1292  ;;  %1179 = vmatpush1.bf16.msra.mxu1 %v1118_v3  ;;  %v1299_v7 = vpop.permute.xlu1 %1298  ;;  %1155 = vmatprep.mubr.bf16.mxu0 %v7766_v5  ;;  %v4926_v3 = vld [vmem:[%s7535_s1 + $0x18] sm:$0xf] }
 0x142   :  { %1196 = vmatprep.mubr.bf16.mxu1 %v7766_v5  ;;  %v1301_v43 = vsel %vm7609_vm5, %v1291_v48, %v1293_v10 }
 0x143   :  { %v1309_v37 = vsel %vm270_vm14, %v1301_v43, 0 }
 0x145   :  { %v1297_v25 = vpop.permute.xlu0 %1296  ;;  %v1474_v11 = vpop.permute.xlu1 %1473 }
 0x146   :  { %v1304_v33 = vsel %vm7609_vm5, %v1297_v25, %v1299_v7  ;;  %v1482_v48 = vsel %vm1481_vm0, %v1472_v14, %v1474_v11 }
 0x147   :  { %4929 = vmatprep.subr.msk.bf16.mxu1 %vm270_vm14, %v1304_v33  ;;  %4923 = vmatmul.mubr.msk.bf16.vlgmr.msra.gmra.mxu0 %vm266_vm2, %v4921_v34 }
 0x148   :  { %4925 = vmatmul.mubr.msk.bf16.vlgmr.msra.gmra.mxu1 %vm266_vm2, %v4921_v34  ;;  %1352 = vmatprep.mubr.bf16.mxu0 %v7766_v5 }
 0x149   :  { %v1476_v54 = vpop.permute.xlu0 %1475  ;;  %1393 = vmatprep.mubr.bf16.mxu1 %v7766_v5  ;;  %v1295_v18 = vpop.permute.xlu1 %1294 }
 0x14a   :  { %v1302_v51 = vsel %vm7609_vm5, %v1293_v10, %v1295_v18  ;;  %v1303_v58 = vsel %vm7609_vm5, %v1295_v18, %v1297_v25  ;;  %v1483_v30 = vsel %vm1481_vm0, %v1474_v11, %v1476_v54  ;;  %v1490_v25 = vsel %vm270_vm14, %v1482_v48, 0  ;;  %v4931_v11 = vld [vmem:[%s7535_s1 + $0x1c] sm:$0xf]  ;;  %v4936_v48 = vld [vmem:[%s7535_s1 + $0x20] sm:$0xf] }
 0x14b   :  { %v1315_v41 = vsel %vm270_vm14, %v1303_v58, 0  ;;  %4927 = vmatprep.subr.msk.bf16.mxu0 %vm270_vm14, %v1302_v51  ;;  %vm1662_vm5 = vcmask 769024  }
 0x14c   :  { %1335 = vmatpush1.bf16.msra.mxu0 %v1309_v37  ;;  %1376 = vmatpush1.bf16.msra.mxu1 %v1315_v41 }
 0x14d   :  { %v1480_v55 = vpop.permute.xlu0 %1479  ;;  %4932 = vmatprep.subr.msk.bf16.mxu0 %vm270_vm14, %v1483_v30  ;;  %v1478_v6 = vpop.permute.xlu1 %1477 }
 0x14e   :  { %v1484_v10 = vsel %vm1481_vm0, %v1476_v54, %v1478_v6  ;;  %v1485_v7 = vsel %vm1481_vm0, %v1478_v6, %v1480_v55 }
 0x14f   :  { %4928 = vmatmul.mubr.msk.bf16.vlgmr.msra.gmra.mxu0 %vm266_vm2, %v4926_v3  ;;  %v1496_v33 = vsel %vm270_vm14, %v1484_v10, 0  ;;  %4934 = vmatprep.subr.msk.bf16.mxu1 %vm270_vm14, %v1485_v7 }
 0x150   :  { %4930 = vmatmul.mubr.msk.bf16.vlgmr.msra.gmra.mxu1 %vm266_vm2, %v4926_v3  ;;  %1516 = vmatpush1.bf16.msra.mxu0 %v1490_v25 }
 0x151   :  { %v1655_v14 = vpop.permute.xlu0 %1654  ;;  %v1653_v34 = vpop.permute.xlu1 %1652  ;;  %1557 = vmatpush1.bf16.msra.mxu1 %v1496_v33  ;;  %1533 = vmatprep.mubr.bf16.mxu0 %v7766_v5 }
 0x152   :  { %1574 = vmatprep.mubr.bf16.mxu1 %v7766_v5  ;;  %v1663_v54 = vsel %vm1662_vm5, %v1653_v34, %v1655_v14 }
 0x153   :  { %v1671_v58 = vsel %vm270_vm14, %v1663_v54, 0 }
 0x155   :  { %v1657_v43 = vpop.permute.xlu1 %1656  ;;  %v1659_v18 = vpop.permute.xlu0 %1658 }
 0x156   :  { %v1664_v51 = vsel %vm1662_vm5, %v1655_v14, %v1657_v43  ;;  %v1665_v30 = vsel %vm1662_vm5, %v1657_v43, %v1659_v18 }
 0x157   :  { %4933 = vmatmul.mubr.msk.bf16.vlgmr.msra.gmra.mxu0 %vm266_vm2, %v4931_v11  ;;  %4937 = vmatprep.subr.msk.bf16.mxu0 %vm270_vm14, %v1664_v51  ;;  %v1677_v55 = vsel %vm270_vm14, %v1665_v30, 0 }
 0x158   :  { %4935 = vmatmul.mubr.msk.bf16.vlgmr.msra.gmra.mxu1 %vm266_vm2, %v4931_v11  ;;  %1714 = vmatprep.mubr.bf16.mxu0 %v7766_v5 }
 0x159   :  { %1697 = vmatpush1.bf16.msra.mxu0 %v1671_v58  ;;  %v1661_v37 = vpop.permute.xlu1 %1660  ;;  %1755 = vmatprep.mubr.bf16.mxu1 %v7766_v5 }
 0x15a   :  { %v1666_v41 = vsel %vm1662_vm5, %v1659_v18, %v1661_v37 }
 0x15b   :  { %4939 = vmatprep.subr.msk.bf16.mxu1 %vm270_vm14, %v1666_v41  ;;  %vm7773_vm14 = vcmp.ne.s16.totalorder %v6226_v59, 0 }
 0x15c   :  { %1738 = vmatpush1.bf16.msra.mxu1 %v1677_v55 }
 0x15f   :  { %4938 = vmatmul.mubr.msk.bf16.vlgmr.msra.gmra.mxu0 %vm266_vm2, %v4936_v48 }
 0x160   :  { %4940 = vmatmul.mubr.msk.bf16.vlgmr.msra.gmra.mxu1 %vm266_vm2, %v4936_v48  ;;  %1901 = vmatprep.mubr.bf16.mxu0 %v7766_v5 }
 0x161   :  { %1944 = vmatprep.mubr.bf16.mxu1 %v7766_v5 }
 0x1db   :  { %v317_v3 = vpop.f32.mrf.mxu0 }
 0x1dd   :  { %v319_v6 = vpop.f32.mrf.mxu0 }
 0x1df   :  { %v321_v10 = vpop.f32.mrf.mxu0 }
 0x1e0   :  { %v358_v7 = vpop.f32.mrf.mxu1 }
 0x1e1   :  { %v322_v25 = vpop.f32.mrf.mxu0 }
 0x1e2   :  { %v360_v14 = vpop.f32.mrf.mxu1 }
 0x1e3   :  { %v414_v33 = vpop.f32.mrf.mxu0 }
 0x1e4   :  { %v362_v34 = vpop.f32.mrf.mxu1  ;;  %v415_v39 = vadd.f32 %v414_v33, %v317_v3 }
 0x1e5   :  { %v416_v11 = vpop.f32.mrf.mxu0 }
 0x1e6   :  { %v363_v54 = vpop.f32.mrf.mxu1 }
 0x1e7   :  { %v418_v43 = vpop.f32.mrf.mxu0 }
 0x1e8   :  { %v455_v18 = vpop.f32.mrf.mxu1 }
 0x1e9   :  { %v419_v51 = vpop.f32.mrf.mxu0  ;;  %v456_v62 = vadd.f32 %v455_v18, %v358_v7 }
 0x1ea   :  { %v457_v58 = vpop.f32.mrf.mxu1 }
 0x1ec   :  { %v459_v30 = vpop.f32.mrf.mxu1 }
 0x1ee   :  { %v460_v37 = vpop.f32.mrf.mxu1 }
 0x1ef   :  { %v603_v41 = vpop.f32.mrf.mxu0 }
 0x1f0   :  { %v644_v55 = vpop.f32.mrf.mxu1 }
 0x1f1   :  { %v605_v48 = vpop.f32.mrf.mxu0 }
 0x1f2   :  { %v646_v5 = vpop.f32.mrf.mxu1 }
 0x1f3   :  { %v607_v29 = vpop.f32.mrf.mxu0 }
 0x1f4   :  { %v648_v22 = vpop.f32.mrf.mxu1 }
 0x1f5   :  { %v608_v10 = vpop.f32.mrf.mxu0 }
 0x1f6   :  { %v649_v47 = vpop.f32.mrf.mxu1 }
 0x1f7   :  { %v796_v25 = vpop.f32.mrf.mxu0 }
 0x1f8   :  { %v837_v26 = vpop.f32.mrf.mxu1 }
 0x1f9   :  { %v798_v35 = vpop.f32.mrf.mxu0 }
 0x1fa   :  { %v839_v34 = vpop.f32.mrf.mxu1 }
 0x1fb   :  { %v800_v38 = vpop.f32.mrf.mxu0 }
 0x1fc   :  { %v841_v54 = vpop.f32.mrf.mxu1 }
 0x1fd   :  { %v801_v43 = vpop.f32.mrf.mxu0 }
 0x1fe   :  { %v842_v63 = vpop.f32.mrf.mxu1 }
 0x1ff   :  { %v976_v51 = vpop.f32.mrf.mxu0 }
 0x200   :  { %v1017_v50 = vpop.f32.mrf.mxu1 }
 0x201   :  { %v978_v30 = vpop.f32.mrf.mxu0 }
 0x202   :  { %v1019_v37 = vpop.f32.mrf.mxu1 }
 0x203   :  { %v980_v17 = vpop.f32.mrf.mxu0 }
 0x204   :  { %v1021_v57 = vpop.f32.mrf.mxu1  ;;  %v417_v17 = vadd.f32 %v416_v11, %v319_v6 }
 0x205   :  { %v981_v60 = vpop.f32.mrf.mxu0  ;;  %v458_v57 = vadd.f32 %v457_v58, %v360_v14 }
 0x206   :  { %v1022_v4 = vpop.f32.mrf.mxu1  ;;  %v651_v60 = vadd.f32 %v603_v41, %v415_v39  ;;  %v652_v0 = vadd.f32 %v605_v48, %v417_v17 }
 0x207   :  { %v1157_v29 = vpop.f32.mrf.mxu0  ;;  %v653_v4 = vadd.f32 %v644_v55, %v456_v62  ;;  %v654_v56 = vadd.f32 %v646_v5, %v458_v57 }
 0x208   :  { %v1198_v22 = vpop.f32.mrf.mxu1  ;;  %v845_v31 = vadd.f32 %v798_v35, %v652_v0  ;;  %v1772_v35 = vpop.permute.xlu0 %1771 }
 0x209   :  { %v1159_v10 = vpop.f32.mrf.mxu0  ;;  %v847_v27 = vadd.f32 %v839_v34, %v654_v56 }
 0x20a   :  { %v1200_v47 = vpop.f32.mrf.mxu1 }
 0x20b   :  { %v1161_v28 = vpop.f32.mrf.mxu0 }
 0x20c   :  { %v1202_v49 = vpop.f32.mrf.mxu1  ;;  %v844_v28 = vadd.f32 %v796_v25, %v651_v60 }
 0x20d   :  { %v1162_v12 = vpop.f32.mrf.mxu0  ;;  %v846_v49 = vadd.f32 %v837_v26, %v653_v4 }
 0x20e   :  { %v1203_v53 = vpop.f32.mrf.mxu1  ;;  %v1024_v19 = vadd.f32 %v976_v51, %v844_v28 }
 0x20f   :  { %v1354_v38 = vpop.f32.mrf.mxu0  ;;  %v1026_v36 = vadd.f32 %v1017_v50, %v846_v49 }
 0x210   :  { %v1395_v54 = vpop.f32.mrf.mxu1  ;;  %v1205_v6 = vadd.f32 %v1157_v29, %v1024_v19 }
 0x211   :  { %v1356_v43 = vpop.f32.mrf.mxu0  ;;  %v1207_v14 = vadd.f32 %v1198_v22, %v1026_v36 }
 0x212   :  { %v1397_v63 = vpop.f32.mrf.mxu1  ;;  %v1402_v33 = vadd.f32 %v1354_v38, %v1205_v6 }
 0x213   :  { %v1358_v20 = vpop.f32.mrf.mxu0  ;;  %v1404_v5 = vadd.f32 %v1395_v54, %v1207_v14 }
 0x214   :  { %v1399_v16 = vpop.f32.mrf.mxu1  ;;  %v1025_v20 = vadd.f32 %v978_v30, %v845_v31 }
 0x215   :  { %v1359_v52 = vpop.f32.mrf.mxu0  ;;  %v1027_v16 = vadd.f32 %v1019_v37, %v847_v27 }
 0x216   :  { %v1400_v61 = vpop.f32.mrf.mxu1  ;;  %v1206_v52 = vadd.f32 %v1159_v10, %v1025_v20 }
 0x217   :  { %v1535_v12 = vpop.f32.mrf.mxu0  ;;  %v1208_v61 = vadd.f32 %v1200_v47, %v1027_v16 }
 0x218   :  { %v1576_v53 = vpop.f32.mrf.mxu1  ;;  %v1403_v18 = vadd.f32 %v1356_v43, %v1206_v52  ;;  %v1583_v0 = vadd.f32 %v1535_v12, %v1402_v33  ;;  %v7778_v33 = vld [vmem:[#allocation6_spill] sm:$0xff] }
 0x219   :  { %v1537_v3 = vpop.f32.mrf.mxu0  ;;  %v1405_v58 = vadd.f32 %v1397_v63, %v1208_v61  ;;  %v1585_v56 = vadd.f32 %v1576_v53, %v1404_v5 }
 0x21a   :  { %v1578_v7 = vpop.f32.mrf.mxu1  ;;  %v1584_v55 = vadd.f32 %v1537_v3, %v1403_v18  ;;  %v7784_v18 = vld [vmem:[#allocation11_spill] sm:$0xff] }
 0x21b   :  { %v1539_v39 = vpop.f32.mrf.mxu0  ;;  %v1586_v31 = vadd.f32 %v1578_v7, %v1405_v58 }
 0x21c   :  { %v1580_v62 = vpop.f32.mrf.mxu1 }
 0x21d   :  { %v1540_v11 = vpop.f32.mrf.mxu0 }
 0x21e   :  { %v1581_v26 = vpop.f32.mrf.mxu1  ;;  %v7782_v11 = vld [vmem:[#allocation8_spill] sm:$0xff] }
 0x21f   :  { %v1716_v50 = vpop.f32.mrf.mxu0 }
 0x220   :  { %v1757_v41 = vpop.f32.mrf.mxu1  ;;  %v1764_v27 = vadd.f32 %v1716_v50, %v1583_v0  ;;  %v7786_v0 = vld [vmem:[#allocation14_spill] sm:$0xff] }
 0x221   :  { %v1766_v19 = vadd.f32 %v1757_v41, %v1585_v56  ;;  %v1718_v36 = vpop.f32.mrf.mxu0  ;;  %v7790_v41 = vld [vmem:[#allocation10_spill] sm:$0xff] }
 0x222   :  { %v1759_v48 = vpop.f32.mrf.mxu1  ;;  %v1774_v25 = vadd.f32 %v1772_v35, %v1764_v27  ;;  %v1765_v51 = vadd.f32 %v1718_v36, %v1584_v55 }
 0x223   :  { %v1776_v34 = vadd.f32 %v1772_v35, %v1766_v19  ;;  %v1767_v30 = vadd.f32 %v1759_v48, %v1586_v31  ;;  %v1720_v37 = vpop.f32.mrf.mxu0  ;;  %v7792_v31 = vld [vmem:[#allocation15_spill] sm:$0xff]  ;;  %v7794_v19 = vld [vmem:[#allocation16_spill] sm:$0xff]  ;;  %v7796_v48 = vld [vmem:[#allocation13_spill] sm:$0xff] }
 0x224   :  { %v1761_v29 = vpop.f32.mrf.mxu1  ;;  %v1775_v22 = vadd.f32 %v1772_v35, %v1765_v51  ;;  %v1778_v47 = vmax.f32 %v1774_v25, 0.0 }
 0x225   :  { %v1777_v10 = vadd.f32 %v1772_v35, %v1767_v30  ;;  %v1780_v38 = vmax.f32 %v1776_v34, 0.0  ;;  %v1721_v54 = vpop.f32.mrf.mxu0  ;;  %v7788_v35 = vld [vmem:[#allocation12_spill] sm:$0xff]  ;;  %v7798_v34 = vld [vmem:[#allocation18_spill] sm:$0xff]  ;;  %v7800_v30 = vld [vmem:[#allocation19_spill] sm:$0xff] }
 0x226   :  { %v1762_v43 = vpop.f32.mrf.mxu1  ;;  %v1779_v63 = vmax.f32 %v1775_v22, 0.0  ;;  %v1786_v57 = vpack.c.bf16 %v1778_v47, %v1778_v47  ;;  %1782 = vst [vmem:[%s7536_s11] sm:$0xff] %v1778_v47  ;;  %v7802_v29 = vld [vmem:[#allocation24_spill] sm:$0xff] }
 0x227   :  { %v1781_v17 = vmax.f32 %v1777_v10, 0.0  ;;  %v1788_v60 = vpack.c.bf16 %v1780_v38, %v1780_v38  ;;  %1784 = vst [vmem:[%s7536_s11 + $0x10] sm:$0xff] %v1780_v38  ;;  %v7804_v10 = vld [vmem:[#allocation20_spill] sm:$0xff]  ;;  %v7806_v38 = vld [vmem:[#allocation17_spill] sm:$0xff]  ;;  %v7808_v43 = vld [vmem:[#allocation23_spill] sm:$0xff] }
 0x228   :  { %1783 = vst [vmem:[%s7536_s11 + $0x8] sm:$0xff] %v1779_v63  ;;  %1794 = vrot.lane.b32.xlu1 %v1786_v57, %s5576_s0  ;;  %v1787_v4 = vpack.c.bf16 %v1779_v63, %v1779_v63 }
 0x229   :  { %1785 = vst [vmem:[%s7536_s11 + $0x18] sm:$0xff] %v1781_v17  ;;  %1798 = vrot.lane.b32.xlu0 %v1788_v60, %s5576_s0  ;;  %v1789_v28 = vpack.c.bf16 %v1781_v17, %v1781_v17  ;;  %v7810_v17 = vld [vmem:[#allocation22_spill] sm:$0xff]  ;;  %v7812_v60 = vld [vmem:[#allocation21_spill] sm:$0xff]  ;;  %s7893_s11 = smov 2  }
 0x22c   :  { %1796 = vrot.lane.b32.xlu1 %v1787_v4, %s5576_s0 }
 0x230   :  { %1800 = vrot.lane.b32.xlu1 %v1789_v28, %s5576_s0  ;;  %v7814_v28 = vld [vmem:[#allocation25_spill] sm:$0xff] }
 0x29a   :  { %v1795_v49 = vpop.permute.xlu1 %1794 }
 0x29b   :  { %v6619_v12 = vsel %vm73_vm7, 0, %v1795_v49  ;;  %v1799_v20 = vpop.permute.xlu0 %1798 }
 0x29c   :  { %v2061_v53 = vsel %vm522_vm10, %v6619_v12, 0  ;;  %v1820_v3 = vsel %vm234_vm4, %v6619_v12, 0  ;;  %v2343_v16 = vsel %vm895_vm11, %v6619_v12, 0  ;;  %v2202_v6 = vsel %vm715_vm13, %v6619_v12, 0 }
 0x29d   :  { %2079 = vrot.lane.b32.xlu1 %v2061_v53, %s5587_s30  ;;  %1838 = vrot.lane.b32.xlu0 %v1820_v3, %s5585_s28  ;;  %vm7767_vm13 = vcmp.ne.s16.totalorder %v6160_v42, 0  ;;  %vm7769_vm4 = vcmp.ne.s16.totalorder %v6249_v1, 0  ;;  %vm7774_vm11 = vcmp.ne.s16.totalorder %v6202_v46, 0  ;;  %vm7775_vm10 = vcmp.ne.s16.totalorder %v6095_v15, 0  ;;  %v7780_v46 = vld [vmem:[#allocation7_spill] sm:$0xff]  ;;  %v7816_v53 = vld [vmem:[#allocation26_spill] sm:$0xff] }
 0x29e   :  { %v1797_v7 = vpop.permute.xlu1 %1796  ;;  %v2625_v61 = vsel %vm7769_vm4, %v6619_v12, 0  ;;  %vm7783_vm4 = vcmp.ne.s16.totalorder %v7782_v11, 0 }
 0x29f   :  { %v6636_v8 = vsel %vm73_vm7, %v1795_v49, %v1797_v7  ;;  %v6639_v2 = vsel %vm73_vm7, %v1797_v7, %v1799_v20  ;;  %v7818_v7 = vld [vmem:[#allocation29_spill] sm:$0xff] }
 0x2a0   :  { %v1822_v32 = vsel %vm236_vm1, %v6639_v2, 0  ;;  %v1821_v13 = vsel %vm235_vm6, %v6636_v8, 0  ;;  %vm7771_vm6 = vcmp.ne.s16.totalorder %v6354_v23, 0  ;;  %vm7772_vm1 = vcmp.ne.s16.totalorder %v6183_v40, 0  ;;  %v7776_v40 = vld [vmem:[#allocation9_spill] sm:$0xff] }
 0x2a1   :  { %2361 = vrot.lane.b32.xlu1 %v2343_v16, %s5586_s29  ;;  %2220 = vrot.lane.b32.xlu0 %v2202_v6, %s5584_s27  ;;  %v2907_v42 = vsel %vm7771_vm6, %v6619_v12, 0  ;;  %v2063_v1 = vsel %vm7773_vm14, %v6639_v2, 0  ;;  %vm7777_vm2 = vcmp.ne.s16.totalorder %v7776_v40, 0  ;;  %vm7787_vm6 = vcmp.ne.s16.totalorder %v7786_v0, 0  ;;  %v7820_v16 = vld [vmem:[#allocation28_spill] sm:$0xff] }
 0x2a2   :  { %v1801_v14 = vpop.permute.xlu1 %1800  ;;  %v2204_v59 = vsel %vm7777_vm2, %v6639_v2, 0  ;;  %v2345_v56 = vsel %vm7787_vm6, %v6639_v2, 0  ;;  %vm7791_vm14 = vcmp.ne.s16.totalorder %v7790_v41, 0  ;;  %vm7797_vm2 = vcmp.ne.s16.totalorder %v7796_v48, 0 }
 0x2a3   :  { %v6650_v39 = vsel %vm73_vm7, %v1799_v20, %v1801_v14  ;;  %v6653_v62 = vsel %vm73_vm7, %v1801_v14, 0  ;;  %vm7768_vm7 = vcmp.ne.s16.totalorder %v6194_v45, 0  ;;  %v2062_v45 = vsel %vm7772_vm1, %v6636_v8, 0  ;;  %v7822_v14 = vld [vmem:[#allocation27_spill] sm:$0xff] }
 0x2a4   :  { %v1824_v52 = vsel %vm238_vm15, %v6653_v62, 0  ;;  %v1823_v24 = vsel %vm7767_vm13, %v6650_v39, 0  ;;  %v2484_v21 = vsel %vm7768_vm7, %v6619_v12, 0  ;;  %vm7770_vm15 = vcmp.ne.s16.totalorder %v6294_v44, 0 }
 0x2a5   :  { %1842 = vrot.lane.b32.xlu0 %v1822_v32, %s5585_s28  ;;  %1840 = vrot.lane.b32.xlu1 %v1821_v13, %s5585_s28  ;;  %v2766_v9 = vsel %vm7770_vm15, %v6619_v12, 0  ;;  %v2064_v44 = vsel %vm7774_vm11, %v6650_v39, 0  ;;  %v2065_v23 = vsel %vm7775_vm10, %v6653_v62, 0  ;;  %vm7779_vm13 = vcmp.ne.s16.totalorder %v7778_v33, 0  ;;  %v3048_v13 = vld [vmem:[%s7538_s4] sm:$0xff] }
 0x2a6   :  { %v2203_v5 = vsel %vm7779_vm13, %v6636_v8, 0  ;;  %vm7781_vm7 = vcmp.ne.s16.totalorder %v7780_v46, 0  ;;  %v2205_v26 = vsel %vm7783_vm4, %v6650_v39, 0  ;;  %vm7785_vm15 = vcmp.ne.s16.totalorder %v7784_v18, 0 }
 0x2a7   :  { %v2206_v15 = vsel %vm7781_vm7, %v6653_v62, 0  ;;  %v2344_v58 = vsel %vm7785_vm15, %v6636_v8, 0  ;;  %vm7789_vm1 = vcmp.ne.s16.totalorder %v7788_v35, 0  ;;  %v2347_v55 = vsel %vm7791_vm14, %v6653_v62, 0 }
 0x2a8   :  { %v2346_v50 = vsel %vm7789_vm1, %v6650_v39, 0  ;;  %vm7793_vm11 = vcmp.ne.s16.totalorder %v7792_v31, 0  ;;  %vm7795_vm10 = vcmp.ne.s16.totalorder %v7794_v19, 0  ;;  %v2488_v25 = vsel %vm7797_vm2, %v6653_v62, 0 }
 0x2a9   :  { %1846 = vrot.lane.b32.xlu0 %v1824_v52, %s5585_s28  ;;  %1844 = vrot.lane.b32.xlu1 %v1823_v24, %s5585_s28  ;;  %v2486_v27 = vsel %vm7793_vm11, %v6639_v2, 0  ;;  %v2485_v36 = vsel %vm7795_vm10, %v6636_v8, 0  ;;  %vm7799_vm13 = vcmp.ne.s16.totalorder %v7798_v34, 0  ;;  %vm7801_vm7 = vcmp.ne.s16.totalorder %v7800_v30, 0  ;;  %v3049_v52 = vld [vmem:[%s7538_s4 + $0x8] sm:$0xff]  ;;  %v5545_v34 = vld [vmem:[%s7537_s3 + $0x10] sm:$0xff]  }
 0x2aa   :  { %v2487_v51 = vsel %vm7799_vm13, %v6650_v39, 0  ;;  %v2626_v37 = vsel %vm7801_vm7, %v6636_v8, 0  ;;  %vm7803_vm4 = vcmp.ne.s16.totalorder %v7802_v29, 0  ;;  %vm7805_vm15 = vcmp.ne.s16.totalorder %v7804_v10, 0 }
 0x2ab   :  { %v2627_v22 = vsel %vm7803_vm4, %v6639_v2, 0  ;;  %v2628_v47 = vsel %vm7805_vm15, %v6650_v39, 0  ;;  %vm7807_vm6 = vcmp.ne.s16.totalorder %v7806_v38, 0  ;;  %vm7809_vm1 = vcmp.ne.s16.totalorder %v7808_v43, 0 }
 0x2ac   :  { %v2629_v54 = vsel %vm7807_vm6, %v6653_v62, 0  ;;  %v2768_v63 = vsel %vm7809_vm1, %v6639_v2, 0  ;;  %vm7811_vm14 = vcmp.ne.s16.totalorder %v7810_v17, 0  ;;  %vm7813_vm11 = vcmp.ne.s16.totalorder %v7812_v60, 0 }
 0x2ad   :  { %2502 = vrot.lane.b32.xlu0 %v2484_v21, %s5588_s16  ;;  %2643 = vrot.lane.b32.xlu1 %v2625_v61, %s5590_s18  ;;  %v2767_v57 = vsel %vm7811_vm14, %v6636_v8, 0  ;;  %v2770_v4 = vsel %vm7813_vm11, %v6653_v62, 0  ;;  %vm7815_vm10 = vcmp.ne.s16.totalorder %v7814_v28, 0  ;;  %vm7817_vm2 = vcmp.ne.s16.totalorder %v7816_v53, 0 }
 0x2ae   :  { %v2769_v49 = vsel %vm7815_vm10, %v6650_v39, 0  ;;  %v2908_v3 = vsel %vm7817_vm2, %v6636_v8, 0  ;;  %vm7819_vm13 = vcmp.ne.s16.totalorder %v7818_v7, 0  ;;  %vm7821_vm7 = vcmp.ne.s16.totalorder %v7820_v16, 0  ;;  %v5547_v16 = vld [vmem:[%s7537_s3 + $0x20] sm:$0xff]  }
 0x2af   :  { %v2909_v20 = vsel %vm7819_vm13, %v6639_v2, 0  ;;  %v2910_v6 = vsel %vm7821_vm7, %v6650_v39, 0  ;;  %vm7823_vm4 = vcmp.ne.s16.totalorder %v7822_v14, 0  ;;  %vm1856_vm15 = vcmask 1043456  }
 0x2b0   :  { %v2911_v32 = vsel %vm7823_vm4, %v6653_v62, 0  ;;  %vm7824_vm6 = vcmask 1039360   ;;  %vm1852_vm14 = vcmask 64512   ;;  %v7832_v41 = vmov 0  }
 0x2b1   :  { %2784 = vrot.lane.b32.xlu0 %v2766_v9, %s5589_s17  ;;  %2925 = vrot.lane.b32.xlu1 %v2907_v42, %s5591_s19  ;;  %vm7825_vm1 = vmmov %vm7824_vm6  ;;  %vm7837_vm2 = vcmask 916480  }
 0x2b2   :  { %vm7828_vm11 = vmmov %vm7825_vm1 }
 0x2b3   :  { %vm7829_vm10 = vmmov %vm7825_vm1 }
 0x2b4   :  { %vm7838_vm13 = vmmov %vm7837_vm2 }
 0x2b5   :  { %2081 = vrot.lane.b32.xlu0 %v2062_v45, %s5587_s30  ;;  %2083 = vrot.lane.b32.xlu1 %v2063_v1, %s5587_s30  ;;  %vm7839_vm7 = vmmov %vm7837_vm2 }
 0x2b6   :  { %vm7840_vm4 = vmmov %vm7837_vm2 }
 0x2b9   :  { %2085 = vrot.lane.b32.xlu0 %v2064_v44, %s5587_s30  ;;  %2087 = vrot.lane.b32.xlu1 %v2065_v23, %s5587_s30  ;;  %v5543_v23 = vld [vmem:[%s7537_s3 + $0x8] sm:$0xff]  }
 0x2bd   :  { %2224 = vrot.lane.b32.xlu0 %v2204_v59, %s5584_s27  ;;  %2222 = vrot.lane.b32.xlu1 %v2203_v5, %s5584_s27  ;;  %v1815_v59 = vsel %vm6436_vm12, %v6636_v8, 0  ;;  %v1814_v5 = vsel %vm6440_vm9, %v6619_v12, 0 }
 0x2be   :  { %v1964_v8 = vsel %vm1856_vm15, %v1814_v5, 0 }
 0x2c1   :  { %2228 = vrot.lane.b32.xlu0 %v2206_v15, %s5584_s27  ;;  %2226 = vrot.lane.b32.xlu1 %v2205_v26, %s5584_s27 }
 0x2c5   :  { %2363 = vrot.lane.b32.xlu0 %v2344_v58, %s5586_s29  ;;  %2365 = vrot.lane.b32.xlu1 %v2345_v56, %s5586_s29  ;;  %v1817_v58 = vsel %vm6463_vm3, %v6650_v39, 0  ;;  %v1816_v56 = vsel %vm6468_vm8, %v6639_v2, 0  ;;  %v5544_v39 = vld [vmem:[%s7537_s3] sm:$0xff]   ;;  %vm7833_vm8 = vcmask 1031168  }
 0x2c6   :  { %vm7834_vm3 = vmmov %vm7833_vm8 }
 0x2c7   :  { %vm7835_vm9 = vmmov %vm7834_vm3 }
 0x2c8   :  { %vm7836_vm12 = vmmov %vm7834_vm3 }
 0x2c9   :  { %2367 = vrot.lane.b32.xlu0 %v2346_v50, %s5586_s29  ;;  %2369 = vrot.lane.b32.xlu1 %v2347_v55, %s5586_s29  ;;  %v1970_v55 = vsel %vm1856_vm15, %v1816_v56, 0 }
 0x2cd   :  { %2506 = vrot.lane.b32.xlu0 %v2486_v27, %s5588_s16  ;;  %2504 = vrot.lane.b32.xlu1 %v2485_v36, %s5588_s16 }
 0x2d1   :  { %2510 = vrot.lane.b32.xlu0 %v2488_v25, %s5588_s16  ;;  %2508 = vrot.lane.b32.xlu1 %v2487_v51, %s5588_s16 }
 0x2d5   :  { %2645 = vrot.lane.b32.xlu0 %v2626_v37, %s5590_s18  ;;  %2647 = vrot.lane.b32.xlu1 %v2627_v22, %s5590_s18 }
 0x2d9   :  { %2649 = vrot.lane.b32.xlu0 %v2628_v47, %s5590_s18  ;;  %2651 = vrot.lane.b32.xlu1 %v2629_v54, %s5590_s18 }
 0x2dd   :  { %2788 = vrot.lane.b32.xlu0 %v2768_v63, %s5589_s17  ;;  %2786 = vrot.lane.b32.xlu1 %v2767_v57, %s5589_s17  ;;  %v5546_v63 = vld [vmem:[%s7537_s3 + $0x18] sm:$0xff]  }
 0x2e1   :  { %2792 = vrot.lane.b32.xlu0 %v2770_v4, %s5589_s17  ;;  %2790 = vrot.lane.b32.xlu1 %v2769_v49, %s5589_s17 }
 0x2e5   :  { %2927 = vrot.lane.b32.xlu0 %v2908_v3, %s5591_s19  ;;  %2929 = vrot.lane.b32.xlu1 %v2909_v20, %s5591_s19 }
 0x2e9   :  { %2931 = vrot.lane.b32.xlu0 %v2910_v6, %s5591_s19  ;;  %2933 = vrot.lane.b32.xlu1 %v2911_v32, %s5591_s19 }
 0x2ed   :  { %3052 = vperm.xlu0 %5540, %v3048_v13   ;;  %3057 = vperm.xlu1 %5541, %v3049_v52  }
 0x30f   :  { %v1839_v24 = vpop.permute.xlu0 %1838  ;;  %v2080_v21 = vpop.permute.xlu1 %2079 }
 0x313   :  { %v2221_v61 = vpop.permute.xlu0 %2220  ;;  %v6799_v9 = vpop.permute.xlu1 %2361 }
 0x317   :  { %v1843_v62 = vpop.permute.xlu0 %1842  ;;  %v1841_v42 = vpop.permute.xlu1 %1840 }
 0x318   :  { %v1848_v45 = vsel %vm7824_vm6, %v1839_v24, %v1841_v42  ;;  %v1849_v1 = vsel %vm7825_vm1, %v1841_v42, %v1843_v62  ;;  %vm7841_vm6 = vcmask 908288   ;;  %v5548_v42 = vld [vmem:[%s7537_s3 + $0x28] sm:$0xff]  }
 0x319   :  { %v1858_v44 = vsel %vm1856_vm15, %v1848_v45, 0  ;;  %4944 = vmatprep.subr.msk.bf16.mxu0 %vm1856_vm15, %v1849_v1  ;;  %vm7842_vm1 = vmmov %vm7841_vm6 }
 0x31a   :  { %1884 = vmatpush1.bf16.msra.mxu0 %v1858_v44 }
 0x31b   :  { %v1847_v46 = vpop.permute.xlu0 %1846  ;;  %4949 = vmatprep.subr.msk.bf16.mxu0 %vm1856_vm15, %v1815_v59  ;;  %v1845_v15 = vpop.permute.xlu1 %1844 }
 0x31c   :  { %v1850_v11 = vsel %vm7828_vm11, %v1843_v62, %v1845_v15  ;;  %v1851_v26 = vsel %vm7829_vm10, %v1845_v15, %v1847_v46  ;;  %vm7843_vm11 = vmmov %vm7842_vm1 }
 0x31d   :  { %v1864_v18 = vsel %vm1856_vm15, %v1850_v11, 0  ;;  %4945 = vmatmul.mubr.msk.bf16.vlgmr.msra.gmra.mxu0 %vm1852_vm14, %v5543_v23  ;;  %4946 = vmatprep.subr.msk.bf16.mxu1 %vm1856_vm15, %v1851_v26  ;;  %vm7844_vm10 = vmmov %vm7842_vm1  ;;  %v5549_v11 = vld [vmem:[%s7537_s3 + $0x30] sm:$0xff]  }
 0x31e   :  { %1927 = vmatpush1.bf16.msra.mxu1 %v1864_v18  ;;  %1990 = vmatpush1.bf16.msra.mxu0 %v1964_v8 }
 0x31f   :  { %v6827_v35 = vpop.permute.xlu0 %2502  ;;  %4951 = vmatprep.subr.msk.bf16.mxu1 %vm1856_vm15, %v1817_v58  ;;  %v6830_v50 = vpop.permute.xlu1 %2643  ;;  %2007 = vmatprep.mubr.bf16.mxu0 %v7832_v41 }
 0x321   :  { %4947 = vmatmul.mubr.msk.bf16.vlgmr.msra.gmra.mxu1 %vm1852_vm14, %v5543_v23 }
 0x322   :  { %2033 = vmatpush1.bf16.msra.mxu1 %v1970_v55  ;;  %2050 = vmatprep.mubr.bf16.mxu1 %v7832_v41 }
 0x323   :  { %v6839_v2 = vpop.permute.xlu0 %2784  ;;  %v6841_v31 = vpop.permute.xlu1 %2925 }
 0x325   :  { %4950 = vmatmul.mubr.msk.bf16.vlgmr.msra.gmra.mxu0 %vm1852_vm14, %v5544_v39 }
 0x326   :  { %2140 = vmatprep.mubr.bf16.mxu0 %v7832_v41 }
 0x327   :  { %v2082_v27 = vpop.permute.xlu0 %2081  ;;  %v2084_v19 = vpop.permute.xlu1 %2083 }
 0x328   :  { %v2089_v36 = vsel %vm7833_vm8, %v2080_v21, %v2082_v27  ;;  %v2090_v48 = vsel %vm7834_vm3, %v2082_v27, %v2084_v19  ;;  %vm7845_vm8 = vcmask 900096  }
 0x329   :  { %v2097_v25 = vsel %vm1856_vm15, %v2089_v36, 0  ;;  %4952 = vmatmul.mubr.msk.bf16.vlgmr.msra.gmra.mxu1 %vm1852_vm14, %v5544_v39  ;;  %4956 = vmatprep.subr.msk.bf16.mxu0 %vm1856_vm15, %v2090_v48  ;;  %vm7846_vm3 = vmmov %vm7845_vm8  ;;  %v5550_v39 = vld [vmem:[%s7537_s3 + $0x38] sm:$0xff]  }
 0x32a   :  { %2123 = vmatpush1.bf16.msra.mxu0 %v2097_v25  ;;  %2183 = vmatprep.mubr.bf16.mxu1 %v7832_v41 }
 0x32b   :  { %v2086_v51 = vpop.permute.xlu0 %2085  ;;  %v2088_v30 = vpop.permute.xlu1 %2087 }
 0x32c   :  { %v2091_v37 = vsel %vm7835_vm9, %v2084_v19, %v2086_v51  ;;  %v2092_v29 = vsel %vm7836_vm12, %v2086_v51, %v2088_v30  ;;  %vm7847_vm9 = vmmov %vm7846_vm3 }
 0x32d   :  { %v2103_v22 = vsel %vm1856_vm15, %v2091_v37, 0  ;;  %4957 = vmatmul.mubr.msk.bf16.vlgmr.msra.gmra.mxu0 %vm1852_vm14, %v5545_v34  ;;  %4958 = vmatprep.subr.msk.bf16.mxu1 %vm1856_vm15, %v2092_v29  ;;  %vm7848_vm12 = vmmov %vm7846_vm3  ;;  %v5551_v29 = vld [vmem:[%s7537_s3 + $0x40] sm:$0xff]   ;;  %s5593_s3 = smov 8  }
 0x32e   :  { %2166 = vmatpush1.bf16.msra.mxu1 %v2103_v22  ;;  %2281 = vmatprep.mubr.bf16.mxu0 %v7832_v41 }
 0x32f   :  { %v2225_v10 = vpop.permute.xlu0 %2224  ;;  %v2223_v47 = vpop.permute.xlu1 %2222 }
 0x330   :  { %v2230_v38 = vsel %vm7837_vm2, %v2221_v61, %v2223_v47  ;;  %v2231_v54 = vsel %vm7838_vm13, %v2223_v47, %v2225_v10  ;;  %vm7849_vm2 = vcmask 785408  }
 0x331   :  { %v2238_v43 = vsel %vm1856_vm15, %v2230_v38, 0  ;;  %4959 = vmatmul.mubr.msk.bf16.vlgmr.msra.gmra.mxu1 %vm1852_vm14, %v5545_v34  ;;  %4963 = vmatprep.subr.msk.bf16.mxu0 %vm1856_vm15, %v2231_v54  ;;  %vm7850_vm13 = vmmov %vm7849_vm2  ;;  %v7853_v54 = vld [vmem:[#allocation3_spill] sm:$0xff] }
 0x332   :  { %2264 = vmatpush1.bf16.msra.mxu0 %v2238_v43  ;;  %2324 = vmatprep.mubr.bf16.mxu1 %v7832_v41  ;;  %v3141_v43 = vshra.s32 %v7853_v54, 6 }
 0x333   :  { %v2229_v17 = vpop.permute.xlu0 %2228  ;;  %v2227_v57 = vpop.permute.xlu1 %2226 }
 0x334   :  { %v2232_v60 = vsel %vm7839_vm7, %v2225_v10, %v2227_v57  ;;  %v2233_v4 = vsel %vm7840_vm4, %v2227_v57, %v2229_v17  ;;  %vm7851_vm7 = vmmov %vm7849_vm2 }
 0x335   :  { %v2244_v28 = vsel %vm1856_vm15, %v2232_v60, 0  ;;  %4964 = vmatmul.mubr.msk.bf16.vlgmr.msra.gmra.mxu0 %vm1852_vm14, %v5546_v63  ;;  %4965 = vmatprep.subr.msk.bf16.mxu1 %vm1856_vm15, %v2233_v4  ;;  %vm7852_vm4 = vmmov %vm7849_vm2 }
 0x336   :  { %2307 = vmatpush1.bf16.msra.mxu1 %v2244_v28  ;;  %2422 = vmatprep.mubr.bf16.mxu0 %v7832_v41 }
 0x337   :  { %v2364_v49 = vpop.permute.xlu0 %2363  ;;  %v2366_v53 = vpop.permute.xlu1 %2365 }
 0x338   :  { %v2371_v3 = vsel %vm7841_vm6, %v6799_v9, %v2364_v49  ;;  %v2372_v7 = vsel %vm7842_vm1, %v2364_v49, %v2366_v53  ;;  %v3147_v49 = vmul.u32 256, %v3141_v43 }
 0x339   :  { %v2379_v20 = vsel %vm1856_vm15, %v2371_v3, 0  ;;  %4966 = vmatmul.mubr.msk.bf16.vlgmr.msra.gmra.mxu1 %vm1852_vm14, %v5546_v63  ;;  %4970 = vmatprep.subr.msk.bf16.mxu0 %vm1856_vm15, %v2372_v7  ;;  %v3142_v63 = vmul.u32 64, %v3141_v43 }
 0x33a   :  { %2405 = vmatpush1.bf16.msra.mxu0 %v2379_v20  ;;  %2465 = vmatprep.mubr.bf16.mxu1 %v7832_v41 }
 0x33b   :  { %v2368_v6 = vpop.permute.xlu0 %2367  ;;  %v2370_v14 = vpop.permute.xlu1 %2369  ;;  %v3143_v17 = vsub.s32 %v7853_v54, %v3142_v63 }
 0x33c   :  { %v2373_v32 = vsel %vm7843_vm11, %v2366_v53, %v2368_v6  ;;  %v2374_v13 = vsel %vm7844_vm10, %v2368_v6, %v2370_v14 }
 0x33d   :  { %v2385_v52 = vsel %vm1856_vm15, %v2373_v32, 0  ;;  %4971 = vmatmul.mubr.msk.bf16.vlgmr.msra.gmra.mxu0 %vm1852_vm14, %v5547_v16  ;;  %4972 = vmatprep.subr.msk.bf16.mxu1 %vm1856_vm15, %v2374_v13  ;;  %v3144_v57 = vshra.s32 %v3143_v17, 3 }
 0x33e   :  { %2448 = vmatpush1.bf16.msra.mxu1 %v2385_v52  ;;  %2563 = vmatprep.mubr.bf16.mxu0 %v7832_v41  ;;  %v7642_v52 = vmov 1.0  }
 0x33f   :  { %v2507_v24 = vpop.permute.xlu0 %2506  ;;  %v2505_v21 = vpop.permute.xlu1 %2504  ;;  %v3145_v60 = vmul.u32 8, %v3144_v57  ;;  %v3148_v4 = vmul.u32 2, %v3144_v57 }
 0x340   :  { %v2512_v61 = vsel %vm7845_vm8, %v6827_v35, %v2505_v21  ;;  %v2513_v9 = vsel %vm7846_vm3, %v2505_v21, %v2507_v24 }
 0x341   :  { %v2520_v62 = vsel %vm1856_vm15, %v2512_v61, 0  ;;  %4973 = vmatmul.mubr.msk.bf16.vlgmr.msra.gmra.mxu1 %vm1852_vm14, %v5547_v16  ;;  %4977 = vmatprep.subr.msk.bf16.mxu0 %vm1856_vm15, %v2513_v9  ;;  %v3146_v28 = vsub.s32 %v3143_v17, %v3145_v60  ;;  %v3149_v53 = vmul.u32 16, %v3148_v4  ;;  %v7854_v16 = vld [vmem:[#allocation2_spill] sm:$0xff] }
 0x342   :  { %2546 = vmatpush1.bf16.msra.mxu0 %v2520_v62  ;;  %2606 = vmatprep.mubr.bf16.mxu1 %v7832_v41  ;;  %v3108_v6 = vadd.s32 248, %v7854_v16  ;;  %v6961_v14 = vadd.s32 120, %v7854_v16  ;;  %v3107_v32 = vadd.s32 240, %v7854_v16  ;;  %v6968_v13 = vadd.s32 112, %v7854_v16 }
 0x343   :  { %v2511_v45 = vpop.permute.xlu0 %2510  ;;  %v2509_v1 = vpop.permute.xlu1 %2508  ;;  %v3150_v3 = vadd.s32 %v3149_v53, %v3147_v49  ;;  %v3151_v7 = vmul.u32 2, %v3146_v28  ;;  %v3140_v21 = vadd.s32 504, %v7854_v16  ;;  %v6979_v61 = vadd.s32 104, %v7854_v16 }
 0x344   :  { %v2514_v44 = vsel %vm7847_vm9, %v2507_v24, %v2509_v1  ;;  %v2515_v23 = vsel %vm7848_vm12, %v2509_v1, %v2511_v45  ;;  %7855 = vst [vmem:[#allocation9_spill] sm:$0xff] %v6961_v14  ;;  %7856 = vst [vmem:[#allocation6_spill] sm:$0xff] %v6968_v13  ;;  %v3106_v24 = vadd.s32 232, %v7854_v16  ;;  %v3124_v9 = vadd.s32 376, %v7854_v16 }
 0x345   :  { %v2526_v40 = vsel %vm1856_vm15, %v2514_v44, 0  ;;  %4978 = vmatmul.mubr.msk.bf16.vlgmr.msra.gmra.mxu0 %vm1852_vm14, %v5548_v42  ;;  %4979 = vmatprep.subr.msk.bf16.mxu1 %vm1856_vm15, %v2515_v23  ;;  %v6957_v20 = vadd.s32 %v3151_v7, %v3150_v3  ;;  %7857 = vst [vmem:[#allocation7_spill] sm:$0xff] %v6979_v61  ;;  %v3105_v62 = vadd.s32 224, %v7854_v16  ;;  %v6993_v45 = vadd.s32 96, %v7854_v16 }
 0x346   :  { %2589 = vmatpush1.bf16.msra.mxu1 %v2526_v40  ;;  %2704 = vmatprep.mubr.bf16.mxu0 %v7832_v41  ;;  %v3123_v1 = vadd.s32 368, %v7854_v16  ;;  %v3104_v44 = vadd.s32 216, %v7854_v16  ;;  %v3138_v23 = vadd.s32 488, %v7854_v16  ;;  %v7008_v40 = vadd.s32 88, %v7854_v16 }
 0x347   :  { %v2646_v59 = vpop.permute.xlu0 %2645  ;;  %v2648_v33 = vpop.permute.xlu1 %2647  ;;  %vm3182_vm6 = vcmp.eq.s32.totalorder %v3106_v24, %v6957_v20  ;;  %vm3216_vm1 = vcmp.eq.s32.totalorder %v3140_v21, %v6957_v20  ;;  %vm3166_vm11 = vcmp.eq.s32.totalorder %v6979_v61, %v6957_v20  ;;  %vm3200_vm10 = vcmp.eq.s32.totalorder %v3124_v9, %v6957_v20  ;;  %7858 = vst [vmem:[#allocation8_spill] sm:$0xff] %v6993_v45 }
 0x348   :  { %v2653_v5 = vsel %vm7849_vm2, %v6830_v50, %v2646_v59  ;;  %v2654_v46 = vsel %vm7850_vm13, %v2646_v59, %v2648_v33  ;;  %vm3181_vm8 = vcmp.eq.s32.totalorder %v3105_v62, %v6957_v20  ;;  %vm3165_vm9 = vcmp.eq.s32.totalorder %v6993_v45, %v6957_v20  ;;  %7859 = vst [vmem:[#allocation11_spill] sm:$0xff] %v7008_v40 }
 0x349   :  { %v2661_v15 = vsel %vm1856_vm15, %v2653_v5, 0  ;;  %4980 = vmatmul.mubr.msk.bf16.vlgmr.msra.gmra.mxu1 %vm1852_vm14, %v5548_v42  ;;  %4984 = vmatprep.subr.msk.bf16.mxu0 %vm1856_vm15, %v2654_v46  ;;  %v3139_v42 = vadd.s32 496, %v7854_v16  ;;  %vm3199_vm12 = vcmp.eq.s32.totalorder %v3123_v1, %v6957_v20  ;;  %v3122_v59 = vadd.s32 360, %v7854_v16 }
 0x34a   :  { %2687 = vmatpush1.bf16.msra.mxu0 %v2661_v15  ;;  %2747 = vmatprep.mubr.bf16.mxu1 %v7832_v41  ;;  %vm3180_vm2 = vcmp.eq.s32.totalorder %v3104_v44, %v6957_v20  ;;  %vm3214_vm13 = vcmp.eq.s32.totalorder %v3138_v23, %v6957_v20  ;;  %v3137_v5 = vadd.s32 480, %v7854_v16  ;;  %v7023_v46 = vadd.s32 80, %v7854_v16 }
 0x34b   :  { %v2650_v26 = vpop.permute.xlu0 %2649  ;;  %v2652_v18 = vpop.permute.xlu1 %2651  ;;  %vm3215_vm3 = vcmp.eq.s32.totalorder %v3139_v42, %v6957_v20  ;;  %v3121_v15 = vadd.s32 352, %v7854_v16  ;;  %v3095_v43 = vadd.s32 144, %v7854_v16  ;;  %v3129_v63 = vadd.s32 416, %v7854_v16 }
 0x34c   :  { %v2655_v8 = vsel %vm7851_vm7, %v2648_v33, %v2650_v26  ;;  %v2656_v12 = vsel %vm7852_vm4, %v2650_v26, %v2652_v18  ;;  %v3103_v33 = vadd.s32 208, %v7854_v16  ;;  %vm3164_vm7 = vcmp.eq.s32.totalorder %v7008_v40, %v6957_v20  ;;  %7860 = vst [vmem:[#allocation14_spill] sm:$0xff] %v7023_v46 }
 0x34d   :  { %v2667_v58 = vsel %vm1856_vm15, %v2655_v8, 0  ;;  %4985 = vmatmul.mubr.msk.bf16.vlgmr.msra.gmra.mxu0 %vm1852_vm14, %v5549_v11  ;;  %4986 = vmatprep.subr.msk.bf16.mxu1 %vm1856_vm15, %v2656_v12  ;;  %vm3198_vm4 = vcmp.eq.s32.totalorder %v3122_v59, %v6957_v20  ;;  %v3136_v26 = vadd.s32 472, %v7854_v16  ;;  %v7038_v18 = vadd.s32 72, %v7854_v16 }
 0x34e   :  { %2730 = vmatpush1.bf16.msra.mxu1 %v2667_v58  ;;  %2845 = vmatprep.mubr.bf16.mxu0 %v7832_v41  ;;  %v3120_v8 = vadd.s32 344, %v7854_v16  ;;  %v3101_v12 = vadd.s32 192, %v7854_v16  ;;  %v3135_v58 = vadd.s32 464, %v7854_v16  ;;  %v7136_v17 = vadd.s32 16, %v7854_v16 }
 0x34f   :  { %v2789_v0 = vpop.permute.xlu0 %2788  ;;  %v2787_v56 = vpop.permute.xlu1 %2786  ;;  %7861 = vst [vmem:[#allocation12_spill] sm:$0xff] %v7038_v18  ;;  %v3113_v57 = vadd.s32 288, %v7854_v16  ;;  %v3094_v60 = vadd.s32 136, %v7854_v16  ;;  %v3128_v4 = vadd.s32 408, %v7854_v16  ;;  %v7156_v28 = vadd.s32 8, %v7854_v16 }
 0x350   :  { %v2794_v35 = vsel %vm1481_vm0, %v6839_v2, %v2787_v56  ;;  %v2795_v50 = vsel %vm1481_vm0, %v2787_v56, %v2789_v0  ;;  %v3119_v56 = vadd.s32 336, %v7854_v16  ;;  %7868 = vst [vmem:[#allocation24_spill] sm:$0xff] %v7136_v17  ;;  %v3112_v49 = vadd.s32 280, %v7854_v16 }
 0x351   :  { %v2802_v55 = vsel %vm1856_vm15, %v2794_v35, 0  ;;  %4987 = vmatmul.mubr.msk.bf16.vlgmr.msra.gmra.mxu1 %vm1852_vm14, %v5549_v11  ;;  %4991 = vmatprep.subr.msk.bf16.mxu0 %vm1856_vm15, %v2795_v50  ;;  %v3102_v11 = vadd.s32 200, %v7854_v16  ;;  %v3100_v35 = vadd.s32 184, %v7854_v16  ;;  %v3134_v50 = vadd.s32 456, %v7854_v16  ;;  %7869 = vst [vmem:[#allocation20_spill] sm:$0xff] %v7156_v28 }
 0x352   :  { %2828 = vmatpush1.bf16.msra.mxu0 %v2802_v55  ;;  %2888 = vmatprep.mubr.bf16.mxu1 %v7832_v41  ;;  %v7068_v55 = vadd.s32 56, %v7854_v16  ;;  %v3093_v53 = vadd.s32 128, %v7854_v16  ;;  %v3127_v3 = vadd.s32 400, %v7854_v16  ;;  %v3111_v7 = vadd.s32 272, %v7854_v16 }
 0x353   :  { %v2793_v27 = vpop.permute.xlu0 %2792  ;;  %v2791_v19 = vpop.permute.xlu1 %2790  ;;  %v3125_v24 = vadd.s32 384, %v7854_v16  ;;  %v3109_v21 = vadd.s32 256, %v7854_v16 }
 0x354   :  { %v2796_v36 = vsel %vm1481_vm0, %v2789_v0, %v2791_v19  ;;  %v2797_v2 = vsel %vm1481_vm0, %v2791_v19, %v2793_v27  ;;  %vm3168_vm0 = vcmp.eq.s32.totalorder %v6961_v14, %v6957_v20  ;;  %v7053_v0 = vadd.s32 64, %v7854_v16  ;;  %7863 = vst [vmem:[#allocation15_spill] sm:$0xff] %v7068_v55 }
 0x355   :  { %v2808_v48 = vsel %vm1856_vm15, %v2796_v36, 0  ;;  %4992 = vmatmul.mubr.msk.bf16.vlgmr.msra.gmra.mxu0 %vm1852_vm14, %v5550_v39  ;;  %4993 = vmatprep.subr.msk.bf16.mxu1 %vm1856_vm15, %v2797_v2  ;;  %v3099_v27 = vadd.s32 176, %v7854_v16  ;;  %v3133_v19 = vadd.s32 448, %v7854_v16  ;;  %v7083_v36 = vadd.s32 48, %v7854_v16 }
 0x356   :  { %2871 = vmatpush1.bf16.msra.mxu1 %v2808_v48  ;;  %2986 = vmatprep.mubr.bf16.mxu0 %v7832_v41  ;;  %7862 = vst [vmem:[#allocation10_spill] sm:$0xff] %v7053_v0  ;;  %v3117_v2 = vadd.s32 320, %v7854_v16  ;;  %v3098_v48 = vadd.s32 168, %v7854_v16 }
 0x357   :  { %v2928_v25 = vpop.permute.xlu0 %2927  ;;  %v2930_v34 = vpop.permute.xlu1 %2929  ;;  %7864 = vst [vmem:[#allocation16_spill] sm:$0xff] %v7083_v36 }
 0x358   :  { %v2935_v51 = vsel %vm1662_vm5, %v6841_v31, %v2928_v25  ;;  %v2936_v30 = vsel %vm1662_vm5, %v2928_v25, %v2930_v34  ;;  %v3132_v25 = vadd.s32 440, %v7854_v16 }
 0x359   :  { %v2943_v37 = vsel %vm1856_vm15, %v2935_v51, 0  ;;  %4994 = vmatmul.mubr.msk.bf16.vlgmr.msra.gmra.mxu1 %vm1852_vm14, %v5550_v39  ;;  %4998 = vmatprep.subr.msk.bf16.mxu0 %vm1856_vm15, %v2936_v30  ;;  %v3118_v39 = vadd.s32 328, %v7854_v16  ;;  %v3116_v51 = vadd.s32 312, %v7854_v16  ;;  %v3097_v30 = vadd.s32 160, %v7854_v16 }
 0x35a   :  { %2969 = vmatpush1.bf16.msra.mxu0 %v2943_v37  ;;  %3029 = vmatprep.mubr.bf16.mxu1 %v7832_v41  ;;  %v3131_v37 = vadd.s32 432, %v7854_v16 }
 0x35b   :  { %v2932_v22 = vpop.permute.xlu0 %2931  ;;  %v2934_v10 = vpop.permute.xlu1 %2933 }
 0x35c   :  { %v2937_v47 = vsel %vm1662_vm5, %v2930_v34, %v2932_v22  ;;  %v2938_v31 = vsel %vm1662_vm5, %v2932_v22, %v2934_v10  ;;  %vm3184_vm5 = vcmp.eq.s32.totalorder %v3108_v6, %v6957_v20  ;;  %v7098_v34 = vadd.s32 40, %v7854_v16 }
 0x35d   :  { %v2949_v38 = vsel %vm1856_vm15, %v2937_v47, 0  ;;  %4999 = vmatmul.mubr.msk.bf16.vlgmr.msra.gmra.mxu0 %vm1852_vm14, %v5551_v29  ;;  %5000 = vmatprep.subr.msk.bf16.mxu1 %vm1856_vm15, %v2938_v31  ;;  %vm3183_vm15 = vcmp.eq.s32.totalorder %v3107_v32, %v6957_v20  ;;  %v3115_v22 = vadd.s32 304, %v7854_v16  ;;  %v3096_v10 = vadd.s32 152, %v7854_v16 }
 0x35e   :  { %3012 = vmatpush1.bf16.msra.mxu1 %v2949_v38  ;;  %5242 = vmatprep.subr.msk.mxu0 %vm3184_vm5, %v7642_v52  ;;  %vm3179_vm5 = vcmp.eq.s32.totalorder %v3103_v33, %v6957_v20  ;;  %7865 = vst [vmem:[#allocation13_spill] sm:$0xff] %v7098_v34  ;;  %v3130_v47 = vadd.s32 424, %v7854_v16  ;;  %v7128_v31 = vadd.s32 24, %v7854_v16  ;;  %v3114_v38 = vadd.s32 296, %v7854_v16 }
 0x35f   :  { %5243 = vmatpush3.msk.msra.mxu0 %vm3168_vm0, %v7642_v52  ;;  %5280 = vmatprep.subr.msk.mxu1 %vm3216_vm1, %v7642_v52  ;;  %vm3213_vm0 = vcmp.eq.s32.totalorder %v3137_v5, %v6957_v20  ;;  %vm3212_vm1 = vcmp.eq.s32.totalorder %v3136_v26, %v6957_v20  ;;  %v3126_v6 = vadd.s32 392, %v7854_v16  ;;  %v3110_v32 = vadd.s32 264, %v7854_v16 }
 0x360   :  { %5244 = vmatprep.subr.msk.mxu0 %vm3183_vm15, %v7642_v52  ;;  %vm3163_vm15 = vcmp.eq.s32.totalorder %v7023_v46, %v6957_v20  ;;  %7867 = vst [vmem:[#allocation19_spill] sm:$0xff] %v7128_v31 }
 0x361   :  { %5001 = vmatmul.mubr.msk.bf16.vlgmr.msra.gmra.mxu1 %vm1852_vm14, %v5551_v29  ;;  %vm3167_vm14 = vcmp.eq.s32.totalorder %v6968_v13, %v6957_v20  ;;  %v7115_v29 = vadd.s32 32, %v7854_v16 }
 0x362   :  { %5245 = vmatpush3.msk.msra.mxu0 %vm3167_vm14, %v7642_v52  ;;  %5281 = vmatpush3.msk.msra.mxu1 %vm3200_vm10, %v7642_v52  ;;  %vm3197_vm14 = vcmp.eq.s32.totalorder %v3121_v15, %v6957_v20  ;;  %vm3196_vm10 = vcmp.eq.s32.totalorder %v3120_v8, %v6957_v20 }
 0x363   :  { %5246 = vmatprep.subr.msk.mxu0 %vm3182_vm6, %v7642_v52  ;;  %5282 = vmatprep.subr.msk.mxu1 %vm3215_vm3, %v7642_v52  ;;  %vm3178_vm6 = vcmp.eq.s32.totalorder %v3102_v11, %v6957_v20  ;;  %vm3211_vm3 = vcmp.eq.s32.totalorder %v3135_v58, %v6957_v20  ;;  %7866 = vst [vmem:[#allocation18_spill] sm:$0xff] %v7115_v29 }
 0x364   :  { %5247 = vmatpush3.msk.msra.mxu0 %vm3166_vm11, %v7642_v52  ;;  %5283 = vmatpush3.msk.msra.mxu1 %vm3199_vm12, %v7642_v52  ;;  %vm3162_vm11 = vcmp.eq.s32.totalorder %v7038_v18, %v6957_v20  ;;  %vm3195_vm12 = vcmp.eq.s32.totalorder %v3119_v56, %v6957_v20 }
 0x365   :  { %5248 = vmatprep.subr.msk.mxu0 %vm3181_vm8, %v7642_v52  ;;  %5284 = vmatprep.subr.msk.mxu1 %vm3214_vm13, %v7642_v52  ;;  %vm3177_vm8 = vcmp.eq.s32.totalorder %v3101_v12, %v6957_v20  ;;  %vm3210_vm13 = vcmp.eq.s32.totalorder %v3134_v50, %v6957_v20 }
 0x366   :  { %5249 = vmatpush3.msk.msra.mxu0 %vm3165_vm9, %v7642_v52  ;;  %5285 = vmatpush3.msk.msra.mxu1 %vm3198_vm4, %v7642_v52  ;;  %vm3161_vm9 = vcmp.eq.s32.totalorder %v7053_v0, %v6957_v20  ;;  %vm3194_vm4 = vcmp.eq.s32.totalorder %v3118_v39, %v6957_v20 }
 0x367   :  { %5250 = vmatprep.subr.msk.mxu0 %vm3180_vm2, %v7642_v52  ;;  %5286 = vmatprep.subr.msk.mxu1 %vm3213_vm0, %v7642_v52  ;;  %vm3176_vm2 = vcmp.eq.s32.totalorder %v3100_v35, %v6957_v20  ;;  %vm3209_vm0 = vcmp.eq.s32.totalorder %v3133_v19, %v6957_v20 }
 0x368   :  { %5251 = vmatpush3.msk.msra.mxu0 %vm3164_vm7, %v7642_v52  ;;  %5287 = vmatpush3.msk.msra.mxu1 %vm3197_vm14, %v7642_v52  ;;  %vm3160_vm7 = vcmp.eq.s32.totalorder %v7068_v55, %v6957_v20  ;;  %vm3193_vm14 = vcmp.eq.s32.totalorder %v3117_v2, %v6957_v20 }
 0x369   :  { %5252 = vmatprep.subr.msk.mxu0 %vm3179_vm5, %v7642_v52  ;;  %5288 = vmatprep.subr.msk.mxu1 %vm3212_vm1, %v7642_v52  ;;  %vm3175_vm5 = vcmp.eq.s32.totalorder %v3099_v27, %v6957_v20  ;;  %vm3208_vm1 = vcmp.eq.s32.totalorder %v3132_v25, %v6957_v20 }
 0x36a   :  { %5253 = vmatpush3.msk.msra.mxu0 %vm3163_vm15, %v7642_v52  ;;  %5289 = vmatpush3.msk.msra.mxu1 %vm3196_vm10, %v7642_v52  ;;  %vm3159_vm15 = vcmp.eq.s32.totalorder %v7083_v36, %v6957_v20  ;;  %vm3192_vm10 = vcmp.eq.s32.totalorder %v3116_v51, %v6957_v20 }
 0x36b   :  { %5254 = vmatprep.subr.msk.mxu0 %vm3178_vm6, %v7642_v52  ;;  %5290 = vmatprep.subr.msk.mxu1 %vm3211_vm3, %v7642_v52  ;;  %vm3174_vm6 = vcmp.eq.s32.totalorder %v3098_v48, %v6957_v20  ;;  %vm3207_vm3 = vcmp.eq.s32.totalorder %v3131_v37, %v6957_v20 }
 0x36c   :  { %5255 = vmatpush3.msk.msra.mxu0 %vm3162_vm11, %v7642_v52  ;;  %5291 = vmatpush3.msk.msra.mxu1 %vm3195_vm12, %v7642_v52  ;;  %vm3158_vm11 = vcmp.eq.s32.totalorder %v7098_v34, %v6957_v20  ;;  %vm3191_vm12 = vcmp.eq.s32.totalorder %v3115_v22, %v6957_v20 }
 0x36d   :  { %5256 = vmatprep.subr.msk.mxu0 %vm3177_vm8, %v7642_v52  ;;  %5292 = vmatprep.subr.msk.mxu1 %vm3210_vm13, %v7642_v52  ;;  %vm3173_vm8 = vcmp.eq.s32.totalorder %v3097_v30, %v6957_v20  ;;  %vm3206_vm13 = vcmp.eq.s32.totalorder %v3130_v47, %v6957_v20 }
 0x36e   :  { %5257 = vmatpush3.msk.msra.mxu0 %vm3161_vm9, %v7642_v52  ;;  %5293 = vmatpush3.msk.msra.mxu1 %vm3194_vm4, %v7642_v52  ;;  %vm3157_vm9 = vcmp.eq.s32.totalorder %v7115_v29, %v6957_v20  ;;  %vm3190_vm4 = vcmp.eq.s32.totalorder %v3114_v38, %v6957_v20 }
 0x36f   :  { %5258 = vmatprep.subr.msk.mxu0 %vm3176_vm2, %v7642_v52  ;;  %5294 = vmatprep.subr.msk.mxu1 %vm3209_vm0, %v7642_v52  ;;  %vm3172_vm2 = vcmp.eq.s32.totalorder %v3096_v10, %v6957_v20  ;;  %vm3205_vm0 = vcmp.eq.s32.totalorder %v3129_v63, %v6957_v20 }
 0x370   :  { %5259 = vmatpush3.msk.msra.mxu0 %vm3160_vm7, %v7642_v52  ;;  %5295 = vmatpush3.msk.msra.mxu1 %vm3193_vm14, %v7642_v52  ;;  %vm3156_vm7 = vcmp.eq.s32.totalorder %v7128_v31, %v6957_v20  ;;  %vm3189_vm14 = vcmp.eq.s32.totalorder %v3113_v57, %v6957_v20 }
 0x371   :  { %5260 = vmatprep.subr.msk.mxu0 %vm3175_vm5, %v7642_v52  ;;  %5296 = vmatprep.subr.msk.mxu1 %vm3208_vm1, %v7642_v52  ;;  %vm3171_vm5 = vcmp.eq.s32.totalorder %v3095_v43, %v6957_v20  ;;  %vm3153_vm1 = vcmp.eq.s32.totalorder %v7854_v16, %v6957_v20 }
 0x372   :  { %5261 = vmatpush3.msk.msra.mxu0 %vm3159_vm15, %v7642_v52  ;;  %5297 = vmatpush3.msk.msra.mxu1 %vm3192_vm10, %v7642_v52  ;;  %vm3155_vm15 = vcmp.eq.s32.totalorder %v7136_v17, %v6957_v20  ;;  %vm3154_vm10 = vcmp.eq.s32.totalorder %v7156_v28, %v6957_v20 }
 0x373   :  { %5262 = vmatprep.subr.msk.mxu0 %vm3174_vm6, %v7642_v52  ;;  %5298 = vmatprep.subr.msk.mxu1 %vm3207_vm3, %v7642_v52  ;;  %vm3170_vm6 = vcmp.eq.s32.totalorder %v3094_v60, %v6957_v20  ;;  %vm3169_vm3 = vcmp.eq.s32.totalorder %v3093_v53, %v6957_v20 }
 0x374   :  { %5263 = vmatpush3.msk.msra.mxu0 %vm3158_vm11, %v7642_v52  ;;  %5299 = vmatpush3.msk.msra.mxu1 %vm3191_vm12, %v7642_v52  ;;  %vm3204_vm11 = vcmp.eq.s32.totalorder %v3128_v4, %v6957_v20  ;;  %vm3187_vm12 = vcmp.eq.s32.totalorder %v3111_v7, %v6957_v20 }
 0x375   :  { %5264 = vmatprep.subr.msk.mxu0 %vm3173_vm8, %v7642_v52  ;;  %5300 = vmatprep.subr.msk.mxu1 %vm3206_vm13, %v7642_v52  ;;  %vm3188_vm8 = vcmp.eq.s32.totalorder %v3112_v49, %v6957_v20  ;;  %vm3186_vm13 = vcmp.eq.s32.totalorder %v3110_v32, %v6957_v20 }
 0x376   :  { %5265 = vmatpush3.msk.msra.mxu0 %vm3157_vm9, %v7642_v52  ;;  %5301 = vmatpush3.msk.msra.mxu1 %vm3190_vm4, %v7642_v52  ;;  %vm3203_vm9 = vcmp.eq.s32.totalorder %v3127_v3, %v6957_v20  ;;  %vm3185_vm4 = vcmp.eq.s32.totalorder %v3109_v21, %v6957_v20 }
 0x377   :  { %5266 = vmatprep.subr.msk.mxu0 %vm3172_vm2, %v7642_v52  ;;  %5302 = vmatprep.subr.msk.mxu1 %vm3205_vm0, %v7642_v52  ;;  %vm3202_vm2 = vcmp.eq.s32.totalorder %v3126_v6, %v6957_v20 }
 0x378   :  { %5267 = vmatpush3.msk.msra.mxu0 %vm3156_vm7, %v7642_v52  ;;  %5303 = vmatpush3.msk.msra.mxu1 %vm3189_vm14, %v7642_v52  ;;  %vm3201_vm7 = vcmp.eq.s32.totalorder %v3125_v24, %v6957_v20 }
 0x379   :  { %5268 = vmatprep.subr.msk.mxu0 %vm3171_vm5, %v7642_v52  ;;  %5304 = vmatprep.subr.msk.mxu1 %vm3204_vm11, %v7642_v52 }
 0x37a   :  { %5269 = vmatpush3.msk.msra.mxu0 %vm3155_vm15, %v7642_v52  ;;  %5305 = vmatpush3.msk.msra.mxu1 %vm3188_vm8, %v7642_v52 }
 0x37b   :  { %5270 = vmatprep.subr.msk.mxu0 %vm3170_vm6, %v7642_v52  ;;  %5306 = vmatprep.subr.msk.mxu1 %vm3203_vm9, %v7642_v52 }
 0x37c   :  { %5271 = vmatpush3.msk.msra.mxu0 %vm3154_vm10, %v7642_v52  ;;  %5307 = vmatpush3.msk.msra.mxu1 %vm3187_vm12, %v7642_v52 }
 0x37d   :  { %5272 = vmatprep.subr.msk.mxu0 %vm3169_vm3, %v7642_v52  ;;  %5308 = vmatprep.subr.msk.mxu1 %vm3202_vm2, %v7642_v52 }
 0x37e   :  { %5273 = vmatpush3.msk.msra.mxu0 %vm3153_vm1, %v7642_v52  ;;  %5309 = vmatpush3.msk.msra.mxu1 %vm3186_vm13, %v7642_v52 }
 0x37f   :  { %5310 = vmatprep.subr.msk.mxu1 %vm3201_vm7, %v7642_v52 }
 0x380   :  { %5311 = vmatpush3.msk.msra.mxu1 %vm3185_vm4, %v7642_v52 }
 0x3dd   :  { %v1903_v9 = vpop.f32.mrf.mxu0 }
 0x3df   :  { %v1905_v62 = vpop.f32.mrf.mxu0 }
 0x3e1   :  { %v1907_v42 = vpop.f32.mrf.mxu0  ;;  %v1946_v1 = vpop.f32.mrf.mxu1 }
 0x3e3   :  { %v1909_v44 = vpop.f32.mrf.mxu0  ;;  %v1948_v23 = vpop.f32.mrf.mxu1 }
 0x3e5   :  { %v7199_v59 = vpop.f32.mrf.mxu1  ;;  %v2009_v33 = vpop.f32.mrf.mxu0 }
 0x3e6   :  { %v2010_v29 = vadd.f32 %v2009_v33, %v1903_v9 }
 0x3e7   :  { %v7201_v5 = vpop.f32.mrf.mxu1  ;;  %v2011_v15 = vpop.f32.mrf.mxu0 }
 0x3e8   :  { %7870 = vst [vmem:[#allocation17_spill] sm:$0xff] %v7201_v5  ;;  %v2012_v55 = vadd.f32 %v2011_v15, %v1905_v62 }
 0x3e9   :  { %v2013_v11 = vpop.f32.mrf.mxu0  ;;  %v2052_v20 = vpop.f32.mrf.mxu1 }
 0x3ea   :  { %v2014_v40 = vadd.f32 %v2013_v11, %v1907_v42  ;;  %v2053_v45 = vadd.f32 %v2052_v20, %v1946_v1 }
 0x3eb   :  { %v2015_v26 = vpop.f32.mrf.mxu0  ;;  %v2054_v8 = vpop.f32.mrf.mxu1 }
 0x3ec   :  { %v2016_v14 = vadd.f32 %v2015_v26, %v1909_v44  ;;  %v2055_v41 = vadd.f32 %v2054_v8, %v1948_v23 }
 0x3ed   :  { %v2056_v12 = vpop.f32.mrf.mxu1  ;;  %v2142_v58 = vpop.f32.mrf.mxu0 }
 0x3ee   :  { %v2194_v0 = vadd.f32 %v2142_v58, %v2010_v29  ;;  %v2057_v9 = vadd.f32 %v2056_v12, %v7199_v59 }
 0x3ef   :  { %v2058_v56 = vpop.f32.mrf.mxu1  ;;  %v2144_v35 = vpop.f32.mrf.mxu0 }
 0x3f0   :  { %v2195_v61 = vadd.f32 %v2144_v35, %v2012_v55  ;;  %v7876_v55 = vld [vmem:[#allocation17_spill] sm:$0xff] }
 0x3f1   :  { %v2146_v50 = vpop.f32.mrf.mxu0  ;;  %v2185_v39 = vpop.f32.mrf.mxu1 }
 0x3f3   :  { %v2148_v27 = vpop.f32.mrf.mxu0  ;;  %v2187_v19 = vpop.f32.mrf.mxu1 }
 0x3f4   :  { %v2199_v33 = vadd.f32 %v2148_v27, %v2016_v14  ;;  %v2197_v5 = vadd.f32 %v2187_v19, %v2055_v41 }
 0x3f5   :  { %v2189_v2 = vpop.f32.mrf.mxu1  ;;  %v2283_v48 = vpop.f32.mrf.mxu0 }
 0x3f6   :  { %v2335_v13 = vadd.f32 %v2283_v48, %v2194_v0  ;;  %v2059_v0 = vadd.f32 %v2058_v56, %v7876_v55  ;;  %v2200_v44 = vadd.f32 %v2189_v2, %v2057_v9 }
 0x3f7   :  { %v7203_v25 = vpop.f32.mrf.mxu1  ;;  %v2285_v51 = vpop.f32.mrf.mxu0 }
 0x3f8   :  { %7871 = vst [vmem:[#allocation23_spill] sm:$0xff] %v7203_v25  ;;  %v2336_v25 = vadd.f32 %v2285_v51, %v2195_v61 }
 0x3f9   :  { %v2287_v30 = vpop.f32.mrf.mxu0  ;;  %v2326_v37 = vpop.f32.mrf.mxu1 }
 0x3fb   :  { %v2289_v22 = vpop.f32.mrf.mxu0  ;;  %v2328_v10 = vpop.f32.mrf.mxu1 }
 0x3fc   :  { %v2340_v23 = vadd.f32 %v2289_v22, %v2199_v33  ;;  %v2338_v11 = vadd.f32 %v2328_v10, %v2197_v5 }
 0x3fd   :  { %v2330_v47 = vpop.f32.mrf.mxu1  ;;  %v2424_v38 = vpop.f32.mrf.mxu0 }
 0x3fe   :  { %v2341_v41 = vadd.f32 %v2330_v47, %v2200_v44 }
 0x3ff   :  { %v7205_v43 = vpop.f32.mrf.mxu1  ;;  %v2426_v63 = vpop.f32.mrf.mxu0  ;;  %v7877_v59 = vld [vmem:[#allocation23_spill] sm:$0xff] }
 0x400   :  { %7872 = vst [vmem:[#allocation22_spill] sm:$0xff] %v7205_v43  ;;  %v2196_v43 = vadd.f32 %v2185_v39, %v2053_v45  ;;  %v2477_v42 = vadd.f32 %v2426_v63, %v2336_v25  ;;  %v2201_v14 = vadd.f32 %v7877_v59, %v2059_v0 }
 0x401   :  { %v2428_v57 = vpop.f32.mrf.mxu0  ;;  %v2467_v60 = vpop.f32.mrf.mxu1 }
 0x402   :  { %v2337_v58 = vadd.f32 %v2326_v37, %v2196_v43 }
 0x403   :  { %v2430_v4 = vpop.f32.mrf.mxu0  ;;  %v2469_v49 = vpop.f32.mrf.mxu1 }
 0x404   :  { %v2478_v61 = vadd.f32 %v2467_v60, %v2337_v58  ;;  %v2481_v8 = vadd.f32 %v2430_v4, %v2340_v23  ;;  %v2479_v12 = vadd.f32 %v2469_v49, %v2338_v11 }
 0x405   :  { %v2471_v53 = vpop.f32.mrf.mxu1  ;;  %v2565_v3 = vpop.f32.mrf.mxu0 }
 0x406   :  { %v2482_v5 = vadd.f32 %v2471_v53, %v2341_v41 }
 0x407   :  { %v7207_v7 = vpop.f32.mrf.mxu1  ;;  %v2567_v6 = vpop.f32.mrf.mxu0  ;;  %v7878_v27 = vld [vmem:[#allocation22_spill] sm:$0xff] }
 0x408   :  { %7873 = vst [vmem:[#allocation21_spill] sm:$0xff] %v7207_v7  ;;  %v2342_v19 = vadd.f32 %v7878_v27, %v2201_v14 }
 0x409   :  { %v2569_v32 = vpop.f32.mrf.mxu0  ;;  %v2608_v24 = vpop.f32.mrf.mxu1 }
 0x40b   :  { %v2571_v21 = vpop.f32.mrf.mxu0  ;;  %v2610_v52 = vpop.f32.mrf.mxu1 }
 0x40c   :  { %v2622_v2 = vadd.f32 %v2571_v21, %v2481_v8  ;;  %v2620_v48 = vadd.f32 %v2610_v52, %v2479_v12 }
 0x40d   :  { %v7209_v16 = vpop.f32.mrf.mxu1  ;;  %v2706_v28 = vpop.f32.mrf.mxu0 }
 0x40e   :  { %7874 = vst [vmem:[#allocation25_spill] sm:$0xff] %v7209_v16  ;;  %v2198_v16 = vadd.f32 %v2146_v50, %v2014_v40 }
 0x40f   :  { %v7211_v17 = vpop.f32.mrf.mxu1  ;;  %v2708_v31 = vpop.f32.mrf.mxu0  ;;  %v7879_v10 = vld [vmem:[#allocation21_spill] sm:$0xff] }
 0x410   :  { %7875 = vst [vmem:[#allocation26_spill] sm:$0xff] %v7211_v17  ;;  %v2476_v17 = vadd.f32 %v2424_v38, %v2335_v13  ;;  %v2339_v15 = vadd.f32 %v2287_v30, %v2198_v16  ;;  %v2618_v13 = vadd.f32 %v2567_v6, %v2477_v42  ;;  %v2483_v47 = vadd.f32 %v7879_v10, %v2342_v19 }
 0x411   :  { %v2710_v34 = vpop.f32.mrf.mxu0  ;;  %v2749_v36 = vpop.f32.mrf.mxu1 }
 0x412   :  { %v2617_v1 = vadd.f32 %v2565_v3, %v2476_v17  ;;  %v2480_v45 = vadd.f32 %v2428_v57, %v2339_v15  ;;  %v2619_v17 = vadd.f32 %v2608_v24, %v2478_v61  ;;  %v2759_v39 = vadd.f32 %v2708_v31, %v2618_v13  ;;  %v3053_v31 = vpop.permute.xlu0 %3052  ;;  %v3058_v15 = vpop.permute.xlu1 %3057 }
 0x413   :  { %v2712_v18 = vpop.f32.mrf.mxu0  ;;  %v2751_v46 = vpop.f32.mrf.mxu1 }
 0x414   :  { %v2758_v26 = vadd.f32 %v2706_v28, %v2617_v1  ;;  %v2621_v50 = vadd.f32 %v2569_v32, %v2480_v45  ;;  %v2760_v28 = vadd.f32 %v2749_v36, %v2619_v17  ;;  %v2763_v63 = vadd.f32 %v2712_v18, %v2622_v2 }
 0x415   :  { %v2753_v54 = vpop.f32.mrf.mxu1  ;;  %v2847_v7 = vpop.f32.mrf.mxu0  ;;  %v7880_v38 = vld [vmem:[#allocation25_spill] sm:$0xff]  ;;  %v2761_v4 = vadd.f32 %v2751_v46, %v2620_v48  ;;  %v7885_v2 = vmov 0  }
 0x416   :  { %v2899_v56 = vadd.f32 %v2847_v7, %v2758_v26  ;;  %v2762_v30 = vadd.f32 %v2710_v34, %v2621_v50  ;;  %v2623_v43 = vadd.f32 %v7880_v38, %v2482_v5  ;;  %v7882_v50 = vld [vmem:[#allocation3_spill] sm:$0xff]  ;;  %v4386_v38 = vld [vmem:[%s7541_s6] sm:$0xff] }
 0x417   :  { %v2755_v62 = vpop.f32.mrf.mxu1  ;;  %v2849_v29 = vpop.f32.mrf.mxu0  ;;  %v7881_v7 = vld [vmem:[#allocation26_spill] sm:$0xff]  ;;  %v3508_v17 = vshra.s32 %v7882_v50, 3  ;;  %v3507_v27 = vand.u32 7, %v7882_v50 }
 0x418   :  { %v2900_v37 = vadd.f32 %v2849_v29, %v2759_v39  ;;  %v2624_v52 = vadd.f32 %v7881_v7, %v2483_v47  ;;  %v2764_v6 = vadd.f32 %v2753_v54, %v2623_v43 }
 0x419   :  { %v2851_v20 = vpop.f32.mrf.mxu0  ;;  %v2890_v40 = vpop.f32.mrf.mxu1  ;;  %v3509_v39 = vand.u32 7, %v3508_v17  ;;  %v7229_v5 = vadd.s32 4294967295, %v3507_v27 }
 0x41a   :  { %v2903_v49 = vadd.f32 %v2851_v20, %v2762_v30  ;;  %v2901_v3 = vadd.f32 %v2890_v40, %v2760_v28  ;;  %v2765_v18 = vadd.f32 %v2755_v62, %v2624_v52  ;;  %v3694_v28 = vadd.s32 1, %v3507_v27 }
 0x41b   :  { %v2853_v16 = vpop.f32.mrf.mxu0  ;;  %v2892_v35 = vpop.f32.mrf.mxu1  ;;  %vm3794_vm14 = vcmp.ge.s32.totalorder %v3509_v39, 0  ;;  %vm3795_vm6 = vcmp.lt.s32.totalorder %v3509_v39, 8  ;;  %vm3515_vm10 = vcmp.ge.s32.totalorder %v7229_v5, 0 }
 0x41c   :  { %v2904_v32 = vadd.f32 %v2853_v16, %v2763_v63  ;;  %v2902_v21 = vadd.f32 %v2892_v35, %v2761_v4  ;;  %vm7232_vm11 = vmand %vm3794_vm14, %vm3795_vm6  ;;  %vm3697_vm9 = vcmp.lt.s32.totalorder %v3694_v28, 8 }
 0x41d   :  { %v2894_v25 = vpop.f32.mrf.mxu1  ;;  %v2988_v51 = vpop.f32.mrf.mxu0  ;;  %vm3797_vm8 = vmand %vm7232_vm11, %vm3515_vm10 }
 0x41e   :  { %v3040_v22 = vadd.f32 %v2988_v51, %v2899_v56  ;;  %v2905_v1 = vadd.f32 %v2894_v25, %v2764_v6  ;;  %v3510_v56 = vadd.s32 4294967295, %v3509_v39  ;;  %v7888_v51 = vld [vmem:[#allocation5_spill] sm:$0xff]  ;;  %vm3801_vm3 = vmpackc.low %vm3797_vm8, %vm3797_vm8 }
 0x41f   :  { %v2896_v57 = vpop.f32.mrf.mxu1  ;;  %v2990_v60 = vpop.f32.mrf.mxu0  ;;  %vm3994_vm13 = vmand %vm7232_vm11, %vm3697_vm9 }
 0x420   :  { %v3041_v53 = vadd.f32 %v2990_v60, %v2900_v37  ;;  %v3060_v34 = vadd.f32 %v3053_v31, %v3040_v22  ;;  %v2906_v20 = vadd.f32 %v2896_v57, %v2765_v18  ;;  %vm3511_vm5 = vcmp.ge.s32.totalorder %v3510_v56, 0  ;;  %vm3997_vm7 = vmpackc.low %vm3994_vm13, %vm3994_vm13  ;;  %v4776_v60 = vld [vmem:[%s7542_s10] sm:$0xff] }
 0x421   :  { %v2992_v36 = vpop.f32.mrf.mxu0  ;;  %v3031_v24 = vpop.f32.mrf.mxu1  ;;  %vm3512_vm0 = vcmp.lt.s32.totalorder %v3510_v56, 8  ;;  %v4091_v37 = vadd.s32 1, %v3509_v39  ;;  %v3802_v22 = vsel %vm3801_vm3, 65537, %v7885_v2  ;;  %v3998_v47 = vsel %vm3997_vm7, 65537, %v7885_v2 }
 0x422   :  { %v3061_v9 = vadd.f32 %v3053_v31, %v3041_v53  ;;  %v3044_v33 = vadd.f32 %v2992_v36, %v2903_v49  ;;  %v3042_v29 = vadd.f32 %v3031_v24, %v2901_v3  ;;  %v3068_v44 = vmax.f32 %v3060_v34, 0.0  ;;  %vm7222_vm15 = vmand %vm3511_vm5, %vm3512_vm0 }
 0x423   :  { %v2994_v58 = vpop.f32.mrf.mxu0  ;;  %v3033_v42 = vpop.f32.mrf.mxu1  ;;  %vm3539_vm1 = vmpackc.low %vm7222_vm15, %vm7222_vm15  ;;  %vm4092_vm12 = vcmp.ge.s32.totalorder %v4091_v37, 0  ;;  %vm4093_vm2 = vcmp.lt.s32.totalorder %v4091_v37, 8  ;;  %v3806_v10 = vrot.slane %v3802_v22, %v7888_v51  ;;  %v4002_v43 = vrot.slane %v3998_v47, %v7888_v51  ;;  %v4387_v47 = vld [vmem:[%s7541_s6 + $0x8] sm:$0xff] }
 0x424   :  { %v3069_v46 = vmax.f32 %v3061_v9, 0.0  ;;  %v3045_v55 = vadd.f32 %v2994_v58, %v2904_v32  ;;  %v3043_v0 = vadd.f32 %v3033_v42, %v2902_v21  ;;  %v3062_v23 = vadd.f32 %v3053_v31, %v3042_v29  ;;  %vm7249_vm4 = vmand %vm4092_vm12, %vm4093_vm2 }
 0x425   :  { %v3035_v11 = vpop.f32.mrf.mxu1  ;;  %v3064_v54 = vadd.f32 %v3058_v15, %v3044_v33  ;;  %v3540_v48 = vsel %vm3539_vm1, 65537, %v7885_v2  ;;  %vm4196_vm5 = vmpackc.low %vm7249_vm4, %vm7249_vm4  ;;  %vm3501_vm2 = vcmask 72704   ;;  %vm7896_vm13 = vcmask 130048  }
 0x426   :  { %v3063_v40 = vadd.f32 %v3053_v31, %v3043_v0  ;;  %v3046_v45 = vadd.f32 %v3035_v11, %v2905_v1  ;;  %3409 = vmatprep.mubr.f32.mxu0 %v3069_v46  ;;  %v3065_v61 = vadd.f32 %v3058_v15, %v3045_v55  ;;  %v3070_v14 = vmax.f32 %v3062_v23, 0.0  ;;  %vm7263_vm0 = vmand %vm7249_vm4, %vm3697_vm9  ;;  %v5552_v23 = vld [vmem:[%s7540_s5 + $0x10] sm:$0xff]   ;;  %v5553_v11 = vld [vmem:[%s7540_s5] sm:$0xff]  }
 0x427   :  { %v3037_v13 = vpop.f32.mrf.mxu1  ;;  %3410 = vmatmul.mubr.f32.vlgmr.msra.gmra.mxu0 %v3068_v44  ;;  %v3072_v8 = vmax.f32 %v3064_v54, 0.0  ;;  %v3544_v30 = vrot.slane %v3540_v48, %v7888_v51  ;;  %v4197_v63 = vsel %vm4196_vm5, 65537, %v7885_v2  ;;  %vm3698_vm14 = vmand %vm7222_vm15, %vm3697_vm9 }
 0x428   :  { %v3071_v26 = vmax.f32 %v3063_v40, 0.0  ;;  %v3047_v59 = vadd.f32 %v3037_v13, %v2906_v20  ;;  %v3073_v62 = vmax.f32 %v3065_v61, 0.0  ;;  %v3066_v41 = vadd.f32 %v3058_v15, %v3046_v45  ;;  %vm3701_vm6 = vmpackc.low %vm3698_vm14, %vm3698_vm14 }
 0x429   :  { %3545 = vrot.lane.b32.xlu1 %v3544_v30, %s5577_s20  ;;  %s5594_s20 = smov 10   ;;  %v4201_v57 = vrot.slane %v4197_v63, %v7888_v51  ;;  %v3702_v33 = vsel %vm3701_vm6, 65537, %v7885_v2  ;;  %vm3899_vm1 = vmpackc.low %vm7232_vm11, %vm7232_vm11  ;;  %v4388_v63 = vld [vmem:[%s7541_s6 + $0x10] sm:$0xff] }
 0x42a   :  { %v3067_v12 = vadd.f32 %v3058_v15, %v3047_v59  ;;  %3414 = vmatprep.mubr.f32.mxu0 %v3073_v62  ;;  %3484 = vmatprep.mubr.f32.mxu1 %v3071_v26  ;;  %v3074_v35 = vmax.f32 %v3066_v41, 0.0  ;;  %vm4095_vm8 = vmand %vm7249_vm4, %vm3515_vm10  ;;  %v3706_v15 = vrot.slane %v3702_v33, %v7888_v51  ;;  %v3900_v18 = vsel %vm3899_vm1, 65537, %v7885_v2  ;;  %v5555_v26 = vld [vmem:[%s7540_s5 + $0x8] sm:$0xff]  }
 0x42b   :  { %3415 = vmatmul.mubr.f32.gmra.mxu0 %v3072_v8  ;;  %3485 = vmatmul.mubr.f32.vlgmr.msra.gmra.mxu1 %v3070_v14  ;;  %vm4099_vm3 = vmpackc.low %vm4095_vm8, %vm4095_vm8  ;;  %v3904_v58 = vrot.slane %v3900_v18, %v7888_v51  ;;  %v5558_v14 = vld [vmem:[%s7540_s5 + $0x30] sm:$0xff]   ;;  %v5560_v18 = vld [vmem:[%s7540_s5 + $0x40] sm:$0xff]  }
 0x42c   :  { %v3075_v16 = vmax.f32 %v3067_v12, 0.0  ;;  %v4100_v42 = vsel %vm4099_vm3, 65537, %v7885_v2  ;;  %vm4293_vm11 = vmpackc.low %vm7263_vm0, %vm7263_vm0  ;;  %5387 = vmatprep.mubr.msk.bf16.mxu0 %vm7896_vm13, %v5552_v23  ;;  %v5563_v23 = vld [vmem:[%s7540_s5 + $0x58] sm:$0xff]  }
 0x42d   :  { %3807 = vrot.lane.b32.xlu1 %v3806_v10, %s5593_s3  ;;  %v4104_v1 = vrot.slane %v4100_v42, %v7888_v51  ;;  %v4294_v46 = vsel %vm4293_vm11, 65537, %v7885_v2  ;;  %vm3516_vm9 = vmand %vm7222_vm15, %vm3515_vm10 }
 0x42e   :  { %3489 = vmatprep.mubr.f32.mxu1 %v3075_v16  ;;  %v4298_v55 = vrot.slane %v4294_v46, %v7888_v51  ;;  %vm3521_vm12 = vmpackc.low %vm3516_vm9, %vm3516_vm9  ;;  %vm7900_vm9 = vcmask 1039360  }
 0x42f   :  { %3490 = vmatmul.mubr.f32.gmra.mxu1 %v3074_v35  ;;  %v3522_v0 = vsel %vm3521_vm12, 65537, %v7885_v2  ;;  %vm7897_vm15 = vmmov %vm7896_vm13  ;;  %vm7901_vm12 = vcmask 1031168  }
 0x430   :  { %v3526_v44 = vrot.slane %v3522_v0, %v7888_v51  ;;  %5393 = vmatprep.mubr.msk.bf16.mxu1 %vm7897_vm15, %v5553_v11  ;;  %vm7898_vm0 = vmmov %vm7896_vm13  ;;  %vm3833_vm13 = vcmask 982016   ;;  %v5561_v0 = vld [vmem:[%s7540_s5 + $0x48] sm:$0xff]  }
 0x431   :  { %4003 = vrot.lane.b32.xlu1 %v4002_v43, %s5594_s20  ;;  %vm7899_vm14 = vmmov %vm7898_vm0  ;;  %s5597_s20 = smov 119   ;;  %v4389_v43 = vld [vmem:[%s7541_s6 + $0x18] sm:$0xff] }
 0x432   :  { %vm3527_vm4 = vcmp.ne.s16.totalorder %v3526_v44, 0  ;;  %vm7904_vm15 = vmmov %vm7898_vm0 }
 0x435   :  { %4202 = vrot.lane.b32.xlu1 %v4201_v57, %s5576_s0  ;;  %s5598_s0 = smov 118   ;;  %v4777_v57 = vld [vmem:[%s7542_s10 + $0x8] sm:$0xff] }
 0x49b   :  { %v3546_v54 = vpop.permute.xlu1 %3545 }
 0x49c   :  { %vm3547_vm7 = vcmp.ne.s16.totalorder %v3546_v54, 0  ;;  %v5564_v54 = vld [vmem:[%s7540_s5 + $0x60] sm:$0xff]  }
 0x49f   :  { %v3808_v41 = vpop.permute.xlu1 %3807 }
 0x4a0   :  { %vm3809_vm5 = vcmp.ne.s16.totalorder %v3808_v41, 0  ;;  %v5568_v41 = vld [vmem:[%s7540_s5 + $0x80] sm:$0xff]  }
 0x4a3   :  { %v4004_v39 = vpop.permute.xlu1 %4003 }
 0x4a4   :  { %vm4005_vm1 = vcmp.ne.s16.totalorder %v4004_v39, 0 }
 0x4a7   :  { %v4203_v48 = vpop.permute.xlu1 %4202 }
 0x4a8   :  { %vm4204_vm3 = vcmp.ne.s16.totalorder %v4203_v48, 0 }
 0x4e7   :  { %v5274_v31 = vpop.f32.mrf.mxu0 }
 0x4e9   :  { %v5275_v4 = vpop.f32.mrf.mxu0 }
 0x4ea   :  { %v5276_v7 = vadd.f32 %v5275_v4, %v5274_v31  ;;  %v4679_v31 = vld [vmem:[%s7543_s8 + $0x8] sm:$0xff]  ;;  %v4678_v4 = vld [vmem:[%s7543_s8] sm:$0xff] }
 0x4eb   :  { %v5277_v49 = vpop.f32.mrf.mxu0  ;;  %v5312_v3 = vpop.f32.mrf.mxu1 }
 0x4ed   :  { %v5313_v53 = vpop.f32.mrf.mxu1  ;;  %v5278_v6 = vpop.f32.mrf.mxu0 }
 0x4ee   :  { %v5314_v52 = vadd.f32 %v5313_v53, %v5312_v3  ;;  %v5279_v24 = vadd.f32 %v5278_v6, %v5277_v49  ;;  %v5556_v6 = vld [vmem:[%s7540_s5 + $0x20] sm:$0xff]  }
 0x4ef   :  { %v5315_v32 = vpop.f32.mrf.mxu1 }
 0x4f0   :  { %v3487_v34 = vadd.f32 %v5314_v52, %v5276_v7  ;;  %v5554_v7 = vld [vmem:[%s7540_s5 + $0x18] sm:$0xff]  }
 0x4f1   :  { %v5316_v36 = vpop.f32.mrf.mxu1 }
 0x4f2   :  { %3495 = vst [vmem:[%s7539_s12] sm:$0xff] %v3487_v34  ;;  %v5317_v21 = vadd.f32 %v5316_v36, %v5315_v32 }
 0x4f4   :  { %v3492_v9 = vadd.f32 %v5317_v21, %v5279_v24 }
 0x4f6   :  { %3496 = vst [vmem:[%s7539_s12 + $0x8] sm:$0xff] %v3492_v9  ;;  %v3497_v29 = vpack.c.bf16 %v3492_v9, %v3487_v34  ;;  %s7894_s12 = smov 16   ;;  %v5557_v9 = vld [vmem:[%s7540_s5 + $0x28] sm:$0xff]  }
 0x4f8   :  { %3499 = vrot.lane.b32.xlu0 %v3497_v29, %s5595_s26  ;;  %v5559_v29 = vld [vmem:[%s7540_s5 + $0x38] sm:$0xff]  }
 0x4fc   :  { %3707 = vrot.lane.b32.xlu0 %v3706_v15, %s7893_s11 }
 0x500   :  { %3905 = vrot.lane.b32.xlu0 %v3904_v58, %s5595_s26  ;;  %v5562_v58 = vld [vmem:[%s7540_s5 + $0x50] sm:$0xff]  }
 0x504   :  { %4105 = vrot.lane.b32.xlu0 %v4104_v1, %s7894_s12 }
 0x508   :  { %4299 = vrot.lane.b32.xlu0 %v4298_v55, %s7895_s21 }
 0x56a   :  { %v3500_v20 = vpop.permute.xlu0 %3499 }
 0x56b   :  { %v3503_v40 = vsel %vm3501_vm2, 0, %v3500_v20  ;;  %v3505_v45 = vsel %vm3501_vm2, %v3500_v20, 0  ;;  %vm7902_vm2 = vmmov %vm7898_vm0  ;;  %v5566_v20 = vld [vmem:[%s7540_s5 + $0x70] sm:$0xff]  }
 0x56c   :  { %5513 = vmatprep.subr.msk.bf16.mxu1 %vm3527_vm4, %v3503_v40  ;;  %v3528_v61 = vsel %vm3527_vm4, %v3503_v40, 0  ;;  %v3549_v13 = vsel %vm3547_vm7, %v3505_v45, 0  ;;  %v3548_v59 = vsel %vm3547_vm7, %v3503_v40, 0  ;;  %v3811_v35 = vsel %vm3809_vm5, %v3505_v45, 0  ;;  %vm7903_vm7 = vmmov %vm7898_vm0 }
 0x56d   :  { %5392 = vmatpush3.bf16.msra.mxu1 %v3528_v61  ;;  %3569 = vrot.lane.b32.xlu0 %v3549_v13, %s5585_s28  ;;  %v3810_v17 = vsel %vm3809_vm5, %v3503_v40, 0  ;;  %v4007_v5 = vsel %vm4005_vm1, %v3505_v45, 0  ;;  %v4006_v2 = vsel %vm4005_vm1, %v3503_v40, 0  ;;  %v4206_v28 = vsel %vm4204_vm3, %v3505_v45, 0  ;;  %vm7905_vm5 = vmmov %vm7898_vm0 }
 0x56e   :  { %3567 = vrot.lane.b32.xlu1 %v3548_v59, %s5585_s28  ;;  %v3708_v62 = vpop.permute.xlu0 %3707  ;;  %s5596_s28 = smov 120   ;;  %v4205_v37 = vsel %vm4204_vm3, %v3503_v40, 0  ;;  %vm3931_vm4 = vcmask 973824   ;;  %vm7908_vm1 = vmmov %vm7898_vm0 }
 0x56f   :  { %vm3709_vm10 = vcmp.ne.s16.totalorder %v3708_v62, 0  ;;  %vm7910_vm3 = vmmov %vm7898_vm0  ;;  %v5567_v62 = vld [vmem:[%s7540_s5 + $0x78] sm:$0xff]  }
 0x570   :  { %v3710_v8 = vsel %vm3709_vm10, %v3503_v40, 0  ;;  %v3711_v12 = vsel %vm3709_vm10, %v3505_v45, 0  ;;  %5394 = vmatmul.mubr.msk.bf16.vlgmr.msra.gmra.mxu1 %vm7898_vm0, %v5555_v26  ;;  %vm4029_vm10 = vcmask 965632   ;;  %v5565_v26 = vld [vmem:[%s7540_s5 + $0x68] sm:$0xff]  }
 0x571   :  { %3731 = vrot.lane.b32.xlu0 %v3711_v12, %s5587_s30  ;;  %5405 = vmatprep.mubr.msk.bf16.mxu1 %vm7899_vm14, %v5558_v14  ;;  %vm7906_vm14 = vmmov %vm7898_vm0  ;;  %v5569_v12 = vld [vmem:[%s7540_s5 + $0x88] sm:$0xff]  }
 0x572   :  { %3729 = vrot.lane.b32.xlu1 %v3710_v8, %s5587_s30  ;;  %v3906_v16 = vpop.permute.xlu0 %3905 }
 0x573   :  { %vm3907_vm6 = vcmp.ne.s16.totalorder %v3906_v16, 0  ;;  %v7918_v16 = vld [vmem:[#allocation4_spill] sm:$0xff] }
 0x574   :  { %v3909_v56 = vsel %vm3907_vm6, %v3505_v45, 0  ;;  %v3908_v27 = vsel %vm3907_vm6, %v3503_v40, 0  ;;  %vm7907_vm6 = vcmask 916480  }
 0x575   :  { %3831 = vrot.lane.b32.xlu0 %v3811_v35, %s5596_s28  ;;  %v4418_v35 = vmul.u32 16, %v7918_v16 }
 0x576   :  { %3829 = vrot.lane.b32.xlu1 %v3810_v17, %s5596_s28  ;;  %v4106_v19 = vpop.permute.xlu0 %4105 }
 0x577   :  { %vm4107_vm8 = vcmp.ne.s16.totalorder %v4106_v19, 0  ;;  %v4419_v17 = vsub.s32 %v7882_v50, %v4418_v35 }
 0x578   :  { %v4109_v25 = vsel %vm4107_vm8, %v3505_v45, 0  ;;  %v4108_v51 = vsel %vm4107_vm8, %v3503_v40, 0  ;;  %vm7909_vm8 = vmmov %vm7898_vm0 }
 0x579   :  { %3929 = vrot.lane.b32.xlu0 %v3909_v56, %s5597_s20  ;;  %v4420_v39 = vshra.s32 %v4419_v17, 2 }
 0x57a   :  { %3927 = vrot.lane.b32.xlu1 %v3908_v27, %s5597_s20  ;;  %v4300_v30 = vpop.permute.xlu0 %4299 }
 0x57b   :  { %vm4301_vm11 = vcmp.ne.s16.totalorder %v4300_v30, 0  ;;  %v4421_v56 = vmul.u32 4, %v4420_v39  ;;  %v4424_v27 = vmul.u32 2, %v4420_v39  ;;  %v7919_v30 = vld [vmem:[#allocation9_spill] sm:$0xff] }
 0x57c   :  { %v4303_v22 = vsel %vm4301_vm11, %v3505_v45, 0  ;;  %v4302_v10 = vsel %vm4301_vm11, %v3503_v40, 0  ;;  %vm7911_vm11 = vmmov %vm7898_vm0 }
 0x57d   :  { %4027 = vrot.lane.b32.xlu0 %v4007_v5, %s5598_s0  ;;  %v4422_v19 = vsub.s32 %v4419_v17, %v4421_v56  ;;  %v4423_v5 = vmul.u32 64, %v7918_v16 }
 0x57e   :  { %4025 = vrot.lane.b32.xlu1 %v4006_v2, %s5598_s0  ;;  %v4425_v2 = vmul.u32 8, %v4424_v27 }
 0x580   :  { %v4426_v48 = vadd.s32 %v4425_v2, %v4423_v5 }
 0x581   :  { %4129 = vrot.lane.b32.xlu0 %v4109_v25, %s5584_s27  ;;  %v4427_v25 = vmul.u32 2, %v4422_v19 }
 0x582   :  { %4127 = vrot.lane.b32.xlu1 %v4108_v51, %s5584_s27 }
 0x583   :  { %v4428_v51 = vadd.s32 %v4427_v25, %v4426_v48 }
 0x585   :  { %4226 = vrot.lane.b32.xlu0 %v4206_v28, %s5586_s29  ;;  %v7920_v28 = vmov 1.0  }
 0x586   :  { %4224 = vrot.lane.b32.xlu1 %v4205_v37, %s5586_s29  ;;  %v7921_v37 = vld [vmem:[#allocation6_spill] sm:$0xff] }
 0x589   :  { %4323 = vrot.lane.b32.xlu0 %v4303_v22, %s5588_s16  ;;  %v7922_v22 = vld [vmem:[#allocation7_spill] sm:$0xff] }
 0x58a   :  { %4321 = vrot.lane.b32.xlu1 %v4302_v10, %s5588_s16  ;;  %v7923_v10 = vld [vmem:[#allocation8_spill] sm:$0xff] }
 0x58d   :  { %4397 = vperm.xlu0 %5540, %v4387_v47   ;;  %v7924_v47 = vld [vmem:[#allocation11_spill] sm:$0xff] }
 0x58e   :  { %4392 = vperm.xlu1 %5541, %v4386_v38   ;;  %v7925_v38 = vld [vmem:[#allocation14_spill] sm:$0xff] }
 0x591   :  { %4407 = vperm.xlu0 %5540, %v4389_v43   ;;  %v7926_v43 = vld [vmem:[#allocation12_spill] sm:$0xff] }
 0x592   :  { %4402 = vperm.xlu1 %5541, %v4388_v63   ;;  %v7927_v63 = vld [vmem:[#allocation10_spill] sm:$0xff] }
 0x595   :  { %4785 = vperm.xlu0 %5540, %v4777_v57   ;;  %v7928_v57 = vld [vmem:[#allocation15_spill] sm:$0xff] }
 0x596   :  { %4780 = vperm.xlu1 %5541, %v4776_v60   ;;  %v7929_v60 = vld [vmem:[#allocation16_spill] sm:$0xff] }
 0x599   :  { %4687 = vperm.xlu0 %5540, %v4679_v31   ;;  %v7930_v31 = vld [vmem:[#allocation13_spill] sm:$0xff] }
 0x59a   :  { %4682 = vperm.xlu1 %5541, %v4678_v4   ;;  %v7931_v4 = vld [vmem:[#allocation18_spill] sm:$0xff] }
 0x5df   :  { %v3570_v49 = vpop.permute.xlu0 %3569 }
 0x5e0   :  { %v3568_v3 = vpop.permute.xlu1 %3567 }
 0x5e1   :  { %v3571_v53 = vsel %vm7900_vm9, %v3568_v3, %v3570_v49  ;;  %vm7912_vm9 = vcmask 908288   ;;  %v7932_v49 = vld [vmem:[#allocation19_spill] sm:$0xff]  ;;  %v7933_v3 = vld [vmem:[#allocation24_spill] sm:$0xff] }
 0x5e2   :  { %5385 = vmatprep.subr.bf16.mxu0 %v3571_v53 }
 0x5e3   :  { %5386 = vmatpush3.bf16.msra.mxu0 %v3571_v53  ;;  %v3732_v52 = vpop.permute.xlu0 %3731  ;;  %v7934_v53 = vld [vmem:[#allocation20_spill] sm:$0xff] }
 0x5e4   :  { %v3730_v32 = vpop.permute.xlu1 %3729 }
 0x5e5   :  { %v3733_v34 = vsel %vm7901_vm12, %v3730_v32, %v3732_v52  ;;  %vm7913_vm12 = vcmask 900096   ;;  %v4570_v52 = vshra.s32 %v7932_v49, 4  ;;  %v5599_v32 = vmov 0.0625  }
 0x5e6   :  { %5388 = vmatmul.mubr.msk.bf16.vlgmr.msra.gmra.mxu0 %vm7902_vm2, %v5554_v7  ;;  %5397 = vmatprep.subr.bf16.mxu0 %v3733_v34  ;;  %vm7914_vm2 = vmmov %vm7898_vm0  ;;  %v7935_v7 = vld [vmem:[#allocation2_spill] sm:$0xff] }
 0x5e7   :  { %5398 = vmatpush3.bf16.msra.mxu0 %v3733_v34  ;;  %v3832_v36 = vpop.permute.xlu0 %3831  ;;  %5399 = vmatprep.mubr.msk.bf16.mxu0 %vm7903_vm7, %v5556_v6  ;;  %vm7916_vm7 = vmmov %vm7898_vm0  ;;  %v4569_v6 = vshra.s32 %v7933_v3, 4 }
 0x5e8   :  { %v3830_v24 = vpop.permute.xlu1 %3829 }
 0x5e9   :  { %v3834_v21 = vsel %vm3833_vm13, %v3830_v24, %v3832_v36  ;;  %vm7915_vm13 = vmmov %vm7898_vm0 }
 0x5ea   :  { %5403 = vmatprep.subr.bf16.mxu1 %v3834_v21 }
 0x5eb   :  { %5404 = vmatpush3.bf16.msra.mxu1 %v3834_v21  ;;  %v3930_v33 = vpop.permute.xlu0 %3929 }
 0x5ec   :  { %v3928_v15 = vpop.permute.xlu1 %3927 }
 0x5ed   :  { %v3932_v42 = vsel %vm3931_vm4, %v3928_v15, %v3930_v33  ;;  %vm7917_vm4 = vmmov %vm7898_vm0 }
 0x5ee   :  { %5400 = vmatmul.mubr.msk.bf16.vlgmr.msra.gmra.mxu0 %vm7904_vm15, %v5557_v9  ;;  %5409 = vmatprep.subr.bf16.mxu0 %v3932_v42  ;;  %vm4444_vm15 = vcmp.eq.s32.totalorder %v7919_v30, %v4428_v51 }
 0x5ef   :  { %5410 = vmatpush3.bf16.msra.mxu0 %v3932_v42  ;;  %v4028_v1 = vpop.permute.xlu0 %4027  ;;  %5406 = vmatmul.mubr.msk.bf16.vlgmr.msra.gmra.mxu1 %vm7905_vm5, %v5559_v29  ;;  %vm4442_vm5 = vcmp.eq.s32.totalorder %v7922_v22, %v4428_v51 }
 0x5f0   :  { %v4026_v46 = vpop.permute.xlu1 %4025  ;;  %5411 = vmatprep.mubr.msk.bf16.mxu0 %vm7898_vm0, %v5560_v18  ;;  %5417 = vmatprep.mubr.msk.bf16.mxu1 %vm7906_vm14, %v5562_v58  ;;  %vm4441_vm0 = vcmp.eq.s32.totalorder %v7923_v10, %v4428_v51  ;;  %vm4440_vm14 = vcmp.eq.s32.totalorder %v7924_v47, %v4428_v51 }
 0x5f1   :  { %v4030_v55 = vsel %vm4029_vm10, %v4026_v46, %v4028_v1  ;;  %vm4443_vm10 = vcmp.eq.s32.totalorder %v7921_v37, %v4428_v51 }
 0x5f2   :  { %5415 = vmatprep.subr.bf16.mxu1 %v4030_v55 }
 0x5f3   :  { %5416 = vmatpush3.bf16.msra.mxu1 %v4030_v55  ;;  %v4130_v44 = vpop.permute.xlu0 %4129 }
 0x5f4   :  { %v4128_v11 = vpop.permute.xlu1 %4127 }
 0x5f5   :  { %v4131_v40 = vsel %vm7907_vm6, %v4128_v11, %v4130_v44  ;;  %vm4439_vm6 = vcmp.eq.s32.totalorder %v7925_v38, %v4428_v51 }
 0x5f6   :  { %5412 = vmatmul.mubr.msk.bf16.vlgmr.msra.gmra.mxu0 %vm7908_vm1, %v5561_v0  ;;  %5421 = vmatprep.subr.bf16.mxu0 %v4131_v40  ;;  %vm4438_vm1 = vcmp.eq.s32.totalorder %v7926_v43, %v4428_v51 }
 0x5f7   :  { %5422 = vmatpush3.bf16.msra.mxu0 %v4131_v40  ;;  %v4227_v45 = vpop.permute.xlu0 %4226  ;;  %5418 = vmatmul.mubr.msk.bf16.vlgmr.msra.gmra.mxu1 %vm7909_vm8, %v5563_v23  ;;  %vm4437_vm8 = vcmp.eq.s32.totalorder %v7927_v63, %v4428_v51 }
 0x5f8   :  { %v4225_v61 = vpop.permute.xlu1 %4224  ;;  %5423 = vmatprep.mubr.msk.bf16.mxu0 %vm7910_vm3, %v5564_v54  ;;  %5429 = vmatprep.mubr.msk.bf16.mxu1 %vm7911_vm11, %v5566_v20  ;;  %vm4436_vm3 = vcmp.eq.s32.totalorder %v7928_v57, %v4428_v51  ;;  %vm4435_vm11 = vcmp.eq.s32.totalorder %v7929_v60, %v4428_v51 }
 0x5f9   :  { %v4228_v13 = vsel %vm7912_vm9, %v4225_v61, %v4227_v45  ;;  %vm4434_vm9 = vcmp.eq.s32.totalorder %v7930_v31, %v4428_v51 }
 0x5fa   :  { %5427 = vmatprep.subr.bf16.mxu1 %v4228_v13 }
 0x5fb   :  { %5428 = vmatpush3.bf16.msra.mxu1 %v4228_v13  ;;  %v4324_v59 = vpop.permute.xlu0 %4323 }
 0x5fc   :  { %v4322_v14 = vpop.permute.xlu1 %4321  ;;  %5439 = vmatprep.subr.msk.mxu1 %vm4444_vm15, %v7920_v28 }
 0x5fd   :  { %v4325_v8 = vsel %vm7913_vm12, %v4322_v14, %v4324_v59  ;;  %vm4433_vm12 = vcmp.eq.s32.totalorder %v7931_v4, %v4428_v51 }
 0x5fe   :  { %5424 = vmatmul.mubr.msk.bf16.vlgmr.msra.gmra.mxu0 %vm7914_vm2, %v5565_v26  ;;  %5433 = vmatprep.subr.bf16.mxu0 %v4325_v8  ;;  %vm4432_vm2 = vcmp.eq.s32.totalorder %v7932_v49, %v4428_v51 }
 0x5ff   :  { %5434 = vmatpush3.bf16.msra.mxu0 %v4325_v8  ;;  %5430 = vmatmul.mubr.msk.bf16.vlgmr.msra.gmra.mxu1 %vm7915_vm13, %v5567_v62  ;;  %vm4431_vm13 = vcmp.eq.s32.totalorder %v7933_v3, %v4428_v51 }
 0x600   :  { %5435 = vmatprep.mubr.msk.bf16.mxu0 %vm7916_vm7, %v5568_v41  ;;  %5440 = vmatpush3.msk.msra.mxu1 %vm4444_vm15, %v7920_v28  ;;  %vm4430_vm7 = vcmp.eq.s32.totalorder %v7934_v53, %v4428_v51  ;;  %vm4574_vm15 = vcmp.eq.s32.totalorder %v4570_v52, %v7882_v50 }
 0x601   :  { %5441 = vmatprep.subr.msk.mxu1 %vm4443_vm10, %v7920_v28  ;;  %5477 = vmatprep.subr.msk.mxu0 %vm4574_vm15, %v5599_v32 }
 0x602   :  { %5442 = vmatpush3.msk.msra.mxu1 %vm4443_vm10, %v7920_v28  ;;  %vm4573_vm10 = vcmp.eq.s32.totalorder %v4569_v6, %v7882_v50 }
 0x603   :  { %5443 = vmatprep.subr.msk.mxu1 %vm4442_vm5, %v7920_v28 }
 0x604   :  { %5444 = vmatpush3.msk.msra.mxu1 %vm4442_vm5, %v7920_v28 }
 0x605   :  { %5445 = vmatprep.subr.msk.mxu1 %vm4441_vm0, %v7920_v28 }
 0x606   :  { %5436 = vmatmul.mubr.msk.bf16.vlgmr.msra.gmra.mxu0 %vm7917_vm4, %v5569_v12  ;;  %5446 = vmatpush3.msk.msra.mxu1 %vm4441_vm0, %v7920_v28  ;;  %vm4429_vm4 = vcmp.eq.s32.totalorder %v7935_v7, %v4428_v51 }
 0x607   :  { %5447 = vmatprep.subr.msk.mxu1 %vm4440_vm14, %v7920_v28  ;;  %5478 = vmatpush3.msk.msra.mxu0 %vm4574_vm15, %v5599_v32  ;;  %vm7948_vm15 = vcmask 15360  }
 0x608   :  { %5448 = vmatpush3.msk.msra.mxu1 %vm4440_vm14, %v7920_v28  ;;  %5479 = vmatprep.subr.msk.mxu0 %vm4573_vm10, %v5599_v32  ;;  %vm7936_vm14 = vcmask 261120  }
 0x609   :  { %5449 = vmatprep.subr.msk.mxu1 %vm4439_vm6, %v7920_v28  ;;  %5480 = vmatpush3.msk.msra.mxu0 %vm4573_vm10, %v5599_v32  ;;  %v4393_v31 = vpop.permute.xlu1 %4392  ;;  %vm7949_vm10 = vmmov %vm7948_vm15 }
 0x60a   :  { %5450 = vmatpush3.msk.msra.mxu1 %vm4439_vm6, %v7920_v28  ;;  %vm7937_vm6 = vmmov %vm7936_vm14 }
 0x60b   :  { %5451 = vmatprep.subr.msk.mxu1 %vm4438_vm1, %v7920_v28 }
 0x60c   :  { %5452 = vmatpush3.msk.msra.mxu1 %vm4438_vm1, %v7920_v28  ;;  %vm7938_vm1 = vmmov %vm7937_vm6 }
 0x60d   :  { %5453 = vmatprep.subr.msk.mxu1 %vm4437_vm8, %v7920_v28 }
 0x60e   :  { %5454 = vmatpush3.msk.msra.mxu1 %vm4437_vm8, %v7920_v28  ;;  %vm7939_vm8 = vmmov %vm7938_vm1 }
 0x60f   :  { %5455 = vmatprep.subr.msk.mxu1 %vm4436_vm3, %v7920_v28 }
 0x610   :  { %5456 = vmatpush3.msk.msra.mxu1 %vm4436_vm3, %v7920_v28  ;;  %vm7940_vm3 = vmmov %vm7938_vm1 }
 0x611   :  { %5457 = vmatprep.subr.msk.mxu1 %vm4435_vm11, %v7920_v28 }
 0x612   :  { %5458 = vmatpush3.msk.msra.mxu1 %vm4435_vm11, %v7920_v28  ;;  %vm7941_vm11 = vmmov %vm7938_vm1 }
 0x613   :  { %5459 = vmatprep.subr.msk.mxu1 %vm4434_vm9, %v7920_v28 }
 0x614   :  { %5460 = vmatpush3.msk.msra.mxu1 %vm4434_vm9, %v7920_v28  ;;  %vm7942_vm9 = vmmov %vm7938_vm1 }
 0x615   :  { %5461 = vmatprep.subr.msk.mxu1 %vm4433_vm12, %v7920_v28 }
 0x616   :  { %5462 = vmatpush3.msk.msra.mxu1 %vm4433_vm12, %v7920_v28  ;;  %vm7943_vm12 = vmmov %vm7938_vm1 }
 0x617   :  { %5463 = vmatprep.subr.msk.mxu1 %vm4432_vm2, %v7920_v28 }
 0x618   :  { %5464 = vmatpush3.msk.msra.mxu1 %vm4432_vm2, %v7920_v28  ;;  %vm7944_vm2 = vmmov %vm7938_vm1 }
 0x619   :  { %5465 = vmatprep.subr.msk.mxu1 %vm4431_vm13, %v7920_v28 }
 0x61a   :  { %5466 = vmatpush3.msk.msra.mxu1 %vm4431_vm13, %v7920_v28  ;;  %vm7945_vm13 = vmmov %vm7938_vm1 }
 0x61b   :  { %5467 = vmatprep.subr.msk.mxu1 %vm4430_vm7, %v7920_v28 }
 0x61c   :  { %5468 = vmatpush3.msk.msra.mxu1 %vm4430_vm7, %v7920_v28  ;;  %vm7946_vm7 = vmmov %vm7938_vm1 }
 0x61d   :  { %5469 = vmatprep.subr.msk.mxu1 %vm4429_vm4, %v7920_v28 }
 0x61e   :  { %5470 = vmatpush3.msk.msra.mxu1 %vm4429_vm4, %v7920_v28  ;;  %vm7947_vm4 = vmmov %vm7938_vm1 }
 0x630   :  { %v5395_v34 = vpop.f32.mrf.mxu1 }
 0x632   :  { %v3679_v36 = vpop.f32.mrf.mxu1 }
 0x634   :  { %v5396_v21 = vpop.f32.mrf.mxu1 }
 0x636   :  { %v3682_v29 = vpop.f32.mrf.mxu1 }
 0x6a6   :  { %v5389_v24 = vpop.f32.mrf.mxu0 }
 0x6a7   :  { %v3688_v11 = vadd.f32 %v5395_v34, %v5389_v24  ;;  %v4398_v34 = vpop.permute.xlu0 %4397 }
 0x6a8   :  { %v3614_v9 = vpop.f32.mrf.mxu0 }
 0x6a9   :  { %v3680_v44 = vadd.f32 %v3679_v36, %v3614_v9 }
 0x6aa   :  { %v5390_v33 = vpop.f32.mrf.mxu0 }
 0x6ab   :  { %v3691_v13 = vadd.f32 %v5396_v21, %v5390_v33 }
 0x6ac   :  { %v3617_v15 = vpop.f32.mrf.mxu0 }
 0x6ad   :  { %v3683_v26 = vadd.f32 %v3682_v29, %v3617_v15 }
 0x6ae   :  { %v5401_v18 = vpop.f32.mrf.mxu0 }
 0x6af   :  { %v5407_v58 = vpop.f32.mrf.mxu1  ;;  %v3792_v45 = vadd.f32 %v5401_v18, %v3688_v11 }
 0x6b0   :  { %v3775_v42 = vpop.f32.mrf.mxu0 }
 0x6b1   :  { %v3876_v1 = vpop.f32.mrf.mxu1  ;;  %v3790_v20 = vadd.f32 %v3775_v42, %v3680_v44  ;;  %v3893_v16 = vadd.f32 %v5407_v58, %v3792_v45  ;;  %v4403_v58 = vpop.permute.xlu1 %4402  ;;  %v4567_v45 = vshra.s32 %v7935_v7, 4 }
 0x6b2   :  { %v5402_v46 = vpop.f32.mrf.mxu0  ;;  %v4408_v44 = vpop.permute.xlu0 %4407 }
 0x6b3   :  { %v5408_v55 = vpop.f32.mrf.mxu1  ;;  %v3793_v14 = vadd.f32 %v5402_v46, %v3691_v13  ;;  %v3891_v41 = vadd.f32 %v3876_v1, %v3790_v20  ;;  %vm4571_vm0 = vcmp.eq.s32.totalorder %v4567_v45, %v7882_v50 }
 0x6b4   :  { %v3778_v0 = vpop.f32.mrf.mxu0 }
 0x6b5   :  { %v3879_v23 = vpop.f32.mrf.mxu1  ;;  %v3791_v8 = vadd.f32 %v3778_v0, %v3683_v26  ;;  %v3894_v19 = vadd.f32 %v5408_v55, %v3793_v14  ;;  %v4677_v14 = vld [vmem:[%s7545_s7 + $0x8] sm:$0xff] }
 0x6b6   :  { %v5413_v54 = vpop.f32.mrf.mxu0 }
 0x6b7   :  { %v5419_v40 = vpop.f32.mrf.mxu1  ;;  %v3991_v56 = vadd.f32 %v5413_v54, %v3893_v16  ;;  %v3892_v5 = vadd.f32 %v3879_v23, %v3791_v8  ;;  %v4775_v8 = vld [vmem:[%s7546_s9 + $0x8] sm:$0xff]  ;;  %v4781_v16 = vpop.permute.xlu1 %4780 }
 0x6b8   :  { %v3974_v61 = vpop.f32.mrf.mxu0 }
 0x6b9   :  { %v4072_v59 = vpop.f32.mrf.mxu1  ;;  %v3989_v17 = vadd.f32 %v3974_v61, %v3891_v41  ;;  %v4089_v28 = vadd.f32 %v5419_v40, %v3991_v56  ;;  %v4568_v40 = vshra.s32 %v7934_v53, 4  ;;  %v4774_v41 = vld [vmem:[%s7546_s9] sm:$0xff] }
 0x6ba   :  { %v5414_v62 = vpop.f32.mrf.mxu0 }
 0x6bb   :  { %v5420_v12 = vpop.f32.mrf.mxu1  ;;  %v3992_v25 = vadd.f32 %v5414_v62, %v3894_v19  ;;  %v4087_v51 = vadd.f32 %v4072_v59, %v3989_v17  ;;  %vm4572_vm5 = vcmp.eq.s32.totalorder %v4568_v40, %v7882_v50  ;;  %v4683_v56 = vpop.permute.xlu1 %4682 }
 0x6bc   :  { %v3977_v35 = vpop.f32.mrf.mxu0  ;;  %5481 = vmatprep.subr.msk.mxu0 %vm4572_vm5, %v5599_v32 }
 0x6bd   :  { %v4075_v39 = vpop.f32.mrf.mxu1  ;;  %v3990_v30 = vadd.f32 %v3977_v35, %v3892_v5  ;;  %v4090_v43 = vadd.f32 %v5420_v12, %v3992_v25  ;;  %5482 = vmatpush3.msk.msra.mxu0 %vm4572_vm5, %v5599_v32  ;;  %v4786_v12 = vpop.permute.xlu0 %4785  ;;  %vm7950_vm5 = vmmov %vm7949_vm10 }
 0x6be   :  { %v5425_v27 = vpop.f32.mrf.mxu0  ;;  %5483 = vmatprep.subr.msk.mxu0 %vm4571_vm0, %v5599_v32 }
 0x6bf   :  { %v5431_v2 = vpop.f32.mrf.mxu1  ;;  %v4190_v47 = vadd.f32 %v5425_v27, %v4089_v28  ;;  %v4088_v63 = vadd.f32 %v4075_v39, %v3990_v30  ;;  %5484 = vmatpush3.msk.msra.mxu0 %vm4571_vm0, %v5599_v32  ;;  %v4676_v32 = vld [vmem:[%s7545_s7] sm:$0xff]  ;;  %vm7951_vm0 = vmmov %vm7950_vm5 }
 0x6c0   :  { %v4173_v48 = vpop.f32.mrf.mxu0 }
 0x6c1   :  { %v4270_v22 = vpop.f32.mrf.mxu1  ;;  %v4188_v10 = vadd.f32 %v4173_v48, %v4087_v51  ;;  %v4287_v52 = vadd.f32 %v5431_v2, %v4190_v47  ;;  %v4688_v35 = vpop.permute.xlu0 %4687 }
 0x6c2   :  { %v5426_v37 = vpop.f32.mrf.mxu0 }
 0x6c3   :  { %v5432_v57 = vpop.f32.mrf.mxu1  ;;  %v4191_v4 = vadd.f32 %v5426_v37, %v4090_v43  ;;  %v4285_v49 = vadd.f32 %v4270_v22, %v4188_v10 }
 0x6c4   :  { %v4176_v38 = vpop.f32.mrf.mxu0 }
 0x6c5   :  { %v4189_v3 = vadd.f32 %v4176_v38, %v4088_v63  ;;  %v4273_v24 = vpop.f32.mrf.mxu1  ;;  %v4288_v33 = vadd.f32 %v5432_v57, %v4191_v4 }
 0x6c6   :  { %v5437_v60 = vpop.f32.mrf.mxu0 }
 0x6c7   :  { %v4384_v21 = vadd.f32 %v5437_v60, %v4287_v52  ;;  %v4286_v29 = vadd.f32 %v4273_v24, %v4189_v3 }
 0x6c8   :  { %v4367_v6 = vpop.f32.mrf.mxu0 }
 0x6c9   :  { %v4382_v36 = vadd.f32 %v4367_v6, %v4285_v49  ;;  %v4412_v55 = vadd.f32 %v4403_v58, %v4384_v21 }
 0x6ca   :  { %v5438_v9 = vpop.f32.mrf.mxu0 }
 0x6cb   :  { %v4410_v15 = vadd.f32 %v4393_v31, %v4382_v36  ;;  %v4385_v1 = vadd.f32 %v5438_v9, %v4288_v33  ;;  %v4416_v54 = vmax.f32 %v4412_v55, 0.0 }
 0x6cc   :  { %v4370_v18 = vpop.f32.mrf.mxu0 }
 0x6cd   :  { %v4414_v42 = vmax.f32 %v4410_v15, 0.0  ;;  %v4383_v46 = vadd.f32 %v4370_v18, %v4286_v29  ;;  %v4413_v23 = vadd.f32 %v4408_v44, %v4385_v1 }
 0x6cf   :  { %v4411_v0 = vadd.f32 %v4398_v34, %v4383_v46  ;;  %5471 = vmatprep.mubr.f32.mxu1 %v4414_v42  ;;  %v4417_v20 = vmax.f32 %v4413_v23, 0.0 }
 0x6d1   :  { %v4415_v11 = vmax.f32 %v4411_v0, 0.0 }
 0x6d3   :  { %5472 = vmatmul.mubr.f32.vlgmr.msra.gmra.mxu1 %v4415_v11 }
 0x6d4   :  { %5474 = vmatprep.mubr.f32.mxu1 %v4416_v54 }
 0x6d7   :  { %5475 = vmatmul.mubr.f32.gmra.mxu1 %v4417_v20 }
 0x793   :  { %v5473_v61 = vpop.f32.mrf.mxu1 }
 0x794   :  { %4564 = vst.msk [vmem:[%s7544_s13 + $0x8] sm:$0xff] %vm7936_vm14, %v5473_v61 }
 0x795   :  { %v4543_v53 = vpop.f32.mrf.mxu1 }
 0x796   :  { %4563 = vst.msk [vmem:[%s7544_s13] sm:$0xff] %vm7937_vm6, %v4543_v53  ;;  %5485 = vmatprep.mubr.msk.f32.mxu0 %vm7938_vm1, %v4543_v53 }
 0x797   :  { %v5476_v7 = vpop.f32.mrf.mxu1  ;;  %5486 = vmatmul.mubr.msk.f32.vlgmr.msra.gmra.mxu0 %vm7939_vm8, %v5473_v61 }
 0x798   :  { %4566 = vst.msk [vmem:[%s7544_s13 + $0x18] sm:$0xff] %vm7940_vm3, %v5476_v7 }
 0x799   :  { %v4553_v50 = vpop.f32.mrf.mxu1 }
 0x79a   :  { %4565 = vst.msk [vmem:[%s7544_s13 + $0x10] sm:$0xff] %vm7941_vm11, %v4553_v50  ;;  %5488 = vmatprep.mubr.msk.f32.mxu0 %vm7942_vm9, %v4553_v50 }
 0x79b   :  { %5489 = vmatmul.mubr.msk.f32.gmra.mxu0 %vm7943_vm12, %v5476_v7 }
 0x79c   :  { %5499 = vmatprep.mubr.msk.f32.mxu0 %vm7944_vm2, %v4676_v32 }
 0x857   :  { %v5487_v13 = vpop.f32.mrf.mxu0 }
 0x859   :  { %v4657_v26 = vpop.f32.mrf.mxu0 }
 0x85b   :  { %v5490_v59 = vpop.f32.mrf.mxu0 }
 0x85c   :  { %5491 = vmatprep.subr.mxu0 %v5490_v59 }
 0x85d   :  { %v4667_v62 = vpop.f32.mrf.mxu0  ;;  %5492 = vmatpush3.msra.mxu0 %v5490_v59 }
 0x85e   :  { %5493 = vmatprep.subr.mxu0 %v4667_v62 }
 0x85f   :  { %5494 = vmatpush3.msra.mxu0 %v4667_v62 }
 0x860   :  { %5495 = vmatprep.subr.mxu0 %v5487_v13 }
 0x861   :  { %5496 = vmatpush3.msra.mxu0 %v5487_v13 }
 0x862   :  { %5497 = vmatprep.subr.mxu0 %v4657_v26 }
 0x863   :  { %5498 = vmatpush3.msra.mxu0 %v4657_v26 }
 0x864   :  { %5500 = vmatmul.mubr.msk.f32.vlgmr.msra.gmra.mxu0 %vm7945_vm13, %v4677_v14  ;;  %5502 = vmatprep.subr.mxu0 %v5490_v59 }
 0x865   :  { %5503 = vmatpush3.msra.mxu0 %v5490_v59  ;;  %5510 = vmatprep.mubr.msk.f32.mxu0 %vm7946_vm7, %v4774_v41 }
 0x866   :  { %5504 = vmatprep.subr.mxu0 %v4667_v62 }
 0x867   :  { %5505 = vmatpush3.msra.mxu0 %v4667_v62 }
 0x868   :  { %5506 = vmatprep.subr.mxu0 %v5487_v13 }
 0x869   :  { %5507 = vmatpush3.msra.mxu0 %v5487_v13 }
 0x86a   :  { %5508 = vmatprep.subr.mxu0 %v4657_v26 }
 0x86b   :  { %5509 = vmatpush3.msra.mxu0 %v4657_v26 }
 0x86c   :  { %5511 = vmatmul.mubr.msk.f32.vlgmr.msra.gmra.mxu0 %vm7947_vm4, %v4775_v8 }
 0x924   :  { %v5501_v17 = vpop.f32.mrf.mxu0 }
 0x925   :  { %v4768_v39 = vadd.f32 %v5501_v17, %v4688_v35 }
 0x926   :  { %v4762_v27 = vpop.f32.mrf.mxu0 }
 0x927   :  { %4773 = vst.msk [vmem:[%s7547_s14 + $0x8] sm:$0xff] %vm7948_vm15, %v4768_v39  ;;  %v4763_v19 = vadd.f32 %v4762_v27, %v4683_v56 }
 0x929   :  { %4772 = vst.msk [vmem:[%s7547_s14] sm:$0xff] %vm7949_vm10, %v4763_v19 }
 0x92c   :  { %v5512_v5 = vpop.f32.mrf.mxu0 }
 0x92d   :  { %v4866_v2 = vadd.f32 %v5512_v5, %v4786_v12 }
 0x92e   :  { %v4860_v48 = vpop.f32.mrf.mxu0 }
 0x92f   :  { %v4870_v25 = vmul.f32 0.5, %v4866_v2  ;;  %v4861_v51 = vadd.f32 %v4860_v48, %v4781_v16 }
 0x931   :  { %v4873_v30 = vmul.f32 1.442695, %v4870_v25  ;;  %v4869_v28 = vmul.f32 0.5, %v4861_v51 }
 0x933   :  { %5570 = vpow2.f32 %v4873_v30  ;;  %v4871_v37 = vmul.f32 1.442695, %v4869_v28 }
 0x935   :  { %5572 = vpow2.f32 %v4871_v37 }
 0x940   :  { %v5571_v22 = vpop.eup %5570 }
 0x941   :  { %4876 = vst.msk [vmem:[%s7548_s15 + $0x8] sm:$0xff] %vm7950_vm5, %v5571_v22 }
 0x942   :  { %v5573_v10 = vpop.eup %5572 }
 0x943   :  { %4875 = vst.msk [vmem:[%s7548_s15] sm:$0xff] %vm7951_vm0, %v5573_v10 }

</bundles_post_ra>
